<compile_context>
chip_gen: v7x
topology: tpu7x:2x2x1
jax: 0.10.0
libtpu: 0.0.40
codegen_flags: <defaults>
</compile_context>

<pallas_src>
import jax
import jax.numpy as jnp
from jax.experimental import pallas as pl
from jax.experimental.pallas import tpu as pltpu

EPS = 1e-5


# ----------------------------- in-kernel helpers ---------------------------- #

def _cbn_relu(x, gain, bias):
    """Conditional BatchNorm (training-mode batch stats) + affine(y) + ReLU.

    x: (N,H,W,C) f32 value; gain/bias: (N,C) f32 values (precomputed from y).
    Single-pass statistics + folded FMA:  out = relu(x*scale + shift).
    # TODO(synk): at real BigGAN sizes use a two-pass / centered second moment
    # (E[x^2]-mean^2 can cancel when |mean| >> std); fine for N*H*W=128 in f32.
    """
    n_red = x.shape[0] * x.shape[1] * x.shape[2]
    s1 = jnp.sum(x, axis=(0, 1, 2), keepdims=True)            # (1,1,1,C)
    s2 = jnp.sum(x * x, axis=(0, 1, 2), keepdims=True)
    mean = s1 * (1.0 / n_red)
    var = s2 * (1.0 / n_red) - mean * mean                     # biased, like F.batch_norm
    inv = jax.lax.rsqrt(var + EPS)
    scale = gain[:, None, None, :] * inv                       # (N,1,1,C)
    shift = bias[:, None, None, :] - mean * scale              # (N,1,1,C)
    return jnp.maximum(x * scale + shift, 0.0)


def _conv3x3(h, wk_ref, b_ref):
    """3x3 'same' conv as ONE im2col MXU matmul (bf16 operands, f32 accumulation).

    h      : (N,H,W,Cin) f32 value
    wk_ref : (9*Cin, Cout) bf16 ref, tap-major (k = kh*3 + kw, i.e. the HWIO reshape)
    b_ref  : (1, Cout) f32 ref

    Halos are handled with values (no scratch round trip):
      * H halo : concat of zero rows along the untiled H axis (layout-preserving).
      * W halo : zero-filled +-1 column shifts via static slice + concat, so no
        full-slab iota / compare / select masking is needed at all.
    """
    N, H, W, Cin = h.shape
    Cout = wk_ref.shape[-1]

    zrow = jnp.zeros((N, 1, W, Cin), jnp.float32)
    hpad = jnp.concatenate([zrow, h, zrow], axis=1)            # (N, H+2, W, Cin)

    zcol = jnp.zeros((N, H + 2, 1, Cin), jnp.float32)
    # tap column offsets: kw=0 reads j-1, kw=1 reads j, kw=2 reads j+1 (zero outside).
    shifted = (
        jnp.concatenate([zcol, hpad[:, :, :W - 1, :]], axis=2),   # kw = 0
        hpad,                                                      # kw = 1
        jnp.concatenate([hpad[:, :, 1:, :], zcol], axis=2),        # kw = 2
    )

    # im2col: concatenate the 9 taps along K so accumulation happens inside the MXU
    # (one (N*H*W, 9*Cin) @ (9*Cin, Cout) matmul instead of 9 dots + 8 f32 VPU adds).
    taps = []
    for kh in range(3):
        for kw in range(3):
            # H slice is free (untiled axis); reshape is layout-preserving for f32 since
            # W is a multiple of 8 sublanes; cast to bf16 per tap so the lane-dim concat
            # below moves half the bytes.
            taps.append(shifted[kw][:, kh:kh + H]
                        .reshape(N * H * W, Cin).astype(jnp.bfloat16))
    patch = jnp.concatenate(taps, axis=-1)                     # (N*H*W, 9*Cin) bf16
    out = jnp.dot(patch, wk_ref[...], preferred_element_type=jnp.float32)
    out = out + b_ref[...]
    return out.reshape(N, H, W, Cout)


def _start_weight_dmas(w1_hbm, w2_hbm, ws_hbm, w1_vmem, w2_vmem, ws_vmem, sem):
    """Kick off all conv-weight HBM->VMEM DMAs so they overlap with cbn1/conv1 compute."""
    cps = (pltpu.make_async_copy(w1_hbm, w1_vmem, sem.at[0]),
           pltpu.make_async_copy(w2_hbm, w2_vmem, sem.at[1]),
           pltpu.make_async_copy(ws_hbm, ws_vmem, sem.at[2]))
    for cp in cps:
        cp.start()
    return cps


def _conv_chain(h, x, g2, b2, cb1_ref, cb2_ref, bs_ref,
                w1_vmem, w2_vmem, ws_vmem, cps):
    """conv1 -> cbn2+relu -> conv2 + 1x1 shortcut(x) + residual add.

    Each weight DMA is waited on only right before its first use, so the conv2 and
    shortcut weight fetches hide behind cbn1+conv1 compute.
    """
    w1_cp, w2_cp, ws_cp = cps
    N, H, W, Cin = x.shape
    Cout = w2_vmem.shape[-1]

    w1_cp.wait()
    h = _conv3x3(h, w1_vmem, cb1_ref)
    h = _cbn_relu(h, g2, b2)
    w2_cp.wait()
    h = _conv3x3(h, w2_vmem, cb2_ref)
    ws_cp.wait()
    sc = jnp.dot(x.reshape(N * H * W, Cin).astype(jnp.bfloat16), ws_vmem[...],
                 preferred_element_type=jnp.float32) + bs_ref[...]
    return h + sc.reshape(N, H, W, Cout)


# ------------------------------- Pallas kernels ----------------------------- #

def fused_block_kernel(x_ref, g1_ref, b1_ref, g2_ref, b2_ref,
                       cb1_ref, cb2_ref, bs_ref,
                       w1_hbm, w2_hbm, ws_hbm,
                       o_ref, w1_vmem, w2_vmem, ws_vmem, sem):
    """Whole residual block (no upsample) in one invocation, weight DMAs overlapped."""
    cps = _start_weight_dmas(w1_hbm, w2_hbm, ws_hbm, w1_vmem, w2_vmem, ws_vmem, sem)
    x = x_ref[...]
    h = _cbn_relu(x, g1_ref[...], b1_ref[...])
    o_ref[...] = _conv_chain(h, x, g2_ref[...], b2_ref[...],
                             cb1_ref, cb2_ref, bs_ref,
                             w1_vmem, w2_vmem, ws_vmem, cps)


def cbn_relu_kernel(x_ref, g_ref, b_ref, o_ref):
    """Standalone CBN+ReLU (used only on the upsample=True path)."""
    o_ref[...] = _cbn_relu(x_ref[...], g_ref[...], b_ref[...])


def conv_chain_kernel(h_ref, x_ref, g2_ref, b2_ref,
                      cb1_ref, cb2_ref, bs_ref,
                      w1_hbm, w2_hbm, ws_hbm,
                      o_ref, w1_vmem, w2_vmem, ws_vmem, sem):
    """conv1 -> cbn2+relu -> conv2 + shortcut (upsample=True path, post-upsample)."""
    cps = _start_weight_dmas(w1_hbm, w2_hbm, ws_hbm, w1_vmem, w2_vmem, ws_vmem, sem)
    o_ref[...] = _conv_chain(h_ref[...], x_ref[...], g2_ref[...], b2_ref[...],
                             cb1_ref, cb2_ref, bs_ref,
                             w1_vmem, w2_vmem, ws_vmem, cps)


# ------------------------------ pallas_call glue ----------------------------- #

def _vmem_spec():
    return pl.BlockSpec(memory_space=pltpu.MemorySpace.VMEM)


def _hbm_spec():
    # raw ref, no auto-DMA; copied manually inside the kernel for compute/DMA overlap
    return pl.BlockSpec(memory_space=pl.ANY)


def _weight_scratch(in_ch, out_ch):
    return [pltpu.VMEM((9 * in_ch, out_ch), jnp.bfloat16),    # conv1 im2col weight
            pltpu.VMEM((9 * out_ch, out_ch), jnp.bfloat16),   # conv2 im2col weight
            pltpu.VMEM((in_ch, out_ch), jnp.bfloat16),        # 1x1 shortcut weight
            pltpu.SemaphoreType.DMA((3,))]


# Everything here is a few MiB; 32 MiB is within the default scoped limit on v6e/v7x
# and explicitly raises v5e's 16 MiB default.
_COMPILER_PARAMS = pltpu.CompilerParams(vmem_limit_bytes=32 * 1024 * 1024)


# --------------------------- parameter construction -------------------------- #

def spectral_normalize(w2d, n_iter=30):
    """Deterministic spectral normalization (PyTorch views weight as (out, -1))."""
    u = jnp.ones((w2d.shape[0],), w2d.dtype)
    u = u / jnp.linalg.norm(u)
    v = None
    for _ in range(n_iter):
        v = w2d.T @ u
        v = v / (jnp.linalg.norm(v) + 1e-12)
        u = w2d @ v
        u = u / (jnp.linalg.norm(u) + 1e-12)
    sigma = u @ (w2d @ v)
    return w2d / sigma


def init_params(key, in_ch, out_ch):
    nf = 256  # ConditionalBatchNorm2d default num_features (see faithfulness note)
    ks = jax.random.split(key, 16)

    def nrm(k, shape, scale=0.05):
        return scale * jax.random.normal(k, shape, jnp.float32)

    p = {}
    # bn1 : Embedding(num_classes=in_ch, nf), Linear(nf, nf) x2 (all spectral-normed)
    p["embed1"] = spectral_normalize(nrm(ks[0], (in_ch, nf)))
    p["wg1_t"] = spectral_normalize(nrm(ks[1], (nf, nf))).T
    p["wb1_t"] = spectral_normalize(nrm(ks[2], (nf, nf))).T
    p["bg1"] = nrm(ks[3], (1, nf))
    p["bb1"] = nrm(ks[4], (1, nf))
    # bn2 : Embedding(num_classes=out_ch, nf), Linear(nf, nf) x2
    p["embed2"] = spectral_normalize(nrm(ks[5], (out_ch, nf)))
    p["wg2_t"] = spectral_normalize(nrm(ks[6], (nf, nf))).T
    p["wb2_t"] = spectral_normalize(nrm(ks[7], (nf, nf))).T
    p["bg2"] = nrm(ks[8], (1, nf))
    p["bb2"] = nrm(ks[9], (1, nf))
    # conv1 : (out_ch, in_ch, 3, 3) -> SN on (out, -1) -> HWIO f32 (ref) + (9*Cin,Cout) bf16
    w1 = nrm(ks[10], (out_ch, in_ch, 3, 3))
    w1 = spectral_normalize(w1.reshape(out_ch, -1)).reshape(out_ch, in_ch, 3, 3)
    p["conv1_w"] = jnp.transpose(w1, (2, 3, 1, 0))                     # (3,3,Cin,Cout)
    p["conv1_wk"] = p["conv1_w"].reshape(9 * in_ch, out_ch).astype(jnp.bfloat16)
    p["conv1_b"] = nrm(ks[11], (1, out_ch))
    # conv2 : (out_ch, out_ch, 3, 3)
    w2 = nrm(ks[12], (out_ch, out_ch, 3, 3))
    w2 = spectral_normalize(w2.reshape(out_ch, -1)).reshape(out_ch, out_ch, 3, 3)
    p["conv2_w"] = jnp.transpose(w2, (2, 3, 1, 0))
    p["conv2_wk"] = p["conv2_w"].reshape(9 * out_ch, out_ch).astype(jnp.bfloat16)
    p["conv2_b"] = nrm(ks[13], (1, out_ch))
    # shortcut 1x1 : (out_ch, in_ch)
    ws = nrm(ks[14], (out_ch, in_ch, 1, 1))
    ws = spectral_normalize(ws.reshape(out_ch, -1)).reshape(out_ch, in_ch)
    p["sc_w"] = ws.T                                                   # (Cin, Cout) f32
    p["sc_w_bf16"] = p["sc_w"].astype(jnp.bfloat16)
    p["sc_b"] = nrm(ks[15], (1, out_ch))
    return p


# ------------------------------- forward pass -------------------------------- #

def residual_block_generator_forward(params, x_nchw, y, upsample=False):
    x = jnp.transpose(x_nchw, (0, 2, 3, 1)).astype(jnp.float32)   # NCHW -> NHWC
    N, H, W, Cin = x.shape
    Cout = params["conv1_b"].shape[-1]

    # class-conditional affine params: tiny matmuls that depend only on y -> JAX glue
    ye1 = jnp.take(params["embed1"], y, axis=0)
    ye2 = jnp.take(params["embed2"], y, axis=0)
    g1 = 1.0 + ye1 @ params["wg1_t"] + params["bg1"]
    b1 = ye1 @ params["wb1_t"] + params["bb1"]
    g2 = 1.0 + ye2 @ params["wg2_t"] + params["bg2"]
    b2 = ye2 @ params["wb2_t"] + params["bb2"]

    w1k, w2k, wsk = params["conv1_wk"], params["conv2_wk"], params["sc_w_bf16"]
    cb1, cb2, bs = params["conv1_b"], params["conv2_b"], params["sc_b"]

    if not upsample:
        out = pl.pallas_call(
            fused_block_kernel,
            out_shape=jax.ShapeDtypeStruct((N, H, W, Cout), jnp.float32),
            in_specs=[_vmem_spec()] * 8 + [_hbm_spec()] * 3,
            out_specs=_vmem_spec(),
            scratch_shapes=_weight_scratch(Cin, Cout),
            compiler_params=_COMPILER_PARAMS,
        )(x, g1, b1, g2, b2, cb1, cb2, bs, w1k, w2k, wsk)
    else:
        # TODO(synk): fold the 2x nearest-neighbour upsample into conv1's tap indexing so
        # this path is also a single pallas_call (here: small cbn kernel + XLA repeat).
        h = pl.pallas_call(
            cbn_relu_kernel,
            out_shape=jax.ShapeDtypeStruct((N, H, W, Cin), jnp.float32),
            in_specs=[_vmem_spec()] * 3,
            out_specs=_vmem_spec(),
            compiler_params=_COMPILER_PARAMS,
        )(x, g1, b1)
        h = jnp.repeat(jnp.repeat(h, 2, axis=1), 2, axis=2)
        xu = jnp.repeat(jnp.repeat(x, 2, axis=1), 2, axis=2)
        Hu, Wu = 2 * H, 2 * W
        out = pl.pallas_call(
            conv_chain_kernel,
            out_shape=jax.ShapeDtypeStruct((N, Hu, Wu, Cout), jnp.float32),
            in_specs=[_vmem_spec()] * 7 + [_hbm_spec()] * 3,
            out_specs=_vmem_spec(),
            scratch_shapes=_weight_scratch(Cin, Cout),
            compiler_params=_COMPILER_PARAMS,
        )(h, xu, g2, b2, cb1, cb2, bs, w1k, w2k, wsk)

    # TODO(synk): keep activations NHWC between generator blocks so this transpose (and
    # the NCHW->NHWC on entry) happens only once at the model boundary.
    return jnp.transpose(out, (0, 3, 1, 2))                      # NHWC -> NCHW


# --------------------------------- reference --------------------------------- #

def reference_forward(params, x_nchw, y, upsample=False, conv_dtype=jnp.float32):
    """Pure-JAX reference.  conv_dtype=bf16 reproduces the kernel's MXU operand
    rounding (f32 accumulation) for a tight implementation check."""
    x = jnp.transpose(x_nchw, (0, 2, 3, 1)).astype(jnp.float32)

    def cbn_relu(x, ye, wg_t, bg, wb_t, bb):
        gain = 1.0 + ye @ wg_t + bg
        bias = ye @ wb_t + bb
        mean = jnp.mean(x, axis=(0, 1, 2), keepdims=True)
        var = jnp.mean((x - mean) ** 2, axis=(0, 1, 2), keepdims=True)
        xn = (x - mean) / jnp.sqrt(var + EPS)
        return jnp.maximum(xn * gain[:, None, None, :] + bias[:, None, None, :], 0.0)

    def conv(x, w_hwio, b):
        o = jax.lax.conv_general_dilated(
            x.astype(conv_dtype), w_hwio.astype(conv_dtype), (1, 1), [(1, 1), (1, 1)],
            dimension_numbers=("NHWC", "HWIO", "NHWC"),
            precision=jax.lax.Precision.HIGHEST,
            preferred_element_type=jnp.float32)
        return o + b.reshape(1, 1, 1, -1)

    ye1 = jnp.take(params["embed1"], y, axis=0)
    ye2 = jnp.take(params["embed2"], y, axis=0)
    h = cbn_relu(x, ye1, params["wg1_t"], params["bg1"], params["wb1_t"], params["bb1"])
    if upsample:
        h = jnp.repeat(jnp.repeat(h, 2, axis=1), 2, axis=2)
        x = jnp.repeat(jnp.repeat(x, 2, axis=1), 2, axis=2)
    h = conv(h, params["conv1_w"], params["conv1_b"])
    h = cbn_relu(h, ye2, params["wg2_t"], params["bg2"], params["wb2_t"], params["bb2"])
    h = conv(h, params["conv2_w"], params["conv2_b"])
    xc = x.astype(conv_dtype).astype(jnp.float32)
    wsc = params["sc_w"].astype(conv_dtype).astype(jnp.float32)
    sc = jnp.matmul(xc, wsc, precision=jax.lax.Precision.HIGHEST)
    sc = sc + params["sc_b"].reshape(1, 1, 1, -1)
    return jnp.transpose(h + sc, (0, 3, 1, 2))


# ----------------------------------- main ------------------------------------ #

if __name__ == "__main__":
    # in_ch == out_ch == 256 is forced by ConditionalBatchNorm2d's default
    # num_features=256 (see faithfulness note); spatial/batch kept small.
    in_ch = out_ch = 256
    N, H, W = 2, 8, 8

    key = jax.random.PRNGKey(0)
    kp, kx, ky = jax.random.split(key, 3)
    params = init_params(kp, in_ch, out_ch)
    x = jax.random.normal(kx, (N, in_ch, H, W), jnp.float32)
    y = jax.random.randint(ky, (N,), 0, in_ch)   # class ids (embedding rows)

    fwd = jax.jit(residual_block_generator_forward, static_argnames=("upsample",))
    out = jax.block_until_ready(fwd(params, x, y, upsample=False))

    assert out.shape == (N, out_ch, H, W), out.shape
    assert out.dtype == jnp.float32

    ref_bf16 = jax.block_until_ready(
        reference_forward(params, x, y, conv_dtype=jnp.bfloat16))   # matched precision
    ref_f32 = jax.block_until_ready(reference_forward(params, x, y))  # exact f32 semantics

    # implementation check at matched (bf16-operand / f32-accumulate) precision
    err_impl = float(jnp.max(jnp.abs(out - ref_bf16)))
    assert jnp.allclose(out, ref_bf16, atol=2e-3, rtol=2e-3), err_impl
    # semantic check vs full-f32 reference: tolerance sized for bf16 MXU operand rounding
    # over effective K=2304 through two stacked convs + batch norms.
    err_f32 = float(jnp.max(jnp.abs(out - ref_f32)))
    assert jnp.allclose(out, ref_f32, atol=3e-2, rtol=3e-2), err_f32

    print("KERNEL_OK")
</pallas_src>

<mosaic_0001>
module attributes {stable_mosaic.version = 11 : i64} {
  func.func @fused_block_kernel(%arg0: memref<2x8x8x256xf32, #tpu.memory_space<vmem>>, %arg1: memref<2x256xf32, #tpu.memory_space<vmem>>, %arg2: memref<2x256xf32, #tpu.memory_space<vmem>>, %arg3: memref<2x256xf32, #tpu.memory_space<vmem>>, %arg4: memref<2x256xf32, #tpu.memory_space<vmem>>, %arg5: memref<1x256xf32, #tpu.memory_space<vmem>>, %arg6: memref<1x256xf32, #tpu.memory_space<vmem>>, %arg7: memref<1x256xf32, #tpu.memory_space<vmem>>, %arg8: memref<2304x256xbf16, #tpu.memory_space<any>>, %arg9: memref<2304x256xbf16, #tpu.memory_space<any>>, %arg10: memref<256x256xbf16, #tpu.memory_space<any>>, %arg11: memref<2x8x8x256xf32, #tpu.memory_space<vmem>>, %arg12: memref<2304x256xbf16, #tpu.memory_space<vmem>>, %arg13: memref<2304x256xbf16, #tpu.memory_space<vmem>>, %arg14: memref<256x256xbf16, #tpu.memory_space<vmem>>, %arg15: memref<3x!tpu.dma_semaphore, #tpu.memory_space<semaphore_mem>>) attributes {dimension_semantics = [], scalar_prefetch = 0 : i64, scratch_operands = 4 : i64, tpu.core_type = #tpu.core_type<tc>} {
    %c0_i32 = arith.constant 0 : i32
    %0 = tpu.memref_slice %arg15[%c0_i32] : memref<3x!tpu.dma_semaphore, #tpu.memory_space<semaphore_mem>> -> memref<1x!tpu.dma_semaphore, #tpu.memory_space<semaphore_mem>>
    %1 = tpu.memref_squeeze %0 : memref<1x!tpu.dma_semaphore, #tpu.memory_space<semaphore_mem>> -> memref<!tpu.dma_semaphore, #tpu.memory_space<semaphore_mem>>
    tpu.enqueue_dma source(%arg8 : memref<2304x256xbf16, #tpu.memory_space<any>>) target(%arg12 : memref<2304x256xbf16, #tpu.memory_space<vmem>>) target_semaphore(%1 : memref<!tpu.dma_semaphore, #tpu.memory_space<semaphore_mem>>)
    %c1_i32 = arith.constant 1 : i32
    %2 = tpu.memref_slice %arg15[%c1_i32] : memref<3x!tpu.dma_semaphore, #tpu.memory_space<semaphore_mem>> -> memref<1x!tpu.dma_semaphore, #tpu.memory_space<semaphore_mem>>
    %3 = tpu.memref_squeeze %2 : memref<1x!tpu.dma_semaphore, #tpu.memory_space<semaphore_mem>> -> memref<!tpu.dma_semaphore, #tpu.memory_space<semaphore_mem>>
    tpu.enqueue_dma source(%arg9 : memref<2304x256xbf16, #tpu.memory_space<any>>) target(%arg13 : memref<2304x256xbf16, #tpu.memory_space<vmem>>) target_semaphore(%3 : memref<!tpu.dma_semaphore, #tpu.memory_space<semaphore_mem>>)
    %c2_i32 = arith.constant 2 : i32
    %4 = tpu.memref_slice %arg15[%c2_i32] : memref<3x!tpu.dma_semaphore, #tpu.memory_space<semaphore_mem>> -> memref<1x!tpu.dma_semaphore, #tpu.memory_space<semaphore_mem>>
    %5 = tpu.memref_squeeze %4 : memref<1x!tpu.dma_semaphore, #tpu.memory_space<semaphore_mem>> -> memref<!tpu.dma_semaphore, #tpu.memory_space<semaphore_mem>>
    tpu.enqueue_dma source(%arg10 : memref<256x256xbf16, #tpu.memory_space<any>>) target(%arg14 : memref<256x256xbf16, #tpu.memory_space<vmem>>) target_semaphore(%5 : memref<!tpu.dma_semaphore, #tpu.memory_space<semaphore_mem>>)
    %c0 = arith.constant 0 : index
    %c0_0 = arith.constant 0 : index
    %c0_1 = arith.constant 0 : index
    %c0_2 = arith.constant 0 : index
    %6 = vector.load %arg0[%c0, %c0_0, %c0_1, %c0_2] : memref<2x8x8x256xf32, #tpu.memory_space<vmem>>, vector<2x8x8x256xf32>
    %c0_3 = arith.constant 0 : index
    %c0_4 = arith.constant 0 : index
    %7 = vector.load %arg1[%c0_3, %c0_4] : memref<2x256xf32, #tpu.memory_space<vmem>>, vector<2x256xf32>
    %c0_5 = arith.constant 0 : index
    %c0_6 = arith.constant 0 : index
    %8 = vector.load %arg2[%c0_5, %c0_6] : memref<2x256xf32, #tpu.memory_space<vmem>>, vector<2x256xf32>
    %cst = arith.constant dense<0.000000e+00> : vector<256xf32>
    %9 = vector.multi_reduction <add>, %6, %cst [0, 1, 2] : vector<2x8x8x256xf32> to vector<256xf32>
    %10 = vector.shape_cast %9 : vector<256xf32> to vector<1x1x1x256xf32>
    %11 = arith.mulf %6, %6 : vector<2x8x8x256xf32>
    %cst_7 = arith.constant dense<0.000000e+00> : vector<256xf32>
    %12 = vector.multi_reduction <add>, %11, %cst_7 [0, 1, 2] : vector<2x8x8x256xf32> to vector<256xf32>
    %13 = vector.shape_cast %12 : vector<256xf32> to vector<1x1x1x256xf32>
    %cst_8 = arith.constant 7.812500e-03 : f32
    %14 = vector.broadcast %cst_8 : f32 to vector<1x1x1x256xf32>
    %15 = arith.mulf %10, %14 : vector<1x1x1x256xf32>
    %cst_9 = arith.constant 7.812500e-03 : f32
    %16 = vector.broadcast %cst_9 : f32 to vector<1x1x1x256xf32>
    %17 = arith.mulf %13, %16 : vector<1x1x1x256xf32>
    %18 = arith.mulf %15, %15 : vector<1x1x1x256xf32>
    %19 = arith.subf %17, %18 : vector<1x1x1x256xf32>
    %cst_10 = arith.constant 9.99999974E-6 : f32
    %20 = vector.broadcast %cst_10 : f32 to vector<1x1x1x256xf32>
    %21 = arith.addf %19, %20 : vector<1x1x1x256xf32>
    %22 = math.rsqrt %21 : vector<1x1x1x256xf32>
    %23 = vector.shape_cast %7 : vector<2x256xf32> to vector<2x1x1x256xf32>
    %24 = vector.broadcast %22 : vector<1x1x1x256xf32> to vector<2x1x1x256xf32>
    %25 = arith.mulf %23, %24 : vector<2x1x1x256xf32>
    %26 = vector.shape_cast %8 : vector<2x256xf32> to vector<2x1x1x256xf32>
    %27 = vector.broadcast %15 : vector<1x1x1x256xf32> to vector<2x1x1x256xf32>
    %28 = arith.mulf %27, %25 : vector<2x1x1x256xf32>
    %29 = arith.subf %26, %28 : vector<2x1x1x256xf32>
    %30 = vector.broadcast %25 : vector<2x1x1x256xf32> to vector<2x8x8x256xf32>
    %31 = arith.mulf %6, %30 : vector<2x8x8x256xf32>
    %32 = vector.broadcast %29 : vector<2x1x1x256xf32> to vector<2x8x8x256xf32>
    %33 = arith.addf %31, %32 : vector<2x8x8x256xf32>
    %cst_11 = arith.constant 0.000000e+00 : f32
    %34 = vector.broadcast %cst_11 : f32 to vector<2x8x8x256xf32>
    %35 = arith.maximumf %33, %34 : vector<2x8x8x256xf32>
    %c0_12 = arith.constant 0 : index
    %c0_13 = arith.constant 0 : index
    %36 = vector.load %arg3[%c0_12, %c0_13] : memref<2x256xf32, #tpu.memory_space<vmem>>, vector<2x256xf32>
    %c0_14 = arith.constant 0 : index
    %c0_15 = arith.constant 0 : index
    %37 = vector.load %arg4[%c0_14, %c0_15] : memref<2x256xf32, #tpu.memory_space<vmem>>, vector<2x256xf32>
    %c0_i32_16 = arith.constant 0 : i32
    %38 = tpu.memref_slice %arg15[%c0_i32_16] : memref<3x!tpu.dma_semaphore, #tpu.memory_space<semaphore_mem>> -> memref<1x!tpu.dma_semaphore, #tpu.memory_space<semaphore_mem>>
    %39 = tpu.memref_squeeze %38 : memref<1x!tpu.dma_semaphore, #tpu.memory_space<semaphore_mem>> -> memref<!tpu.dma_semaphore, #tpu.memory_space<semaphore_mem>>
    tpu.wait_dma2 semaphore(%39 : memref<!tpu.dma_semaphore, #tpu.memory_space<semaphore_mem>>) src(%arg8 : memref<2304x256xbf16, #tpu.memory_space<any>>) dst(%arg12 : memref<2304x256xbf16, #tpu.memory_space<vmem>>)
    %cst_17 = arith.constant 0.000000e+00 : f32
    %40 = vector.broadcast %cst_17 : f32 to vector<2x1x8x256xf32>
    %41 = tpu.concatenate %40, %35, %40 in 1 : vector<2x1x8x256xf32>, vector<2x8x8x256xf32>, vector<2x1x8x256xf32> -> vector<2x10x8x256xf32>
    %cst_18 = arith.constant 0.000000e+00 : f32
    %42 = vector.broadcast %cst_18 : f32 to vector<2x10x1x256xf32>
    %43 = vector.extract_strided_slice %41 {offsets = [0, 0, 0, 0], sizes = [2, 10, 7, 256], strides = [1, 1, 1, 1]} : vector<2x10x8x256xf32> to vector<2x10x7x256xf32>
    %44 = tpu.concatenate %42, %43 in 2 : vector<2x10x1x256xf32>, vector<2x10x7x256xf32> -> vector<2x10x8x256xf32>
    %45 = vector.extract_strided_slice %41 {offsets = [0, 0, 1, 0], sizes = [2, 10, 7, 256], strides = [1, 1, 1, 1]} : vector<2x10x8x256xf32> to vector<2x10x7x256xf32>
    %46 = tpu.concatenate %45, %42 in 2 : vector<2x10x7x256xf32>, vector<2x10x1x256xf32> -> vector<2x10x8x256xf32>
    %47 = vector.extract_strided_slice %44 {offsets = [0, 0, 0, 0], sizes = [2, 8, 8, 256], strides = [1, 1, 1, 1]} : vector<2x10x8x256xf32> to vector<2x8x8x256xf32>
    %48 = vector.shape_cast %47 : vector<2x8x8x256xf32> to vector<128x256xf32>
    %49 = arith.truncf %48 : vector<128x256xf32> to vector<128x256xbf16>
    %50 = vector.extract_strided_slice %41 {offsets = [0, 0, 0, 0], sizes = [2, 8, 8, 256], strides = [1, 1, 1, 1]} : vector<2x10x8x256xf32> to vector<2x8x8x256xf32>
    %51 = vector.shape_cast %50 : vector<2x8x8x256xf32> to vector<128x256xf32>
    %52 = arith.truncf %51 : vector<128x256xf32> to vector<128x256xbf16>
    %53 = vector.extract_strided_slice %46 {offsets = [0, 0, 0, 0], sizes = [2, 8, 8, 256], strides = [1, 1, 1, 1]} : vector<2x10x8x256xf32> to vector<2x8x8x256xf32>
    %54 = vector.shape_cast %53 : vector<2x8x8x256xf32> to vector<128x256xf32>
    %55 = arith.truncf %54 : vector<128x256xf32> to vector<128x256xbf16>
    %56 = vector.extract_strided_slice %44 {offsets = [0, 1, 0, 0], sizes = [2, 8, 8, 256], strides = [1, 1, 1, 1]} : vector<2x10x8x256xf32> to vector<2x8x8x256xf32>
    %57 = vector.shape_cast %56 : vector<2x8x8x256xf32> to vector<128x256xf32>
    %58 = arith.truncf %57 : vector<128x256xf32> to vector<128x256xbf16>
    %59 = vector.extract_strided_slice %41 {offsets = [0, 1, 0, 0], sizes = [2, 8, 8, 256], strides = [1, 1, 1, 1]} : vector<2x10x8x256xf32> to vector<2x8x8x256xf32>
    %60 = vector.shape_cast %59 : vector<2x8x8x256xf32> to vector<128x256xf32>
    %61 = arith.truncf %60 : vector<128x256xf32> to vector<128x256xbf16>
    %62 = vector.extract_strided_slice %46 {offsets = [0, 1, 0, 0], sizes = [2, 8, 8, 256], strides = [1, 1, 1, 1]} : vector<2x10x8x256xf32> to vector<2x8x8x256xf32>
    %63 = vector.shape_cast %62 : vector<2x8x8x256xf32> to vector<128x256xf32>
    %64 = arith.truncf %63 : vector<128x256xf32> to vector<128x256xbf16>
    %65 = vector.extract_strided_slice %44 {offsets = [0, 2, 0, 0], sizes = [2, 8, 8, 256], strides = [1, 1, 1, 1]} : vector<2x10x8x256xf32> to vector<2x8x8x256xf32>
    %66 = vector.shape_cast %65 : vector<2x8x8x256xf32> to vector<128x256xf32>
    %67 = arith.truncf %66 : vector<128x256xf32> to vector<128x256xbf16>
    %68 = vector.extract_strided_slice %41 {offsets = [0, 2, 0, 0], sizes = [2, 8, 8, 256], strides = [1, 1, 1, 1]} : vector<2x10x8x256xf32> to vector<2x8x8x256xf32>
    %69 = vector.shape_cast %68 : vector<2x8x8x256xf32> to vector<128x256xf32>
    %70 = arith.truncf %69 : vector<128x256xf32> to vector<128x256xbf16>
    %71 = vector.extract_strided_slice %46 {offsets = [0, 2, 0, 0], sizes = [2, 8, 8, 256], strides = [1, 1, 1, 1]} : vector<2x10x8x256xf32> to vector<2x8x8x256xf32>
    %72 = vector.shape_cast %71 : vector<2x8x8x256xf32> to vector<128x256xf32>
    %73 = arith.truncf %72 : vector<128x256xf32> to vector<128x256xbf16>
    %74 = tpu.concatenate %49, %52, %55, %58, %61, %64, %67, %70, %73 in 1 : vector<128x256xbf16>, vector<128x256xbf16>, vector<128x256xbf16>, vector<128x256xbf16>, vector<128x256xbf16>, vector<128x256xbf16>, vector<128x256xbf16>, vector<128x256xbf16>, vector<128x256xbf16> -> vector<128x2304xbf16>
    %c0_19 = arith.constant 0 : index
    %c0_20 = arith.constant 0 : index
    %75 = vector.load %arg12[%c0_19, %c0_20] : memref<2304x256xbf16, #tpu.memory_space<vmem>>, vector<2304x256xbf16>
    %cst_21 = arith.constant dense<0.000000e+00> : vector<128x256xf32>
    %76 = tpu.matmul %74, %75, %cst_21 {dimension_numbers = #tpu.dot_dimension_numbers<[1], [0], [0], [1], [0, 0, 1, 1], [], []>} : vector<128x2304xbf16>, vector<2304x256xbf16>, vector<128x256xf32> -> vector<128x256xf32>
    %c0_22 = arith.constant 0 : index
    %c0_23 = arith.constant 0 : index
    %77 = vector.load %arg5[%c0_22, %c0_23] : memref<1x256xf32, #tpu.memory_space<vmem>>, vector<1x256xf32>
    %78 = vector.broadcast %77 : vector<1x256xf32> to vector<128x256xf32>
    %79 = arith.addf %76, %78 : vector<128x256xf32>
    %80 = vector.shape_cast %79 : vector<128x256xf32> to vector<2x8x8x256xf32>
    %cst_24 = arith.constant dense<0.000000e+00> : vector<256xf32>
    %81 = vector.multi_reduction <add>, %80, %cst_24 [0, 1, 2] : vector<2x8x8x256xf32> to vector<256xf32>
    %82 = vector.shape_cast %81 : vector<256xf32> to vector<1x1x1x256xf32>
    %83 = arith.mulf %80, %80 : vector<2x8x8x256xf32>
    %cst_25 = arith.constant dense<0.000000e+00> : vector<256xf32>
    %84 = vector.multi_reduction <add>, %83, %cst_25 [0, 1, 2] : vector<2x8x8x256xf32> to vector<256xf32>
    %85 = vector.shape_cast %84 : vector<256xf32> to vector<1x1x1x256xf32>
    %cst_26 = arith.constant 7.812500e-03 : f32
    %86 = vector.broadcast %cst_26 : f32 to vector<1x1x1x256xf32>
    %87 = arith.mulf %82, %86 : vector<1x1x1x256xf32>
    %cst_27 = arith.constant 7.812500e-03 : f32
    %88 = vector.broadcast %cst_27 : f32 to vector<1x1x1x256xf32>
    %89 = arith.mulf %85, %88 : vector<1x1x1x256xf32>
    %90 = arith.mulf %87, %87 : vector<1x1x1x256xf32>
    %91 = arith.subf %89, %90 : vector<1x1x1x256xf32>
    %cst_28 = arith.constant 9.99999974E-6 : f32
    %92 = vector.broadcast %cst_28 : f32 to vector<1x1x1x256xf32>
    %93 = arith.addf %91, %92 : vector<1x1x1x256xf32>
    %94 = math.rsqrt %93 : vector<1x1x1x256xf32>
    %95 = vector.shape_cast %36 : vector<2x256xf32> to vector<2x1x1x256xf32>
    %96 = vector.broadcast %94 : vector<1x1x1x256xf32> to vector<2x1x1x256xf32>
    %97 = arith.mulf %95, %96 : vector<2x1x1x256xf32>
    %98 = vector.shape_cast %37 : vector<2x256xf32> to vector<2x1x1x256xf32>
    %99 = vector.broadcast %87 : vector<1x1x1x256xf32> to vector<2x1x1x256xf32>
    %100 = arith.mulf %99, %97 : vector<2x1x1x256xf32>
    %101 = arith.subf %98, %100 : vector<2x1x1x256xf32>
    %102 = vector.broadcast %97 : vector<2x1x1x256xf32> to vector<2x8x8x256xf32>
    %103 = arith.mulf %80, %102 : vector<2x8x8x256xf32>
    %104 = vector.broadcast %101 : vector<2x1x1x256xf32> to vector<2x8x8x256xf32>
    %105 = arith.addf %103, %104 : vector<2x8x8x256xf32>
    %cst_29 = arith.constant 0.000000e+00 : f32
    %106 = vector.broadcast %cst_29 : f32 to vector<2x8x8x256xf32>
    %107 = arith.maximumf %105, %106 : vector<2x8x8x256xf32>
    %c1_i32_30 = arith.constant 1 : i32
    %108 = tpu.memref_slice %arg15[%c1_i32_30] : memref<3x!tpu.dma_semaphore, #tpu.memory_space<semaphore_mem>> -> memref<1x!tpu.dma_semaphore, #tpu.memory_space<semaphore_mem>>
    %109 = tpu.memref_squeeze %108 : memref<1x!tpu.dma_semaphore, #tpu.memory_space<semaphore_mem>> -> memref<!tpu.dma_semaphore, #tpu.memory_space<semaphore_mem>>
    tpu.wait_dma2 semaphore(%109 : memref<!tpu.dma_semaphore, #tpu.memory_space<semaphore_mem>>) src(%arg9 : memref<2304x256xbf16, #tpu.memory_space<any>>) dst(%arg13 : memref<2304x256xbf16, #tpu.memory_space<vmem>>)
    %cst_31 = arith.constant 0.000000e+00 : f32
    %110 = vector.broadcast %cst_31 : f32 to vector<2x1x8x256xf32>
    %111 = tpu.concatenate %110, %107, %110 in 1 : vector<2x1x8x256xf32>, vector<2x8x8x256xf32>, vector<2x1x8x256xf32> -> vector<2x10x8x256xf32>
    %cst_32 = arith.constant 0.000000e+00 : f32
    %112 = vector.broadcast %cst_32 : f32 to vector<2x10x1x256xf32>
    %113 = vector.extract_strided_slice %111 {offsets = [0, 0, 0, 0], sizes = [2, 10, 7, 256], strides = [1, 1, 1, 1]} : vector<2x10x8x256xf32> to vector<2x10x7x256xf32>
    %114 = tpu.concatenate %112, %113 in 2 : vector<2x10x1x256xf32>, vector<2x10x7x256xf32> -> vector<2x10x8x256xf32>
    %115 = vector.extract_strided_slice %111 {offsets = [0, 0, 1, 0], sizes = [2, 10, 7, 256], strides = [1, 1, 1, 1]} : vector<2x10x8x256xf32> to vector<2x10x7x256xf32>
    %116 = tpu.concatenate %115, %112 in 2 : vector<2x10x7x256xf32>, vector<2x10x1x256xf32> -> vector<2x10x8x256xf32>
    %117 = vector.extract_strided_slice %114 {offsets = [0, 0, 0, 0], sizes = [2, 8, 8, 256], strides = [1, 1, 1, 1]} : vector<2x10x8x256xf32> to vector<2x8x8x256xf32>
    %118 = vector.shape_cast %117 : vector<2x8x8x256xf32> to vector<128x256xf32>
    %119 = arith.truncf %118 : vector<128x256xf32> to vector<128x256xbf16>
    %120 = vector.extract_strided_slice %111 {offsets = [0, 0, 0, 0], sizes = [2, 8, 8, 256], strides = [1, 1, 1, 1]} : vector<2x10x8x256xf32> to vector<2x8x8x256xf32>
    %121 = vector.shape_cast %120 : vector<2x8x8x256xf32> to vector<128x256xf32>
    %122 = arith.truncf %121 : vector<128x256xf32> to vector<128x256xbf16>
    %123 = vector.extract_strided_slice %116 {offsets = [0, 0, 0, 0], sizes = [2, 8, 8, 256], strides = [1, 1, 1, 1]} : vector<2x10x8x256xf32> to vector<2x8x8x256xf32>
    %124 = vector.shape_cast %123 : vector<2x8x8x256xf32> to vector<128x256xf32>
    %125 = arith.truncf %124 : vector<128x256xf32> to vector<128x256xbf16>
    %126 = vector.extract_strided_slice %114 {offsets = [0, 1, 0, 0], sizes = [2, 8, 8, 256], strides = [1, 1, 1, 1]} : vector<2x10x8x256xf32> to vector<2x8x8x256xf32>
    %127 = vector.shape_cast %126 : vector<2x8x8x256xf32> to vector<128x256xf32>
    %128 = arith.truncf %127 : vector<128x256xf32> to vector<128x256xbf16>
    %129 = vector.extract_strided_slice %111 {offsets = [0, 1, 0, 0], sizes = [2, 8, 8, 256], strides = [1, 1, 1, 1]} : vector<2x10x8x256xf32> to vector<2x8x8x256xf32>
    %130 = vector.shape_cast %129 : vector<2x8x8x256xf32> to vector<128x256xf32>
    %131 = arith.truncf %130 : vector<128x256xf32> to vector<128x256xbf16>
    %132 = vector.extract_strided_slice %116 {offsets = [0, 1, 0, 0], sizes = [2, 8, 8, 256], strides = [1, 1, 1, 1]} : vector<2x10x8x256xf32> to vector<2x8x8x256xf32>
    %133 = vector.shape_cast %132 : vector<2x8x8x256xf32> to vector<128x256xf32>
    %134 = arith.truncf %133 : vector<128x256xf32> to vector<128x256xbf16>
    %135 = vector.extract_strided_slice %114 {offsets = [0, 2, 0, 0], sizes = [2, 8, 8, 256], strides = [1, 1, 1, 1]} : vector<2x10x8x256xf32> to vector<2x8x8x256xf32>
    %136 = vector.shape_cast %135 : vector<2x8x8x256xf32> to vector<128x256xf32>
    %137 = arith.truncf %136 : vector<128x256xf32> to vector<128x256xbf16>
    %138 = vector.extract_strided_slice %111 {offsets = [0, 2, 0, 0], sizes = [2, 8, 8, 256], strides = [1, 1, 1, 1]} : vector<2x10x8x256xf32> to vector<2x8x8x256xf32>
    %139 = vector.shape_cast %138 : vector<2x8x8x256xf32> to vector<128x256xf32>
    %140 = arith.truncf %139 : vector<128x256xf32> to vector<128x256xbf16>
    %141 = vector.extract_strided_slice %116 {offsets = [0, 2, 0, 0], sizes = [2, 8, 8, 256], strides = [1, 1, 1, 1]} : vector<2x10x8x256xf32> to vector<2x8x8x256xf32>
    %142 = vector.shape_cast %141 : vector<2x8x8x256xf32> to vector<128x256xf32>
    %143 = arith.truncf %142 : vector<128x256xf32> to vector<128x256xbf16>
    %144 = tpu.concatenate %119, %122, %125, %128, %131, %134, %137, %140, %143 in 1 : vector<128x256xbf16>, vector<128x256xbf16>, vector<128x256xbf16>, vector<128x256xbf16>, vector<128x256xbf16>, vector<128x256xbf16>, vector<128x256xbf16>, vector<128x256xbf16>, vector<128x256xbf16> -> vector<128x2304xbf16>
    %c0_33 = arith.constant 0 : index
    %c0_34 = arith.constant 0 : index
    %145 = vector.load %arg13[%c0_33, %c0_34] : memref<2304x256xbf16, #tpu.memory_space<vmem>>, vector<2304x256xbf16>
    %cst_35 = arith.constant dense<0.000000e+00> : vector<128x256xf32>
    %146 = tpu.matmul %144, %145, %cst_35 {dimension_numbers = #tpu.dot_dimension_numbers<[1], [0], [0], [1], [0, 0, 1, 1], [], []>} : vector<128x2304xbf16>, vector<2304x256xbf16>, vector<128x256xf32> -> vector<128x256xf32>
    %c0_36 = arith.constant 0 : index
    %c0_37 = arith.constant 0 : index
    %147 = vector.load %arg6[%c0_36, %c0_37] : memref<1x256xf32, #tpu.memory_space<vmem>>, vector<1x256xf32>
    %148 = vector.broadcast %147 : vector<1x256xf32> to vector<128x256xf32>
    %149 = arith.addf %146, %148 : vector<128x256xf32>
    %150 = vector.shape_cast %149 : vector<128x256xf32> to vector<2x8x8x256xf32>
    %c2_i32_38 = arith.constant 2 : i32
    %151 = tpu.memref_slice %arg15[%c2_i32_38] : memref<3x!tpu.dma_semaphore, #tpu.memory_space<semaphore_mem>> -> memref<1x!tpu.dma_semaphore, #tpu.memory_space<semaphore_mem>>
    %152 = tpu.memref_squeeze %151 : memref<1x!tpu.dma_semaphore, #tpu.memory_space<semaphore_mem>> -> memref<!tpu.dma_semaphore, #tpu.memory_space<semaphore_mem>>
    tpu.wait_dma2 semaphore(%152 : memref<!tpu.dma_semaphore, #tpu.memory_space<semaphore_mem>>) src(%arg10 : memref<256x256xbf16, #tpu.memory_space<any>>) dst(%arg14 : memref<256x256xbf16, #tpu.memory_space<vmem>>)
    %153 = vector.shape_cast %6 : vector<2x8x8x256xf32> to vector<128x256xf32>
    %154 = arith.truncf %153 : vector<128x256xf32> to vector<128x256xbf16>
    %c0_39 = arith.constant 0 : index
    %c0_40 = arith.constant 0 : index
    %155 = vector.load %arg14[%c0_39, %c0_40] : memref<256x256xbf16, #tpu.memory_space<vmem>>, vector<256x256xbf16>
    %cst_41 = arith.constant dense<0.000000e+00> : vector<128x256xf32>
    %156 = tpu.matmul %154, %155, %cst_41 {dimension_numbers = #tpu.dot_dimension_numbers<[1], [0], [0], [1], [0, 0, 1, 1], [], []>} : vector<128x256xbf16>, vector<256x256xbf16>, vector<128x256xf32> -> vector<128x256xf32>
    %c0_42 = arith.constant 0 : index
    %c0_43 = arith.constant 0 : index
    %157 = vector.load %arg7[%c0_42, %c0_43] : memref<1x256xf32, #tpu.memory_space<vmem>>, vector<1x256xf32>
    %158 = vector.broadcast %157 : vector<1x256xf32> to vector<128x256xf32>
    %159 = arith.addf %156, %158 : vector<128x256xf32>
    %160 = vector.shape_cast %159 : vector<128x256xf32> to vector<2x8x8x256xf32>
    %161 = arith.addf %150, %160 : vector<2x8x8x256xf32>
    %c0_44 = arith.constant 0 : index
    %c0_45 = arith.constant 0 : index
    %c0_46 = arith.constant 0 : index
    %c0_47 = arith.constant 0 : index
    %162 = vector.load %arg11[%c0_44, %c0_45, %c0_46, %c0_47] : memref<2x8x8x256xf32, #tpu.memory_space<vmem>>, vector<2x8x8x256xf32>
    tpu.vector_store %arg11[%c0_44, %c0_45, %c0_46, %c0_47], %161 {strides = array<i32>} : memref<2x8x8x256xf32, #tpu.memory_space<vmem>>, vector<2x8x8x256xf32>,
    return
  }
}

</mosaic_0001>

<bundles_post_ra>
// kernel: residual_block_generator_forward.1
= control target key start
LH: loop header
LB: loop body
LE: loop exit
PB: predicated region body
PF: predicated region fallthrough
CT: control target
= control target key end

     0   :  { %16 = vsyncpa [#allocation7], 0  ;;  %s9014_s0 = inlined_call_operand.vmem [shape: f32[2,8,8,256], index: 0, kind: input, shape index: {}]   ;;  %s9015_s1 = inlined_call_operand.vmem [shape: f32[2,256], index: 1, kind: input, shape index: {}]   ;;  %s9016_s2 = inlined_call_operand.vmem [shape: f32[2,256], index: 2, kind: input, shape index: {}]   ;;  %s9017_s3 = inlined_call_operand.vmem [shape: f32[2,256], index: 3, kind: input, shape index: {}]   ;;  %s9018_s4 = inlined_call_operand.vmem [shape: f32[2,256], index: 4, kind: input, shape index: {}]   ;;  %s9019_s5 = inlined_call_operand.hbm [shape: f32[1,256], index: 5, kind: input, shape index: {}]   ;;  %s9020_s6 = inlined_call_operand.hbm [shape: f32[1,256], index: 6, kind: input, shape index: {}]   ;;  %s9021_s7 = inlined_call_operand.hbm [shape: f32[1,256], index: 7, kind: input, shape index: {}]   ;;  %s9022_s8 = inlined_call_operand.hbm [shape: bf16[2304,256], index: 8, kind: input, shape index: {}]   ;;  %s9023_s9 = inlined_call_operand.hbm [shape: bf16[2304,256], index: 9, kind: input, shape index: {}]   ;;  %s9024_s10 = inlined_call_operand.vmem [shape: bf16[256,256], index: 10, kind: input, shape index: {}]   ;;  %s9025_s11 = inlined_call_operand.hbm [shape: f32[2,8,8,256], index: 11, kind: output, shape index: {}]  }
   0x1   :  { %17 = vsyncpa [#allocation10], 0 }
   0x2   :  { %18 = vsyncpa [#allocation8], 0  ;;  %s6366_s17 = smov [#allocation9]   ;;  %s6367_s19 = smov [#allocation6]  }
   0x3   :  { %s45_s18 = sshll.u32 %s6366_s17, 4  ;;  %s35_s20 = sshll.u32 %s6367_s19, 4  ;;  %s46_s18 = int_to_ptr.vmem [resolvable:$true] %s45_s18  ;;  %s36_s20 = int_to_ptr.vmem [resolvable:$true] %s35_s20 }
   0x4   :  { %s6266_s23 = scalar_lea.hbm %s9020_s6, 32 }
   0x5   :  { %p6267_p0 = scmp.ne.s32.totalorder %s9020_s6, %s6266_s23  ;;  %p6270_p1 = scmp.lt.u32.totalorder %s6266_s23, %s9020_s6 }
   0x7   :  { %p6272_p2 = pnand %p6270_p1, %p6267_p0 }
   0x9   :  { %6275 = shalt.err (!%p6272_p2)
}
   0xa   :  { %s6276_s28 = scalar_lea.vmem %s46_s18, 32  ;;  %p6281_p4 = scmp.lt.s32.totalorder %s46_s18, %s46_s18 }
   0xb   :  { %p6277_p3 = scmp.ne.s32.totalorder %s46_s18, %s6276_s28  ;;  %p6282_p5 = scmp.lt.s32.totalorder %s6276_s28, %s6276_s28 }
   0xd   :  { %p6283_p6 = por %p6282_p5, %p6281_p4 }
   0xf   :  { %p6284_p7 = pnand %p6283_p6, %p6277_p3 }
  0x11   :  { %6287 = shalt.err (!%p6284_p7)
}
  0x12   :  { %48 = dma.hbm_to_vmem [thread:$0]  %s9020_s6, 32, %s46_s18, [#allocation10]  }
  0x13   :  { %s6288_s14 = scalar_lea.hbm %s9019_s5, 32 }
  0x14   :  { %p6289_p8 = scmp.ne.s32.totalorder %s9019_s5, %s6288_s14  ;;  %p6292_p9 = scmp.lt.u32.totalorder %s6288_s14, %s9019_s5 }
  0x16   :  { %p6294_p10 = pnand %p6292_p9, %p6289_p8 }
  0x18   :  { %6297 = shalt.err (!%p6294_p10)
}
  0x19   :  { %s6298_s21 = scalar_lea.vmem %s36_s20, 32  ;;  %p6303_p12 = scmp.lt.s32.totalorder %s36_s20, %s36_s20 }
  0x1a   :  { %p6299_p11 = scmp.ne.s32.totalorder %s36_s20, %s6298_s21  ;;  %p6304_p13 = scmp.lt.s32.totalorder %s6298_s21, %s6298_s21 }
  0x1c   :  { %p6305_p0 = por %p6304_p13, %p6303_p12 }
  0x1e   :  { %p6306_p1 = pnand %p6305_p0, %p6299_p11 }
  0x20   :  { %6309 = shalt.err (!%p6306_p1)
}
  0x21   :  { %38 = dma.hbm_to_vmem [thread:$0]  %s9019_s5, 32, %s36_s20, [#allocation7]  }
  0x22   :  { %s6368_s22 = smov [#allocation11]   ;;  %s6310_s26 = scalar_lea.hbm %s9021_s7, 32 }
  0x23   :  { %s55_s23 = sshll.u32 %s6368_s22, 4  ;;  %p6311_p2 = scmp.ne.s32.totalorder %s9021_s7, %s6310_s26  ;;  %s56_s23 = int_to_ptr.vmem [resolvable:$true] %s55_s23 }
  0x24   :  { %p6314_p3 = scmp.lt.u32.totalorder %s6310_s26, %s9021_s7 }
  0x26   :  { %p6316_p4 = pnand %p6314_p3, %p6311_p2 }
  0x28   :  { %6319 = shalt.err (!%p6316_p4)
}
  0x29   :  { %s6320_s12 = scalar_lea.vmem %s56_s23, 32  ;;  %p6325_p6 = scmp.lt.s32.totalorder %s56_s23, %s56_s23 }
  0x2a   :  { %p6321_p5 = scmp.ne.s32.totalorder %s56_s23, %s6320_s12  ;;  %p6326_p7 = scmp.lt.s32.totalorder %s6320_s12, %s6320_s12 }
  0x2c   :  { %p6327_p8 = por %p6326_p7, %p6325_p6 }
  0x2e   :  { %p6328_p9 = pnand %p6327_p8, %p6321_p5 }
  0x30   :  { %6331 = shalt.err (!%p6328_p9)
}
  0x31   :  { %58 = dma.hbm_to_vmem [thread:$0]  %s9021_s7, 32, %s56_s23, [#allocation10]  }
  0x32   :  { %6354 = dma.done.wait [#allocation7], 32  }
  0x33   :  { %6355 = vsyncadd [#allocation7], 4294967264 }
  0x34   :  { %6356 = dma.done.wait [#allocation10], 64  }
  0x35   :  { %6357 = vsyncadd [#allocation10], 4294967232  ;;  %s72_s13 = sld [smem:[#allocation0]]   ;;  %s6369_s14 = smov [#allocation2]  }
  0x36   :  { %s80_s15 = sshll.u32 %s6369_s14, 4  ;;  %s6370_s16 = smov 256   ;;  %s81_s15 = int_to_ptr.vmem [resolvable:$true] %s80_s15 }
  0x37   :  { %84 = sst [smem:[#allocation14]] %s6370_s16  ;;  %s6371_s17 = smov 2  }
  0x38   :  { %86 = sst [smem:[#allocation14 + $0x1]] %s6370_s16  ;;  %s6372_s19 = smov 64  }
  0x39   :  { %88 = sst [smem:[#allocation14 + $0x2]] %s6371_s17  ;;  %s6373_s21 = smov 128  }
  0x3a   :  { %90 = sst [smem:[#allocation14 + $0x3]] %s6372_s19  ;;  %s6374_s18 = smov 4  }
  0x3b   :  { %92 = sst [smem:[#allocation14 + $0x4]] %s6373_s21  ;;  %s4789_s7 = sshll.u32 %s72_s13, 26 }
  0x3c   :  { %94 = sst [smem:[#allocation14 + $0x5]] %s6371_s17  ;;  %s4790_s6 = sadd.s32 134217728, %s4789_s7 }
  0x3d   :  { %96 = sst [smem:[#allocation14 + $0x6]] %s6373_s21  ;;  %s6375_s22 = smov [#allocation5]  }
  0x3e   :  { %98 = sst [smem:[#allocation14 + $0x7]] %s6372_s19  ;;  %s6376_s23 = smov [#allocation13]  }
  0x3f   :  { %100 = sst [smem:[#allocation14 + $0x8]] %s6374_s18  ;;  %s6377_s26 = smov [#allocation3]  }
  0x40   :  { %102 = dma.general %s9022_s8, 36864, %s81_s15, %s6375_s22, %s6376_s23, [#allocation14], %s4790_s6, 0  }
  0x41   :  { %119 = sst [smem:[#allocation16]] %s6370_s16  ;;  %s115_s27 = sshll.u32 %s6377_s26, 4  ;;  %s116_s27 = int_to_ptr.vmem [resolvable:$true] %s115_s27 }
  0x42   :  { %121 = sst [smem:[#allocation16 + $0x1]] %s6370_s16  ;;  %s6378_s28 = smov [#allocation5 + $0x1]  }
  0x43   :  { %123 = sst [smem:[#allocation16 + $0x2]] %s6371_s17  ;;  %s6379_s29 = smov [#allocation15]  }
  0x44   :  { %125 = sst [smem:[#allocation16 + $0x3]] %s6372_s19 }
  0x45   :  { %127 = sst [smem:[#allocation16 + $0x4]] %s6373_s21 }
  0x46   :  { %129 = sst [smem:[#allocation16 + $0x5]] %s6371_s17 }
  0x47   :  { %131 = sst [smem:[#allocation16 + $0x6]] %s6373_s21 }
  0x48   :  { %133 = sst [smem:[#allocation16 + $0x7]] %s6372_s19 }
  0x49   :  { %135 = sst [smem:[#allocation16 + $0x8]] %s6374_s18 }
  0x4a   :  { %137 = dma.general %s9023_s9, 36864, %s116_s27, %s6378_s28, %s6379_s29, [#allocation16], %s4790_s6, 0  }
  0x4b   :  { %v156_v0 = vld [vmem:[%s9024_s10] sm:$0xf]  ;;  %v158_v1 = vld [vmem:[%s9024_s10 + $0x8] sm:$0xf]  ;;  %v160_v2 = vld [vmem:[%s9024_s10 + $0x4] sm:$0xf] }
  0x4c   :  { %157 = vst [vmem:[#allocation4] sm:$0xf] %v156_v0  ;;  %159 = vst [vmem:[#allocation4 + $0x4] sm:$0xf] %v158_v1  ;;  %v162_v3 = vld [vmem:[%s9024_s10 + $0xc] sm:$0xff]   ;;  %v170_v6 = vld [vmem:[%s9024_s10 + $0x1c] sm:$0xff]  }
  0x4d   :  { %161 = vst [vmem:[#allocation4 + $0x8] sm:$0xf] %v160_v2  ;;  %v166_v4 = vld [vmem:[%s9024_s10 + $0x18] sm:$0xf]  ;;  %v168_v5 = vld [vmem:[%s9024_s10 + $0x14] sm:$0xf] }
  0x4e   :  { %163 = vst [vmem:[#allocation4 + $0xc] sm:$0xff] %v162_v3   ;;  %167 = vst [vmem:[#allocation4 + $0x14] sm:$0xf] %v166_v4  ;;  %v174_v7 = vld [vmem:[%s9024_s10 + $0x28] sm:$0xf]  ;;  %v178_v9 = vld [vmem:[%s9024_s10 + $0x2c] sm:$0xff]  }
  0x4f   :  { %169 = vst [vmem:[#allocation4 + $0x18] sm:$0xf] %v168_v5  ;;  %v176_v8 = vld [vmem:[%s9024_s10 + $0x24] sm:$0xf]  ;;  %171 = vst [vmem:[#allocation4 + $0x1c] sm:$0xff] %v170_v6   ;;  %v186_v12 = vld [vmem:[%s9024_s10 + $0x3c] sm:$0xff]  }
  0x50   :  { %175 = vst [vmem:[#allocation4 + $0x24] sm:$0xf] %v174_v7  ;;  %177 = vst [vmem:[#allocation4 + $0x28] sm:$0xf] %v176_v8  ;;  %v182_v10 = vld [vmem:[%s9024_s10 + $0x38] sm:$0xf] }
  0x51   :  { %v184_v11 = vld [vmem:[%s9024_s10 + $0x34] sm:$0xf]  ;;  %179 = vst [vmem:[#allocation4 + $0x2c] sm:$0xff] %v178_v9   ;;  %183 = vst [vmem:[#allocation4 + $0x34] sm:$0xf] %v182_v10  ;;  %v194_v15 = vld [vmem:[%s9024_s10 + $0x4c] sm:$0xff]  }
  0x52   :  { %185 = vst [vmem:[#allocation4 + $0x38] sm:$0xf] %v184_v11  ;;  %v190_v13 = vld [vmem:[%s9024_s10 + $0x48] sm:$0xf]  ;;  %v192_v14 = vld [vmem:[%s9024_s10 + $0x44] sm:$0xf] }
  0x53   :  { %187 = vst [vmem:[#allocation4 + $0x3c] sm:$0xff] %v186_v12   ;;  %191 = vst [vmem:[#allocation4 + $0x44] sm:$0xf] %v190_v13  ;;  %v198_v16 = vld [vmem:[%s9024_s10 + $0x58] sm:$0xf]  ;;  %v202_v18 = vld [vmem:[%s9024_s10 + $0x5c] sm:$0xff]  }
  0x54   :  { %193 = vst [vmem:[#allocation4 + $0x48] sm:$0xf] %v192_v14  ;;  %v200_v17 = vld [vmem:[%s9024_s10 + $0x54] sm:$0xf]  ;;  %195 = vst [vmem:[#allocation4 + $0x4c] sm:$0xff] %v194_v15   ;;  %v210_v21 = vld [vmem:[%s9024_s10 + $0x6c] sm:$0xff]  }
  0x55   :  { %199 = vst [vmem:[#allocation4 + $0x54] sm:$0xf] %v198_v16  ;;  %201 = vst [vmem:[#allocation4 + $0x58] sm:$0xf] %v200_v17  ;;  %v206_v19 = vld [vmem:[%s9024_s10 + $0x68] sm:$0xf] }
  0x56   :  { %v208_v20 = vld [vmem:[%s9024_s10 + $0x64] sm:$0xf]  ;;  %203 = vst [vmem:[#allocation4 + $0x5c] sm:$0xff] %v202_v18   ;;  %207 = vst [vmem:[#allocation4 + $0x64] sm:$0xf] %v206_v19  ;;  %v218_v24 = vld [vmem:[%s9024_s10 + $0x7c] sm:$0xff]  }
  0x57   :  { %209 = vst [vmem:[#allocation4 + $0x68] sm:$0xf] %v208_v20  ;;  %v214_v22 = vld [vmem:[%s9024_s10 + $0x78] sm:$0xf]  ;;  %v216_v23 = vld [vmem:[%s9024_s10 + $0x74] sm:$0xf] }
  0x58   :  { %211 = vst [vmem:[#allocation4 + $0x6c] sm:$0xff] %v210_v21   ;;  %215 = vst [vmem:[#allocation4 + $0x74] sm:$0xf] %v214_v22  ;;  %v222_v25 = vld [vmem:[%s9024_s10 + $0x88] sm:$0xf]  ;;  %v226_v27 = vld [vmem:[%s9024_s10 + $0x8c] sm:$0xff]  }
  0x59   :  { %217 = vst [vmem:[#allocation4 + $0x78] sm:$0xf] %v216_v23  ;;  %v224_v26 = vld [vmem:[%s9024_s10 + $0x84] sm:$0xf]  ;;  %219 = vst [vmem:[#allocation4 + $0x7c] sm:$0xff] %v218_v24   ;;  %v234_v30 = vld [vmem:[%s9024_s10 + $0x9c] sm:$0xff]  }
  0x5a   :  { %223 = vst [vmem:[#allocation4 + $0x84] sm:$0xf] %v222_v25  ;;  %225 = vst [vmem:[#allocation4 + $0x88] sm:$0xf] %v224_v26  ;;  %v230_v28 = vld [vmem:[%s9024_s10 + $0x98] sm:$0xf] }
  0x5b   :  { %v232_v29 = vld [vmem:[%s9024_s10 + $0x94] sm:$0xf]  ;;  %227 = vst [vmem:[#allocation4 + $0x8c] sm:$0xff] %v226_v27   ;;  %231 = vst [vmem:[#allocation4 + $0x94] sm:$0xf] %v230_v28  ;;  %v242_v33 = vld [vmem:[%s9024_s10 + $0xac] sm:$0xff]  }
  0x5c   :  { %233 = vst [vmem:[#allocation4 + $0x98] sm:$0xf] %v232_v29  ;;  %v238_v31 = vld [vmem:[%s9024_s10 + $0xa8] sm:$0xf]  ;;  %v240_v32 = vld [vmem:[%s9024_s10 + $0xa4] sm:$0xf] }
  0x5d   :  { %235 = vst [vmem:[#allocation4 + $0x9c] sm:$0xff] %v234_v30   ;;  %239 = vst [vmem:[#allocation4 + $0xa4] sm:$0xf] %v238_v31  ;;  %v246_v34 = vld [vmem:[%s9024_s10 + $0xb8] sm:$0xf]  ;;  %v250_v36 = vld [vmem:[%s9024_s10 + $0xbc] sm:$0xff]  }
  0x5e   :  { %241 = vst [vmem:[#allocation4 + $0xa8] sm:$0xf] %v240_v32  ;;  %v248_v35 = vld [vmem:[%s9024_s10 + $0xb4] sm:$0xf]  ;;  %243 = vst [vmem:[#allocation4 + $0xac] sm:$0xff] %v242_v33   ;;  %v258_v39 = vld [vmem:[%s9024_s10 + $0xcc] sm:$0xff]  }
  0x5f   :  { %247 = vst [vmem:[#allocation4 + $0xb4] sm:$0xf] %v246_v34  ;;  %249 = vst [vmem:[#allocation4 + $0xb8] sm:$0xf] %v248_v35  ;;  %v254_v37 = vld [vmem:[%s9024_s10 + $0xc8] sm:$0xf] }
  0x60   :  { %v256_v38 = vld [vmem:[%s9024_s10 + $0xc4] sm:$0xf]  ;;  %251 = vst [vmem:[#allocation4 + $0xbc] sm:$0xff] %v250_v36   ;;  %255 = vst [vmem:[#allocation4 + $0xc4] sm:$0xf] %v254_v37  ;;  %v266_v42 = vld [vmem:[%s9024_s10 + $0xdc] sm:$0xff]  }
  0x61   :  { %257 = vst [vmem:[#allocation4 + $0xc8] sm:$0xf] %v256_v38  ;;  %v262_v40 = vld [vmem:[%s9024_s10 + $0xd8] sm:$0xf]  ;;  %v264_v41 = vld [vmem:[%s9024_s10 + $0xd4] sm:$0xf] }
  0x62   :  { %259 = vst [vmem:[#allocation4 + $0xcc] sm:$0xff] %v258_v39   ;;  %263 = vst [vmem:[#allocation4 + $0xd4] sm:$0xf] %v262_v40  ;;  %v270_v43 = vld [vmem:[%s9024_s10 + $0xe8] sm:$0xf]  ;;  %v274_v45 = vld [vmem:[%s9024_s10 + $0xec] sm:$0xff]  }
  0x63   :  { %265 = vst [vmem:[#allocation4 + $0xd8] sm:$0xf] %v264_v41  ;;  %v272_v44 = vld [vmem:[%s9024_s10 + $0xe4] sm:$0xf]  ;;  %267 = vst [vmem:[#allocation4 + $0xdc] sm:$0xff] %v266_v42  }
  0x64   :  { %271 = vst [vmem:[#allocation4 + $0xe4] sm:$0xf] %v270_v43  ;;  %273 = vst [vmem:[#allocation4 + $0xe8] sm:$0xf] %v272_v44  ;;  %v278_v46 = vld [vmem:[%s9024_s10 + $0xf8] sm:$0xf] }
  0x65   :  { %v280_v47 = vld [vmem:[%s9024_s10 + $0xf4] sm:$0xf]  ;;  %275 = vst [vmem:[#allocation4 + $0xec] sm:$0xff] %v274_v45   ;;  %279 = vst [vmem:[#allocation4 + $0xf4] sm:$0xf] %v278_v46 }
  0x66   :  { %281 = vst [vmem:[#allocation4 + $0xf8] sm:$0xf] %v280_v47  ;;  %v282_v48 = vld [vmem:[%s9024_s10 + $0xfc] sm:$0xf] }
  0x67   :  { %283 = vst [vmem:[#allocation4 + $0xfc] sm:$0xf] %v282_v48 }
  0x68   :  { %442 = vsyncadd [#allocation5 + $0x2], 4096  ;;  %v6640_v49 = vld [vmem:[%s9014_s0] sm:$0xff]  ;;  %v6645_v50 = vld [vmem:[%s9014_s0 + $0x8] sm:$0xff] }
  0x69   :  { %9230 = vst [vmem:[#allocation24_spill] sm:$0xff] %v6640_v49  ;;  %9231 = vst [vmem:[#allocation25_spill] sm:$0xff] %v6645_v50  ;;  %v6650_v51 = vld [vmem:[%s9014_s0 + $0x10] sm:$0xff]  ;;  %v6655_v52 = vld [vmem:[%s9014_s0 + $0x18] sm:$0xff]  ;;  %v519_v3 = vmul.f32 %v6640_v49, %v6640_v49  ;;  %v520_v4 = vmul.f32 %v6645_v50, %v6645_v50 }
  0x6a   :  { %9232 = vst [vmem:[#allocation26_spill] sm:$0xff] %v6650_v51  ;;  %9233 = vst [vmem:[#allocation27_spill] sm:$0xff] %v6655_v52  ;;  %v6660_v53 = vld [vmem:[%s9014_s0 + $0x20] sm:$0xff]  ;;  %v6665_v54 = vld [vmem:[%s9014_s0 + $0x28] sm:$0xff]  ;;  %v477_v55 = vadd.f32 %v6650_v51, %v6640_v49  ;;  %v498_v56 = vadd.f32 %v6655_v52, %v6645_v50  ;;  %v521_v7 = vmul.f32 %v6650_v51, %v6650_v51 }
  0x6b   :  { %9234 = vst [vmem:[#allocation28_spill] sm:$0xff] %v6660_v53  ;;  %9235 = vst [vmem:[#allocation29_spill] sm:$0xff] %v6665_v54  ;;  %v6674_v57 = vld [vmem:[%s9014_s0 + $0x30] sm:$0xff]  ;;  %v6679_v58 = vld [vmem:[%s9014_s0 + $0x38] sm:$0xff]  ;;  %v522_v8 = vmul.f32 %v6655_v52, %v6655_v52  ;;  %v523_v13 = vmul.f32 %v6660_v53, %v6660_v53  ;;  %v524_v14 = vmul.f32 %v6665_v54, %v6665_v54 }
  0x6c   :  { %9236 = vst [vmem:[#allocation30_spill] sm:$0xff] %v6674_v57  ;;  %9237 = vst [vmem:[#allocation31_spill] sm:$0xff] %v6679_v58  ;;  %v478_v59 = vadd.f32 %v477_v55, %v6660_v53  ;;  %v499_v60 = vadd.f32 %v498_v56, %v6665_v54  ;;  %v6686_v61 = vld [vmem:[%s9014_s0 + $0x40] sm:$0xff]  ;;  %v6691_v62 = vld [vmem:[%s9014_s0 + $0x48] sm:$0xff]  ;;  %v525_v17 = vmul.f32 %v6674_v57, %v6674_v57 }
  0x6d   :  { %9238 = vst [vmem:[#allocation32_spill] sm:$0xff] %v6686_v61  ;;  %9239 = vst [vmem:[#allocation33_spill] sm:$0xff] %v6691_v62  ;;  %v6698_v1 = vld [vmem:[%s9014_s0 + $0x50] sm:$0xff]  ;;  %v6703_v2 = vld [vmem:[%s9014_s0 + $0x58] sm:$0xff]  ;;  %v526_v18 = vmul.f32 %v6679_v58, %v6679_v58  ;;  %v551_v21 = vadd.f32 %v521_v7, %v519_v3  ;;  %v572_v22 = vadd.f32 %v522_v8, %v520_v4 }
  0x6e   :  { %v479_v63 = vadd.f32 %v478_v59, %v6674_v57  ;;  %v500_v0 = vadd.f32 %v499_v60, %v6679_v58  ;;  %9240 = vst [vmem:[#allocation34_spill] sm:$0xff] %v6698_v1  ;;  %9241 = vst [vmem:[#allocation35_spill] sm:$0xff] %v6703_v2  ;;  %v6718_v9 = vld [vmem:[%s9014_s0 + $0x60] sm:$0xff]  ;;  %v6723_v10 = vld [vmem:[%s9014_s0 + $0x68] sm:$0xff]  ;;  %v527_v25 = vmul.f32 %v6686_v61, %v6686_v61 }
  0x6f   :  { %9242 = vst [vmem:[#allocation36_spill] sm:$0xff] %v6718_v9  ;;  %9243 = vst [vmem:[#allocation37_spill] sm:$0xff] %v6723_v10  ;;  %v6734_v15 = vld [vmem:[%s9014_s0 + $0x70] sm:$0xff]  ;;  %v6739_v16 = vld [vmem:[%s9014_s0 + $0x78] sm:$0xff]  ;;  %v528_v26 = vmul.f32 %v6691_v62, %v6691_v62  ;;  %v552_v30 = vadd.f32 %v551_v21, %v523_v13  ;;  %v573_v31 = vadd.f32 %v572_v22, %v524_v14 }
  0x70   :  { %v480_v5 = vadd.f32 %v479_v63, %v6686_v61  ;;  %v501_v6 = vadd.f32 %v500_v0, %v6691_v62  ;;  %9244 = vst [vmem:[#allocation38_spill] sm:$0xff] %v6734_v15  ;;  %9245 = vst [vmem:[#allocation39_spill] sm:$0xff] %v6739_v16  ;;  %v6750_v23 = vld [vmem:[%s9014_s0 + $0x80] sm:$0xff]  ;;  %v6755_v24 = vld [vmem:[%s9014_s0 + $0x88] sm:$0xff]  ;;  %v529_v35 = vmul.f32 %v6698_v1, %v6698_v1 }
  0x71   :  { %9246 = vst [vmem:[#allocation40_spill] sm:$0xff] %v6750_v23  ;;  %9247 = vst [vmem:[#allocation41_spill] sm:$0xff] %v6755_v24  ;;  %v6764_v27 = vld.sshfl [vmem:[%s9017_s3] sm:$0x33 pattern:$0x75316420]  ;;  %v530_v36 = vmul.f32 %v6703_v2, %v6703_v2  ;;  %v553_v39 = vadd.f32 %v552_v30, %v525_v17  ;;  %v574_v40 = vadd.f32 %v573_v31, %v526_v18 }
  0x72   :  { %v481_v11 = vadd.f32 %v480_v5, %v6698_v1  ;;  %v502_v12 = vadd.f32 %v501_v6, %v6703_v2  ;;  %9248 = vst [vmem:[#allocation42_spill] sm:$0xff] %v6764_v27  ;;  %v6771_v32 = vld.sshfl [vmem:[%s9018_s4] sm:$0x33 pattern:$0x75316420]  ;;  %v6776_v33 = vld [vmem:[%s9014_s0 + $0x90] sm:$0xff]  ;;  %v531_v43 = vmul.f32 %v6718_v9, %v6718_v9  ;;  %v532_v44 = vmul.f32 %v6723_v10, %v6723_v10 }
  0x73   :  { %9249 = vst [vmem:[#allocation43_spill] sm:$0xff] %v6771_v32  ;;  %9250 = vst [vmem:[#allocation44_spill] sm:$0xff] %v6776_v33  ;;  %v6781_v34 = vld [vmem:[%s9014_s0 + $0x98] sm:$0xff]  ;;  %v6792_v41 = vld [vmem:[%s9014_s0 + $0xa0] sm:$0xff]  ;;  %v554_v47 = vadd.f32 %v553_v39, %v527_v25  ;;  %v575_v48 = vadd.f32 %v574_v40, %v528_v26  ;;  %v533_v59 = vmul.f32 %v6734_v15, %v6734_v15 }
  0x74   :  { %v482_v19 = vadd.f32 %v481_v11, %v6718_v9  ;;  %v503_v20 = vadd.f32 %v502_v12, %v6723_v10  ;;  %9251 = vst [vmem:[#allocation45_spill] sm:$0xff] %v6781_v34  ;;  %9252 = vst [vmem:[#allocation46_spill] sm:$0xff] %v6792_v41  ;;  %v6797_v42 = vld [vmem:[%s9014_s0 + $0xa8] sm:$0xff]  ;;  %v6808_v55 = vld [vmem:[%s9014_s0 + $0xb0] sm:$0xff]  ;;  %v534_v60 = vmul.f32 %v6739_v16, %v6739_v16 }
  0x75   :  { %9253 = vst [vmem:[#allocation47_spill] sm:$0xff] %v6797_v42  ;;  %9254 = vst [vmem:[#allocation48_spill] sm:$0xff] %v6808_v55  ;;  %v6813_v56 = vld [vmem:[%s9014_s0 + $0xb8] sm:$0xff]  ;;  %v555_v3 = vadd.f32 %v554_v47, %v529_v35  ;;  %v576_v4 = vadd.f32 %v575_v48, %v530_v36  ;;  %v6824_v5 = vld [vmem:[%s9014_s0 + $0xc0] sm:$0xff]  ;;  %v535_v7 = vmul.f32 %v6750_v23, %v6750_v23 }
  0x76   :  { %v483_v28 = vadd.f32 %v482_v19, %v6734_v15  ;;  %v504_v29 = vadd.f32 %v503_v20, %v6739_v16  ;;  %9255 = vst [vmem:[#allocation49_spill] sm:$0xff] %v6813_v56  ;;  %9256 = vst [vmem:[#allocation50_spill] sm:$0xff] %v6824_v5  ;;  %v6829_v6 = vld [vmem:[%s9014_s0 + $0xc8] sm:$0xff]  ;;  %v536_v8 = vmul.f32 %v6755_v24, %v6755_v24  ;;  %v6840_v17 = vld [vmem:[%s9014_s0 + $0xd0] sm:$0xff] }
  0x77   :  { %9257 = vst [vmem:[#allocation51_spill] sm:$0xff] %v6829_v6  ;;  %v556_v13 = vadd.f32 %v555_v3, %v531_v43  ;;  %v577_v14 = vadd.f32 %v576_v4, %v532_v44  ;;  %9258 = vst [vmem:[#allocation52_spill] sm:$0xff] %v6840_v17  ;;  %v6845_v18 = vld [vmem:[%s9014_s0 + $0xd8] sm:$0xff]  ;;  %v537_v19 = vmul.f32 %v6776_v33, %v6776_v33  ;;  %v6872_v39 = vld [vmem:[%s9014_s0 + $0xf0] sm:$0xff] }
  0x78   :  { %v484_v37 = vadd.f32 %v483_v28, %v6750_v23  ;;  %v505_v38 = vadd.f32 %v504_v29, %v6755_v24  ;;  %9259 = vst [vmem:[#allocation53_spill] sm:$0xff] %v6845_v18  ;;  %v538_v20 = vmul.f32 %v6781_v34, %v6781_v34  ;;  %v6856_v28 = vld [vmem:[%s9014_s0 + $0xe0] sm:$0xff]  ;;  %v6861_v29 = vld [vmem:[%s9014_s0 + $0xe8] sm:$0xff]  ;;  %v539_v30 = vmul.f32 %v6792_v41, %v6792_v41  ;;  %v6877_v40 = vld [vmem:[%s9014_s0 + $0xf8] sm:$0xff] }
  0x79   :  { %v557_v25 = vadd.f32 %v556_v13, %v533_v59  ;;  %v578_v26 = vadd.f32 %v577_v14, %v534_v60  ;;  %9260 = vst [vmem:[#allocation54_spill] sm:$0xff] %v6856_v28  ;;  %9261 = vst [vmem:[#allocation55_spill] sm:$0xff] %v6861_v29  ;;  %v540_v31 = vmul.f32 %v6797_v42, %v6797_v42 }
  0x7a   :  { %v485_v45 = vadd.f32 %v484_v37, %v6776_v33  ;;  %v506_v46 = vadd.f32 %v505_v38, %v6781_v34  ;;  %9262 = vst [vmem:[#allocation56_spill] sm:$0xff] %v6872_v39  ;;  %9263 = vst [vmem:[#allocation57_spill] sm:$0xff] %v6877_v40  ;;  %v541_v43 = vmul.f32 %v6808_v55, %v6808_v55 }
  0x7b   :  { %v558_v37 = vadd.f32 %v557_v25, %v535_v7  ;;  %v579_v38 = vadd.f32 %v578_v26, %v536_v8  ;;  %v542_v44 = vmul.f32 %v6813_v56, %v6813_v56  ;;  %v543_v59 = vmul.f32 %v6824_v5, %v6824_v5 }
  0x7c   :  { %v486_v63 = vadd.f32 %v485_v45, %v6792_v41  ;;  %v507_v0 = vadd.f32 %v506_v46, %v6797_v42  ;;  %v544_v60 = vmul.f32 %v6829_v6, %v6829_v6  ;;  %v545_v7 = vmul.f32 %v6840_v17, %v6840_v17 }
  0x7d   :  { %v559_v47 = vadd.f32 %v558_v37, %v537_v19  ;;  %v580_v48 = vadd.f32 %v579_v38, %v538_v20  ;;  %v546_v8 = vmul.f32 %v6845_v18, %v6845_v18  ;;  %v547_v19 = vmul.f32 %v6856_v28, %v6856_v28 }
  0x7e   :  { %v487_v11 = vadd.f32 %v486_v63, %v6808_v55  ;;  %v508_v12 = vadd.f32 %v507_v0, %v6813_v56  ;;  %v548_v20 = vmul.f32 %v6861_v29, %v6861_v29 }
  0x7f   :  { %v560_v3 = vadd.f32 %v559_v47, %v539_v30  ;;  %v581_v4 = vadd.f32 %v580_v48, %v540_v31  ;;  %v549_v30 = vmul.f32 %v6872_v39, %v6872_v39  ;;  %v550_v31 = vmul.f32 %v6877_v40, %v6877_v40 }
  0x80   :  { %v488_v21 = vadd.f32 %v487_v11, %v6824_v5  ;;  %v509_v22 = vadd.f32 %v508_v12, %v6829_v6 }
  0x81   :  { %v561_v13 = vadd.f32 %v560_v3, %v541_v43  ;;  %v582_v14 = vadd.f32 %v581_v4, %v542_v44 }
  0x82   :  { %v489_v35 = vadd.f32 %v488_v21, %v6840_v17  ;;  %v510_v36 = vadd.f32 %v509_v22, %v6845_v18 }
  0x83   :  { %v562_v25 = vadd.f32 %v561_v13, %v543_v59  ;;  %v583_v26 = vadd.f32 %v582_v14, %v544_v60 }
  0x84   :  { %v490_v45 = vadd.f32 %v489_v35, %v6856_v28  ;;  %v511_v46 = vadd.f32 %v510_v36, %v6861_v29 }
  0x85   :  { %v563_v37 = vadd.f32 %v562_v25, %v545_v7  ;;  %v584_v38 = vadd.f32 %v583_v26, %v546_v8 }
  0x86   :  { %v491_v63 = vadd.f32 %v490_v45, %v6872_v39  ;;  %v512_v0 = vadd.f32 %v511_v46, %v6877_v40 }
  0x87   :  { %v564_v45 = vadd.f32 %v563_v37, %v547_v19  ;;  %v585_v46 = vadd.f32 %v584_v38, %v548_v20 }
  0x88   :  { %v492_v11 = vrot.slane %v491_v63, 4  ;;  %v513_v12 = vrot.slane %v512_v0, 4 }
  0x8a   :  { %v493_v21 = vadd.f32 %v492_v11, %v491_v63  ;;  %v514_v22 = vadd.f32 %v513_v12, %v512_v0  ;;  %v565_v63 = vadd.f32 %v564_v45, %v549_v30  ;;  %v586_v0 = vadd.f32 %v585_v46, %v550_v31 }
  0x8b   :  { %v622_v45 = vlaneseq }
  0x8c   :  { %v494_v35 = vrot.slane %v493_v21, 2  ;;  %v515_v36 = vrot.slane %v514_v22, 2  ;;  %v566_v59 = vrot.slane %v565_v63, 4  ;;  %v587_v60 = vrot.slane %v586_v0, 4 }
  0x8e   :  { %v495_v43 = vadd.f32 %v494_v35, %v493_v21  ;;  %v516_v44 = vadd.f32 %v515_v36, %v514_v22  ;;  %v567_v11 = vadd.f32 %v566_v59, %v565_v63  ;;  %v588_v12 = vadd.f32 %v587_v60, %v586_v0 }
  0x90   :  { %v496_v47 = vrot.slane %v495_v43, 1  ;;  %v517_v48 = vrot.slane %v516_v44, 1  ;;  %v568_v13 = vrot.slane %v567_v11, 2  ;;  %v589_v14 = vrot.slane %v588_v12, 2 }
  0x92   :  { %v497_v3 = vadd.f32 %v496_v47, %v495_v43  ;;  %v518_v4 = vadd.f32 %v517_v48, %v516_v44  ;;  %v569_v32 = vadd.f32 %v568_v13, %v567_v11  ;;  %v590_v27 = vadd.f32 %v589_v14, %v588_v12  ;;  %v4794_v14 = vld.sshfl [vmem:[%s9016_s2] sm:$0x33 pattern:$0x75316420] }
  0x93   :  { %v6380_v43 = vmov 1966171168   ;;  %v623_v47 = vshrl.u32 %v622_v45, 7 }
  0x94   :  { %v593_v7 = vmul.f32 0.0078125, %v497_v3  ;;  %v594_v8 = vmul.f32 0.0078125, %v518_v4  ;;  %v570_v21 = vrot.slane %v569_v32, 1  ;;  %v591_v22 = vrot.slane %v590_v27, 1 }
  0x95   :  { %v620_v44 = vunpack.c.l.s4 %v6380_v43  ;;  %v6910_v4 = vsub.s32 0, %v623_v47  ;;  %v6912_v11 = vsub.s32 1, %v623_v47 }
  0x96   :  { %v571_v19 = vadd.f32 %v570_v21, %v569_v32  ;;  %v592_v20 = vadd.f32 %v591_v22, %v590_v27  ;;  %v597_v25 = vmul.f32 %v593_v7, %v593_v7  ;;  %v598_v26 = vmul.f32 %v594_v8, %v594_v8  ;;  %v4793_v27 = vld.sshfl [vmem:[%s9015_s1] sm:$0x33 pattern:$0x75316420] }
  0x97   :  { %v621_v46 = vunpack.c.0.s8 %v620_v44  ;;  %v613_v59 = vcombine.high %v4793_v27, %v4793_v27  ;;  %9265 = vst [vmem:[#allocation59_spill] sm:$0xff] %v6910_v4  ;;  %9266 = vst [vmem:[#allocation60_spill] sm:$0xff] %v6912_v11 }
  0x98   :  { %v595_v30 = vmul.f32 0.0078125, %v571_v19  ;;  %v596_v31 = vmul.f32 0.0078125, %v592_v20 }
  0x99   :  { %v6903_v63 = vsub.s32 %v621_v46, %v623_v47 }
  0x9a   :  { %v599_v35 = vsub.f32 %v595_v30, %v597_v25  ;;  %v600_v36 = vsub.f32 %v596_v31, %v598_v26 }
  0x9b   :  { %9264 = vst [vmem:[#allocation58_spill] sm:$0xff] %v6903_v63 }
  0x9c   :  { %v601_v37 = vadd.f32 1e-05, %v599_v35  ;;  %v602_v38 = vadd.f32 1e-05, %v600_v36  ;;  %v644_v35 = vcombine.high %v4794_v14, %v4794_v14 }
  0x9e   :  { %6258 = vrsqrt.f32 %v601_v37 }
  0x9f   :  { %6260 = vrsqrt.f32 %v602_v38 }
  0xa8   :  { %v6259_v48 = vpop.eup %6258 }
  0xa9   :  { %v6261_v32 = vpop.eup %6260 }
  0xaa   :  { %v618_v0 = vcombine.low %v6259_v48, %v6261_v32 }
  0xac   :  { %v625_v60 = vrot.slane %v618_v0, %v6903_v63 }
  0xae   :  { %v632_v3 = vrot.slane %v625_v60, %v6903_v63 }
  0xb0   :  { %v634_v12 = vmul.f32 %v4793_v27, %v632_v3  ;;  %v635_v13 = vmul.f32 %v632_v3, %v613_v59 }
  0xb2   :  { %v652_v21 = vrot.slane %v634_v12, %v6910_v4  ;;  %v656_v22 = vrot.slane %v634_v12, %v6912_v11  ;;  %v660_v19 = vrot.slane %v635_v13, %v6910_v4  ;;  %v664_v20 = vrot.slane %v635_v13, %v6912_v11 }
  0xb4   :  { %v669_v25 = vmul.f32 %v652_v21, %v593_v7  ;;  %v670_v26 = vmul.f32 %v656_v22, %v594_v8  ;;  %v671_v30 = vmul.f32 %v660_v19, %v593_v7  ;;  %v672_v31 = vmul.f32 %v664_v20, %v594_v8 }
  0xb5   :  { %v711_v38 = vmul.f32 %v652_v21, %v6640_v49  ;;  %v712_v43 = vmul.f32 %v656_v22, %v6645_v50  ;;  %v713_v44 = vmul.f32 %v652_v21, %v6650_v51  ;;  %v714_v45 = vmul.f32 %v656_v22, %v6655_v52 }
  0xb6   :  { %v677_v36 = vcombine.low %v669_v25, %v670_v26  ;;  %v692_v37 = vcombine.low %v671_v30, %v672_v31  ;;  %v715_v46 = vmul.f32 %v652_v21, %v6660_v53  ;;  %v716_v47 = vmul.f32 %v656_v22, %v6665_v54 }
  0xb7   :  { %v717_v8 = vmul.f32 %v652_v21, %v6674_v57  ;;  %v718_v32 = vmul.f32 %v656_v22, %v6679_v58  ;;  %v719_v27 = vmul.f32 %v652_v21, %v6686_v61  ;;  %v720_v0 = vmul.f32 %v656_v22, %v6691_v62 }
  0xb8   :  { %v684_v48 = vrot.slane %v677_v36, %v6903_v63  ;;  %v699_v7 = vrot.slane %v692_v37, %v6903_v63  ;;  %v721_v59 = vmul.f32 %v652_v21, %v6698_v1  ;;  %v722_v60 = vmul.f32 %v656_v22, %v6703_v2 }
  0xb9   :  { %v723_v13 = vmul.f32 %v652_v21, %v6718_v9  ;;  %v724_v25 = vmul.f32 %v656_v22, %v6723_v10  ;;  %v725_v26 = vmul.f32 %v652_v21, %v6734_v15  ;;  %v726_v30 = vmul.f32 %v656_v22, %v6739_v16 }
  0xba   :  { %v691_v3 = vrot.slane %v684_v48, %v6903_v63  ;;  %v706_v12 = vrot.slane %v699_v7, %v6903_v63  ;;  %v727_v31 = vmul.f32 %v660_v19, %v6750_v23  ;;  %v728_v36 = vmul.f32 %v664_v20, %v6755_v24 }
  0xbb   :  { %v729_v61 = vmul.f32 %v660_v19, %v6776_v33  ;;  %v730_v48 = vmul.f32 %v664_v20, %v6781_v34  ;;  %v731_v7 = vmul.f32 %v660_v19, %v6792_v41  ;;  %v732_v9 = vmul.f32 %v664_v20, %v6797_v42 }
  0xbc   :  { %v709_v37 = vsub.f32 %v4794_v14, %v691_v3  ;;  %v710_v1 = vsub.f32 %v644_v35, %v706_v12  ;;  %v733_v10 = vmul.f32 %v660_v19, %v6808_v55  ;;  %v734_v21 = vmul.f32 %v664_v20, %v6813_v56 }
  0xbd   :  { %v735_v22 = vmul.f32 %v660_v19, %v6824_v5  ;;  %v736_v15 = vmul.f32 %v664_v20, %v6829_v6  ;;  %v737_v16 = vmul.f32 %v660_v19, %v6840_v17  ;;  %v738_v14 = vmul.f32 %v664_v20, %v6845_v18 }
  0xbe   :  { %v739_v35 = vmul.f32 %v660_v19, %v6856_v28  ;;  %v740_v3 = vmul.f32 %v664_v20, %v6861_v29  ;;  %v748_v12 = vrot.slane %v709_v37, %v6910_v4  ;;  %v752_v2 = vrot.slane %v709_v37, %v6912_v11 }
  0xbf   :  { %v741_v62 = vmul.f32 %v660_v19, %v6872_v39  ;;  %v742_v55 = vmul.f32 %v664_v20, %v6877_v40  ;;  %v756_v5 = vrot.slane %v710_v1, %v6910_v4  ;;  %v760_v6 = vrot.slane %v710_v1, %v6912_v11 }
  0xc0   :  { %v765_v41 = vadd.f32 %v748_v12, %v711_v38  ;;  %v766_v17 = vadd.f32 %v752_v2, %v712_v43  ;;  %v767_v57 = vadd.f32 %v748_v12, %v713_v44  ;;  %v768_v18 = vadd.f32 %v752_v2, %v714_v45 }
  0xc1   :  { %v769_v53 = vadd.f32 %v748_v12, %v715_v46  ;;  %v770_v28 = vadd.f32 %v752_v2, %v716_v47  ;;  %v771_v56 = vadd.f32 %v748_v12, %v717_v8  ;;  %v772_v29 = vadd.f32 %v752_v2, %v718_v32 }
  0xc2   :  { %v773_v42 = vadd.f32 %v748_v12, %v719_v27  ;;  %v774_v58 = vadd.f32 %v752_v2, %v720_v0  ;;  %v775_v54 = vadd.f32 %v748_v12, %v721_v59  ;;  %v776_v37 = vadd.f32 %v752_v2, %v722_v60 }
  0xc3   :  { %v777_v33 = vadd.f32 %v748_v12, %v723_v13  ;;  %v778_v19 = vadd.f32 %v752_v2, %v724_v25  ;;  %v779_v39 = vadd.f32 %v748_v12, %v725_v26  ;;  %v780_v20 = vadd.f32 %v752_v2, %v726_v30 }
  0xc4   :  { %v781_v40 = vadd.f32 %v756_v5, %v727_v31  ;;  %v782_v23 = vadd.f32 %v760_v6, %v728_v36  ;;  %v783_v51 = vadd.f32 %v756_v5, %v729_v61  ;;  %v784_v1 = vadd.f32 %v760_v6, %v730_v48 }
  0xc5   :  { %v785_v38 = vadd.f32 %v756_v5, %v731_v7  ;;  %v786_v43 = vadd.f32 %v760_v6, %v732_v9  ;;  %v787_v44 = vadd.f32 %v756_v5, %v733_v10  ;;  %v788_v45 = vadd.f32 %v760_v6, %v734_v21 }
  0xc6   :  { %v789_v46 = vadd.f32 %v756_v5, %v735_v22  ;;  %v790_v47 = vadd.f32 %v760_v6, %v736_v15  ;;  %v791_v8 = vadd.f32 %v756_v5, %v737_v16  ;;  %v792_v32 = vadd.f32 %v760_v6, %v738_v14 }
  0xc7   :  { %v793_v27 = vadd.f32 %v756_v5, %v739_v35  ;;  %v794_v0 = vadd.f32 %v760_v6, %v740_v3  ;;  %v795_v59 = vadd.f32 %v756_v5, %v741_v62  ;;  %v796_v60 = vadd.f32 %v760_v6, %v742_v55 }
  0xc8   :  { %v6961_v13 = vmax.f32 %v765_v41, 0.0  ;;  %v6963_v25 = vmax.f32 %v766_v17, 0.0  ;;  %v6965_v2 = vmax.f32 %v767_v57, 0.0  ;;  %v6967_v61 = vmax.f32 %v768_v18, 0.0 }
  0xc9   :  { %v6969_v26 = vmax.f32 %v769_v53, 0.0  ;;  %v6971_v9 = vmax.f32 %v770_v28, 0.0  ;;  %v6973_v10 = vmax.f32 %v771_v56, 0.0  ;;  %v6975_v15 = vmax.f32 %v772_v29, 0.0 }
  0xca   :  { %v6977_v16 = vmax.f32 %v773_v42, 0.0  ;;  %v6979_v62 = vmax.f32 %v774_v58, 0.0  ;;  %v6981_v41 = vmax.f32 %v775_v54, 0.0  ;;  %v6983_v55 = vmax.f32 %v776_v37, 0.0 }
  0xcb   :  { %v6985_v57 = vmax.f32 %v777_v33, 0.0  ;;  %v6987_v5 = vmax.f32 %v778_v19, 0.0  ;;  %v6989_v53 = vmax.f32 %v779_v39, 0.0  ;;  %v6991_v6 = vmax.f32 %v780_v20, 0.0 }
  0xcc   :  { %v6993_v56 = vmax.f32 %v781_v40, 0.0  ;;  %v6995_v17 = vmax.f32 %v782_v23, 0.0  ;;  %v6997_v42 = vmax.f32 %v783_v51, 0.0  ;;  %v6999_v58 = vmax.f32 %v784_v1, 0.0 }
  0xcd   :  { %v7001_v54 = vmax.f32 %v785_v38, 0.0  ;;  %v7003_v18 = vmax.f32 %v786_v43, 0.0  ;;  %v7005_v33 = vmax.f32 %v787_v44, 0.0  ;;  %v7007_v28 = vmax.f32 %v788_v45, 0.0 }
  0xce   :  { %v7009_v29 = vmax.f32 %v789_v46, 0.0  ;;  %v7011_v39 = vmax.f32 %v790_v47, 0.0  ;;  %v7013_v40 = vmax.f32 %v791_v8, 0.0  ;;  %v7015_v23 = vmax.f32 %v792_v32, 0.0 }
  0xcf   :  { %v7017_v51 = vmax.f32 %v793_v27, 0.0  ;;  %v7019_v30 = vmax.f32 %v794_v0, 0.0  ;;  %v7021_v31 = vmax.f32 %v795_v59, 0.0  ;;  %v7023_v36 = vmax.f32 %v796_v60, 0.0 }
  0xd0   :  { %6358 = dma.done.wait [#allocation5], 36864 }
  0xd1   :  { %6359 = vsyncadd [#allocation5], 4294930432  ;;  %v870_v48 = vrot.slane %v6963_v25, 7  ;;  %v872_v7 = vrot.slane %v6967_v61, 7  ;;  %vm934_vm0 = vcmask 1040384   ;;  %v9071_v21 = vmov 0.0  }
  0xd2   :  { %v7028_v22 = vrot.slane %v9071_v21, 7  ;;  %vm4795_vm1 = vmneg %vm934_vm0  ;;  %v869_v14 = vrot.slane %v6961_v13, 7  ;;  %v871_v35 = vrot.slane %v6965_v2, 7  ;;  %v1177_v20 = vld [vmem:[#allocation2 + $0x8] sm:$0xff]  ;;  %v1176_v1 = vld [vmem:[#allocation2] sm:$0xff]  ;;  %v9080_v21 = vrot.slane %v7009_v29, 7 }
  0xd3   :  { %vm7032_vm2 = vmpackc.low %vm4795_vm1, %vm4795_vm1  ;;  %v7038_v12 = vpack.c.bf16 %v872_v7, %v870_v48  ;;  %v1179_v38 = vld [vmem:[#allocation2 + $0x18] sm:$0xff]  ;;  %1476 = vmatprep.subr.bf16.mxu0 %v1177_v20  ;;  %v1178_v43 = vld [vmem:[#allocation2 + $0x10] sm:$0xff]  ;;  %v9084_v34 = vrot.slane %v7017_v51, 7  ;;  %v7235_v63 = vpack.c.bf16 %v6985_v57, %v6981_v41  ;;  %vm1034_vm3 = vcmask 1046528  }
  0xd4   :  { %v4798_v37 = vpack.c.bf16 %v870_v48, %v7028_v22  ;;  %v7045_v19 = vpack.c.bf16 %v871_v35, %v869_v14  ;;  %1477 = vmatpush1.bf16.msra.mxu0 %v1176_v1  ;;  %v1181_v44 = vld [vmem:[#allocation2 + $0x28] sm:$0xff]  ;;  %v1180_v45 = vld [vmem:[#allocation2 + $0x20] sm:$0xff]  ;;  %v1183_v46 = vld [vmem:[#allocation2 + $0x38] sm:$0xff] }
  0xd5   :  { %1478 = vmatprep.subr.bf16.mxu0 %v1179_v38  ;;  %v1182_v47 = vld [vmem:[#allocation2 + $0x30] sm:$0xff]  ;;  %v1185_v8 = vld [vmem:[#allocation2 + $0x48] sm:$0xff]  ;;  %v1184_v32 = vld [vmem:[#allocation2 + $0x40] sm:$0xff]  ;;  %9274 = vst [vmem:[#allocation65_spill] sm:$0xff] %v7235_v63 }
  0xd6   :  { %4799 = vmatprep.mubr.msk.bf16.mxu0 %vm7032_vm2, %v4798_v37  ;;  %v1187_v27 = vld [vmem:[#allocation2 + $0x58] sm:$0xff]  ;;  %v1186_v0 = vld [vmem:[#allocation2 + $0x50] sm:$0xff]  ;;  %v1189_v59 = vld [vmem:[#allocation2 + $0x68] sm:$0xff] }
  0xd7   :  { %v1188_v60 = vld [vmem:[#allocation2 + $0x60] sm:$0xff]  ;;  %v1191_v48 = vld [vmem:[#allocation2 + $0x78] sm:$0xff]  ;;  %v1190_v37 = vld [vmem:[#allocation2 + $0x70] sm:$0xff] }
  0xd8   :  { %1479 = vmatpush1.bf16.msra.mxu0 %v1178_v43  ;;  %v1193_v20 = vld [vmem:[#allocation2 + $0x88] sm:$0xff]  ;;  %v1192_v1 = vld [vmem:[#allocation2 + $0x80] sm:$0xff]  ;;  %v1195_v38 = vld [vmem:[#allocation2 + $0x98] sm:$0xff] }
  0xd9   :  { %1480 = vmatprep.subr.bf16.mxu0 %v1181_v44  ;;  %v1194_v43 = vld [vmem:[#allocation2 + $0x90] sm:$0xff]  ;;  %v1197_v44 = vld [vmem:[#allocation2 + $0xa8] sm:$0xff]  ;;  %v1235_v49 = vld [vmem:[#allocation2 + $0x1d8] sm:$0xff] }
  0xda   :  { %v1241_v24 = vld [vmem:[#allocation2 + $0x208] sm:$0xff]  ;;  %v1247_v52 = vld [vmem:[#allocation2 + $0x238] sm:$0xff]  ;;  %vm7278_vm4 = vmpackc.low %vm1034_vm3, %vm1034_vm3 }
  0xdb   :  { %v1251_v50 = vld [vmem:[#allocation2 + $0x258] sm:$0xff] }
  0xdc   :  { %1481 = vmatpush1.bf16.msra.mxu0 %v1180_v45  ;;  %v1196_v45 = vld [vmem:[#allocation2 + $0xa0] sm:$0xff]  ;;  %v1255_v11 = vld [vmem:[#allocation2 + $0x278] sm:$0xff] }
  0xdd   :  { %1482 = vmatprep.subr.bf16.mxu0 %v1183_v46  ;;  %v1199_v46 = vld [vmem:[#allocation2 + $0xb8] sm:$0xff] }
  0xe0   :  { %1483 = vmatpush1.bf16.msra.mxu0 %v1182_v47  ;;  %v1198_v47 = vld [vmem:[#allocation2 + $0xb0] sm:$0xff] }
  0xe1   :  { %1484 = vmatprep.subr.bf16.mxu0 %v1185_v8  ;;  %v1201_v8 = vld [vmem:[#allocation2 + $0xc8] sm:$0xff] }
  0xe4   :  { %1485 = vmatpush1.bf16.msra.mxu0 %v1184_v32  ;;  %v1200_v32 = vld [vmem:[#allocation2 + $0xc0] sm:$0xff] }
  0xe5   :  { %1486 = vmatprep.subr.bf16.mxu0 %v1187_v27  ;;  %v1203_v27 = vld [vmem:[#allocation2 + $0xd8] sm:$0xff] }
  0xe8   :  { %1487 = vmatpush1.bf16.msra.mxu0 %v1186_v0  ;;  %v1202_v0 = vld [vmem:[#allocation2 + $0xd0] sm:$0xff] }
  0xe9   :  { %1488 = vmatprep.subr.bf16.mxu0 %v1189_v59  ;;  %v1205_v59 = vld [vmem:[#allocation2 + $0xe8] sm:$0xff] }
  0xec   :  { %1489 = vmatpush1.bf16.msra.mxu0 %v1188_v60  ;;  %v1204_v60 = vld [vmem:[#allocation2 + $0xe0] sm:$0xff] }
  0xed   :  { %1490 = vmatprep.subr.bf16.mxu0 %v1191_v48  ;;  %v1207_v48 = vld [vmem:[#allocation2 + $0xf8] sm:$0xff] }
  0xf0   :  { %1491 = vmatpush1.bf16.msra.mxu0 %v1190_v37  ;;  %v9065_v37 = vrot.slane %v6971_v9, 7 }
  0xf1   :  { %1492 = vmatprep.subr.bf16.mxu0 %v1193_v20  ;;  %v1206_v20 = vld [vmem:[#allocation2 + $0xf0] sm:$0xff] }
  0xf4   :  { %1493 = vmatpush1.bf16.msra.mxu0 %v1192_v1  ;;  %v1209_v1 = vld [vmem:[#allocation2 + $0x108] sm:$0xff] }
  0xf5   :  { %1494 = vmatprep.subr.bf16.mxu0 %v1195_v38  ;;  %v4803_v38 = vpack.c.bf16 %v869_v14, %v7028_v22  ;;  %v9057_v14 = vrot.slane %v6975_v15, 7 }
  0xf8   :  { %1495 = vmatpush1.bf16.msra.mxu0 %v1194_v43  ;;  %v7057_v43 = vpack.c.bf16 %v9065_v37, %v872_v7  ;;  %v1210_v7 = vld [vmem:[#allocation2 + $0x110] sm:$0xff]  ;;  %v1227_v37 = vld [vmem:[#allocation2 + $0x198] sm:$0xff] }
  0xf9   :  { %1496 = vmatprep.subr.bf16.mxu0 %v1197_v44  ;;  %v1208_v44 = vld [vmem:[#allocation2 + $0x100] sm:$0xff] }
  0xfc   :  { %1497 = vmatpush1.bf16.msra.mxu0 %v1196_v45  ;;  %v1211_v45 = vld [vmem:[#allocation2 + $0x118] sm:$0xff] }
  0xfd   :  { %1498 = vmatprep.subr.bf16.mxu0 %v1199_v46  ;;  %v9056_v46 = vrot.slane %v6969_v26, 7 }
 0x100   :  { %1499 = vmatpush1.bf16.msra.mxu0 %v1198_v47  ;;  %v9055_v47 = vrot.slane %v6979_v62, 7 }
 0x101   :  { %1500 = vmatprep.subr.bf16.mxu0 %v1201_v8  ;;  %v1213_v8 = vld [vmem:[#allocation2 + $0x128] sm:$0xff] }
 0x104   :  { %1501 = vmatpush1.bf16.msra.mxu0 %v1200_v32  ;;  %v7071_v32 = vpack.c.bf16 %v9056_v46, %v871_v35  ;;  %v9061_v35 = vrot.slane %v6973_v10, 7  ;;  %v1219_v46 = vld [vmem:[#allocation2 + $0x158] sm:$0xff] }
 0x105   :  { %1502 = vmatprep.subr.bf16.mxu0 %v1203_v27  ;;  %v7077_v27 = vpack.c.bf16 %v9055_v47, %v9057_v14  ;;  %v1216_v47 = vld [vmem:[#allocation2 + $0x140] sm:$0xff]  ;;  %v9062_v14 = vrot.slane %v6985_v57, 7 }
 0x108   :  { %1503 = vmatpush1.bf16.msra.mxu0 %v1202_v0  ;;  %v1212_v0 = vld [vmem:[#allocation2 + $0x120] sm:$0xff] }
 0x109   :  { %1504 = vmatprep.subr.bf16.mxu0 %v1205_v59  ;;  %v9070_v59 = vrot.slane %v6961_v13, 1 }
 0x10c   :  { %1505 = vmatpush1.bf16.msra.mxu0 %v1204_v60  ;;  %v9066_v60 = vrot.slane %v6965_v2, 1 }
 0x10d   :  { %1506 = vmatprep.subr.bf16.mxu0 %v1207_v48  ;;  %v1215_v48 = vld [vmem:[#allocation2 + $0x138] sm:$0xff] }
 0x110   :  { %1507 = vmatpush1.bf16.msra.mxu0 %v1206_v20  ;;  %v9059_v20 = vrot.slane %v6977_v16, 7 }
 0x111   :  { %1589 = vmatprep.subr.bf16.mxu0 %v1209_v1  ;;  %v7090_v1 = vpack.c.bf16 %v9066_v60, %v9070_v59  ;;  %v9074_v60 = vrot.slane %v7001_v54, 7  ;;  %v1231_v59 = vld [vmem:[#allocation2 + $0x1b8] sm:$0xff] }
 0x113   :  { %4804 = vmatmul.mubr.msk.bf16.vlgmr.msra.gmra.mrb[0].mxu0 %vm7032_vm2, %v4803_v38  ;;  %v9060_v38 = vrot.slane %v6983_v55, 7 }
 0x114   :  { %1590 = vmatpush1.bf16.msra.mxu0 %v1208_v44  ;;  %4809 = vmatprep.mubr.msk.bf16.mxu0 %vm7032_vm2, %v7057_v43  ;;  %v9058_v44 = vrot.slane %v6987_v5, 7 }
 0x115   :  { %1591 = vmatprep.subr.bf16.mxu0 %v1211_v45  ;;  %v1214_v45 = vld [vmem:[#allocation2 + $0x130] sm:$0xff] }
 0x118   :  { %1592 = vmatpush1.bf16.msra.mxu0 %v1210_v7  ;;  %v1217_v7 = vld [vmem:[#allocation2 + $0x148] sm:$0xff] }
 0x119   :  { %1593 = vmatprep.subr.bf16.mxu0 %v1213_v8  ;;  %v7101_v8 = vpack.c.bf16 %v9059_v20, %v9061_v35  ;;  %v1223_v35 = vld [vmem:[#allocation2 + $0x178] sm:$0xff] }
 0x11b   :  { %4814 = vmatmul.mubr.msk.bf16.gmra.mrb[4].mxu0 %vm7032_vm2, %v7071_v32 }
 0x11c   :  { %1594 = vmatpush1.bf16.msra.mxu0 %v1212_v0  ;;  %4819 = vmatprep.mubr.msk.bf16.mxu0 %vm7032_vm2, %v7077_v27  ;;  %v7107_v0 = vpack.c.bf16 %v9058_v44, %v9060_v38  ;;  %v1218_v44 = vld [vmem:[#allocation2 + $0x150] sm:$0xff]  ;;  %v1220_v38 = vld [vmem:[#allocation2 + $0x160] sm:$0xff] }
 0x11d   :  { %1595 = vmatprep.subr.bf16.mxu0 %v1215_v48  ;;  %v9063_v48 = vrot.slane %v6981_v41, 7 }
 0x11f   :  { %v7122_v20 = vpack.c.bf16 %v9062_v14, %v9063_v48  ;;  %v9069_v14 = vrot.slane %v6999_v58, 7  ;;  %v1222_v48 = vld [vmem:[#allocation2 + $0x170] sm:$0xff] }
 0x120   :  { %1596 = vmatpush1.bf16.msra.mxu0 %v1214_v45  ;;  %v9064_v45 = vrot.slane %v6995_v17, 7 }
 0x121   :  { %1597 = vmatprep.subr.bf16.mxu0 %v1217_v7  ;;  %v1221_v7 = vld [vmem:[#allocation2 + $0x168] sm:$0xff] }
 0x123   :  { %4824 = vmatmul.mubr.msk.bf16.gmra.mrb[8].mxu0 %vm7032_vm2, %v7101_v8 }
 0x124   :  { %1598 = vmatpush1.bf16.msra.mxu0 %v1216_v47  ;;  %4829 = vmatprep.mubr.msk.bf16.mxu0 %vm7032_vm2, %v7107_v0  ;;  %v4838_v47 = vpack.c.bf16 %v9064_v45, %v7028_v22  ;;  %v1225_v45 = vld [vmem:[#allocation2 + $0x188] sm:$0xff] }
 0x125   :  { %1599 = vmatprep.subr.bf16.mxu0 %v1219_v46  ;;  %v9068_v46 = vrot.slane %v6993_v56, 7 }
 0x128   :  { %1600 = vmatpush1.bf16.msra.mxu0 %v1218_v44  ;;  %v9067_v44 = vrot.slane %v7003_v18, 7 }
 0x129   :  { %1601 = vmatprep.subr.bf16.mxu0 %v1221_v7  ;;  %v4843_v7 = vpack.c.bf16 %v9068_v46, %v7028_v22  ;;  %v1229_v46 = vld [vmem:[#allocation2 + $0x1a8] sm:$0xff] }
 0x12b   :  { %4834 = vmatmul.mubr.msk.bf16.gmra.mrb[12].mxu0 %vm7032_vm2, %v7122_v20 }
 0x12c   :  { %1602 = vmatpush1.bf16.msra.mxu0 %v1220_v38  ;;  %4839 = vmatprep.mubr.msk.bf16.mxu0 %vm7032_vm2, %v4838_v47  ;;  %v7142_v38 = vpack.c.bf16 %v9067_v44, %v9069_v14  ;;  %v1224_v47 = vld [vmem:[#allocation2 + $0x180] sm:$0xff]  ;;  %v9073_v44 = vrot.slane %v7011_v39, 7 }
 0x12d   :  { %1603 = vmatprep.subr.bf16.mxu0 %v1223_v35  ;;  %v9076_v35 = vrot.slane %v6997_v42, 7  ;;  %v1228_v14 = vld [vmem:[#allocation2 + $0x1a0] sm:$0xff] }
 0x130   :  { %1604 = vmatpush1.bf16.msra.mxu0 %v1222_v48  ;;  %v9075_v48 = vrot.slane %v7007_v28, 7 }
 0x131   :  { %1605 = vmatprep.subr.bf16.mxu0 %v1225_v45  ;;  %v1226_v45 = vld [vmem:[#allocation2 + $0x190] sm:$0xff] }
 0x133   :  { %4844 = vmatmul.mubr.msk.bf16.gmra.mrb[16].mxu0 %vm7032_vm2, %v4843_v7  ;;  %v7157_v7 = vpack.c.bf16 %v9074_v60, %v9076_v35  ;;  %v1233_v60 = vld [vmem:[#allocation2 + $0x1c8] sm:$0xff]  ;;  %v1232_v35 = vld [vmem:[#allocation2 + $0x1c0] sm:$0xff] }
 0x134   :  { %1606 = vmatpush1.bf16.msra.mxu0 %v1224_v47  ;;  %4849 = vmatprep.mubr.msk.bf16.mxu0 %vm7032_vm2, %v7142_v38  ;;  %v7163_v47 = vpack.c.bf16 %v9073_v44, %v9075_v48  ;;  %v9079_v44 = vrot.slane %v7019_v30, 7 }
 0x135   :  { %1607 = vmatprep.subr.bf16.mxu0 %v1227_v37  ;;  %v9082_v37 = vrot.slane %v7005_v33, 7 }
 0x137   :  { %v7179_v48 = vpack.c.bf16 %v9080_v21, %v9082_v37  ;;  %v9269_v21 = vmov 0.0   ;;  %v1236_v37 = vld [vmem:[#allocation2 + $0x1e0] sm:$0xff] }
 0x138   :  { %1608 = vmatpush1.bf16.msra.mxu0 %v1226_v45  ;;  %v9081_v45 = vrot.slane %v7015_v23, 7  ;;  %v1092_v4 = vpack.c.bf16 %v6993_v56, %v9269_v21 }
 0x139   :  { %1609 = vmatprep.subr.bf16.mxu0 %v1229_v46  ;;  %v1230_v46 = vld [vmem:[#allocation2 + $0x1b0] sm:$0xff] }
 0x13b   :  { %4854 = vmatmul.mubr.msk.bf16.gmra.mrb[20].mxu0 %vm7032_vm2, %v7157_v7 }
 0x13c   :  { %1610 = vmatpush1.bf16.msra.mxu0 %v1228_v14  ;;  %4859 = vmatprep.mubr.msk.bf16.mxu0 %vm7032_vm2, %v7163_v47  ;;  %v7185_v14 = vpack.c.bf16 %v9079_v44, %v9081_v45  ;;  %v1237_v44 = vld [vmem:[#allocation2 + $0x1e8] sm:$0xff]  ;;  %v1085_v45 = vpack.c.bf16 %v6963_v25, %v9269_v21 }
 0x13d   :  { %1611 = vmatprep.subr.bf16.mxu0 %v1231_v59  ;;  %v9085_v59 = vrot.slane %v7013_v40, 7 }
 0x140   :  { %1612 = vmatpush1.bf16.msra.mxu0 %v1230_v46  ;;  %v1234_v46 = vld [vmem:[#allocation2 + $0x1d0] sm:$0xff] }
 0x141   :  { %1613 = vmatprep.subr.bf16.mxu0 %v1233_v60  ;;  %v7199_v60 = vpack.c.bf16 %v9084_v34, %v9085_v59  ;;  %v1084_v34 = vpack.c.bf16 %v6961_v13, %v9269_v21  ;;  %v1243_v59 = vld [vmem:[#allocation2 + $0x218] sm:$0xff] }
 0x143   :  { %4864 = vmatmul.mubr.msk.bf16.gmra.mrb[24].mxu0 %vm7032_vm2, %v7179_v48 }
 0x144   :  { %1614 = vmatpush1.bf16.msra.mxu0 %v1232_v35  ;;  %4869 = vmatprep.mubr.msk.bf16.mxu0 %vm7032_vm2, %v7185_v14  ;;  %v1239_v35 = vld [vmem:[#allocation2 + $0x1f8] sm:$0xff] }
 0x145   :  { %1615 = vmatprep.subr.bf16.mxu0 %v1235_v49  ;;  %v1238_v49 = vld [vmem:[#allocation2 + $0x1f0] sm:$0xff] }
 0x148   :  { %1616 = vmatpush1.bf16.msra.mxu0 %v1234_v46  ;;  %v7210_v46 = vpack.c.bf16 %v6971_v9, %v6967_v61 }
 0x149   :  { %1617 = vmatprep.subr.bf16.mxu0 %v1237_v44  ;;  %v1240_v44 = vld [vmem:[#allocation2 + $0x200] sm:$0xff] }
 0x14b   :  { %4874 = vmatmul.mubr.msk.bf16.gmra.mrb[28].mxu0 %vm7032_vm2, %v7199_v60 }
 0x14c   :  { %1618 = vmatpush1.bf16.msra.mxu0 %v1236_v37  ;;  %1621 = vmatprep.mubr.bf16.mxu0 %v1085_v45  ;;  %v1242_v37 = vld [vmem:[#allocation2 + $0x210] sm:$0xff]  ;;  %v1245_v45 = vld [vmem:[#allocation2 + $0x228] sm:$0xff] }
 0x14d   :  { %1619 = vmatprep.subr.bf16.mxu0 %v1239_v35  ;;  %v7215_v35 = vpack.c.bf16 %v6969_v26, %v6965_v2 }
 0x14f   :  { %9270 = vst [vmem:[#allocation61_spill] sm:$0xff] %v7215_v35 }
 0x150   :  { %1620 = vmatpush1.bf16.msra.mxu0 %v1238_v49  ;;  %v7219_v49 = vpack.c.bf16 %v6979_v62, %v6975_v15 }
 0x151   :  { %1702 = vmatprep.subr.bf16.mxu0 %v1241_v24  ;;  %v1244_v24 = vld [vmem:[#allocation2 + $0x220] sm:$0xff] }
 0x152   :  { %9271 = vst [vmem:[#allocation62_spill] sm:$0xff] %v7219_v49 }
 0x153   :  { %1622 = vmatmul.mubr.bf16.vlgmr.msra.gmra.mrb[0].mxu0 %v1084_v34  ;;  %v1246_v34 = vld [vmem:[#allocation2 + $0x230] sm:$0xff] }
 0x154   :  { %1703 = vmatpush1.bf16.msra.mxu0 %v1240_v44  ;;  %1631 = vmatprep.mubr.bf16.mxu0 %v7210_v46  ;;  %v7225_v44 = vpack.c.bf16 %v6977_v16, %v6973_v10 }
 0x155   :  { %1704 = vmatprep.subr.bf16.mxu0 %v1243_v59  ;;  %v1249_v59 = vld [vmem:[#allocation2 + $0x248] sm:$0xff] }
 0x156   :  { %9272 = vst [vmem:[#allocation63_spill] sm:$0xff] %v7225_v44 }
 0x158   :  { %1705 = vmatpush1.bf16.msra.mxu0 %v1242_v37  ;;  %v7229_v37 = vpack.c.bf16 %v6987_v5, %v6983_v55 }
 0x159   :  { %1706 = vmatprep.subr.bf16.mxu0 %v1245_v45  ;;  %v1248_v45 = vld [vmem:[#allocation2 + $0x240] sm:$0xff] }
 0x15a   :  { %9273 = vst [vmem:[#allocation64_spill] sm:$0xff] %v7229_v37 }
 0x15b   :  { %1632 = vmatmul.mubr.bf16.gmra.mrb[4].mxu0 %v7215_v35  ;;  %v9116_v35 = vrot.slane %v6977_v16, 1 }
 0x15c   :  { %1707 = vmatpush1.bf16.msra.mxu0 %v1244_v24  ;;  %1641 = vmatprep.mubr.bf16.mxu0 %v7219_v49  ;;  %v1253_v24 = vld [vmem:[#allocation2 + $0x268] sm:$0xff] }
 0x15d   :  { %1708 = vmatprep.subr.bf16.mxu0 %v1247_v52  ;;  %v1250_v52 = vld [vmem:[#allocation2 + $0x250] sm:$0xff] }
 0x160   :  { %1709 = vmatpush1.bf16.msra.mxu0 %v1246_v34  ;;  %v1093_v34 = vpack.c.bf16 %v6995_v17, %v9269_v21 }
 0x161   :  { %1710 = vmatprep.subr.bf16.mxu0 %v1249_v59  ;;  %v1252_v59 = vld [vmem:[#allocation2 + $0x260] sm:$0xff] }
 0x163   :  { %1642 = vmatmul.mubr.bf16.gmra.mrb[8].mxu0 %v7225_v44 }
 0x164   :  { %1711 = vmatpush1.bf16.msra.mxu0 %v1248_v45  ;;  %1651 = vmatprep.mubr.bf16.mxu0 %v7229_v37  ;;  %v1254_v45 = vld [vmem:[#allocation2 + $0x270] sm:$0xff]  ;;  %v1256_v37 = vld [vmem:[#allocation2 + $0x280] sm:$0xff] }
 0x165   :  { %1712 = vmatprep.subr.bf16.mxu0 %v1251_v50  ;;  %v1257_v50 = vld [vmem:[#allocation2 + $0x288] sm:$0xff] }
 0x168   :  { %1713 = vmatpush1.bf16.msra.mxu0 %v1250_v52  ;;  %v7244_v52 = vpack.c.bf16 %v7003_v18, %v6999_v58 }
 0x169   :  { %1714 = vmatprep.subr.bf16.mxu0 %v1253_v24  ;;  %v1259_v24 = vld [vmem:[#allocation2 + $0x298] sm:$0xff] }
 0x16a   :  { %9275 = vst [vmem:[#allocation66_spill] sm:$0xff] %v7244_v52 }
 0x16b   :  { %1652 = vmatmul.mubr.bf16.gmra.mrb[12].mxu0 %v7235_v63  ;;  %v1263_v63 = vld [vmem:[#allocation2 + $0x2b8] sm:$0xff] }
 0x16c   :  { %1715 = vmatpush1.bf16.msra.mxu0 %v1252_v59  ;;  %1661 = vmatprep.mubr.bf16.mxu0 %v1093_v34  ;;  %v1258_v34 = vld [vmem:[#allocation2 + $0x290] sm:$0xff]  ;;  %v7249_v59 = vpack.c.bf16 %v7001_v54, %v6997_v42 }
 0x16d   :  { %1716 = vmatprep.subr.bf16.mxu0 %v1255_v11  ;;  %v1261_v11 = vld [vmem:[#allocation2 + $0x2a8] sm:$0xff] }
 0x16e   :  { %9276 = vst [vmem:[#allocation67_spill] sm:$0xff] %v7249_v59 }
 0x170   :  { %1717 = vmatpush1.bf16.msra.mxu0 %v1254_v45  ;;  %v7253_v45 = vpack.c.bf16 %v7011_v39, %v7007_v28 }
 0x171   :  { %1718 = vmatprep.subr.bf16.mxu0 %v1257_v50  ;;  %v1260_v50 = vld [vmem:[#allocation2 + $0x2a0] sm:$0xff] }
 0x172   :  { %9277 = vst [vmem:[#allocation68_spill] sm:$0xff] %v7253_v45 }
 0x173   :  { %1662 = vmatmul.mubr.bf16.gmra.mrb[16].mxu0 %v1092_v4  ;;  %v1262_v4 = vld [vmem:[#allocation2 + $0x2b0] sm:$0xff] }
 0x174   :  { %1719 = vmatpush1.bf16.msra.mxu0 %v1256_v37  ;;  %1671 = vmatprep.mubr.bf16.mxu0 %v7244_v52  ;;  %v1265_v37 = vld [vmem:[#allocation2 + $0x2c8] sm:$0xff]  ;;  %v1267_v52 = vld [vmem:[#allocation2 + $0x2d8] sm:$0xff] }
 0x175   :  { %1720 = vmatprep.subr.bf16.mxu0 %v1259_v24  ;;  %v7259_v24 = vpack.c.bf16 %v7009_v29, %v7005_v33 }
 0x177   :  { %9278 = vst [vmem:[#allocation69_spill] sm:$0xff] %v7259_v24 }
 0x178   :  { %1721 = vmatpush1.bf16.msra.mxu0 %v1258_v34  ;;  %v7263_v34 = vpack.c.bf16 %v7019_v30, %v7015_v23 }
 0x179   :  { %1722 = vmatprep.subr.bf16.mxu0 %v1261_v11  ;;  %v1264_v11 = vld [vmem:[#allocation2 + $0x2c0] sm:$0xff] }
 0x17a   :  { %9279 = vst [vmem:[#allocation70_spill] sm:$0xff] %v7263_v34 }
 0x17b   :  { %1672 = vmatmul.mubr.bf16.gmra.mrb[20].mxu0 %v7249_v59  ;;  %v7273_v59 = vpack.c.bf16 %v7017_v51, %v7013_v40 }
 0x17c   :  { %1723 = vmatpush1.bf16.msra.mxu0 %v1260_v50  ;;  %1681 = vmatprep.mubr.bf16.mxu0 %v7253_v45  ;;  %v9102_v50 = vrot.slane %v6963_v25, 1  ;;  %v1266_v45 = vld [vmem:[#allocation2 + $0x2d0] sm:$0xff] }
 0x17d   :  { %1724 = vmatprep.subr.bf16.mxu0 %v1263_v63  ;;  %v7268_v63 = vrot.slane %v9269_v21, 1  ;;  %9281 = vst [vmem:[#allocation72_spill] sm:$0xff] %v7273_v59  ;;  %v1270_v21 = vld [vmem:[#allocation2 + $0x2f0] sm:$0xff] }
 0x17f   :  { %9280 = vst [vmem:[#allocation71_spill] sm:$0xff] %v7268_v63 }
 0x180   :  { %1725 = vmatpush1.bf16.msra.mxu0 %v1262_v4  ;;  %v1269_v4 = vld [vmem:[#allocation2 + $0x2e8] sm:$0xff] }
 0x181   :  { %1726 = vmatprep.subr.bf16.mxu0 %v1265_v37  ;;  %v4876_v37 = vpack.c.bf16 %v9102_v50, %v7268_v63  ;;  %v1273_v50 = vld [vmem:[#allocation2 + $0x308] sm:$0xff] }
 0x183   :  { %1682 = vmatmul.mubr.bf16.gmra.mrb[24].mxu0 %v7259_v24  ;;  %v1271_v24 = vld [vmem:[#allocation2 + $0x2f8] sm:$0xff] }
 0x184   :  { %1727 = vmatpush1.bf16.msra.mxu0 %v1264_v11  ;;  %1691 = vmatprep.mubr.bf16.mxu0 %v7263_v34  ;;  %v1268_v11 = vld [vmem:[#allocation2 + $0x2e0] sm:$0xff]  ;;  %v9282_v34 = vmov 0 }
 0x185   :  { %1728 = vmatprep.subr.bf16.mxu0 %v1267_v52  ;;  %v9283_v34 = vsel %vm7278_vm4, 4294967295, %v9282_v34  ;;  %v9106_v52 = vrot.slane %v6967_v61, 1 }
 0x186   :  { %9284 = vst [vmem:[#allocation73_spill] sm:$0xff] %v9283_v34 }
 0x188   :  { %1729 = vmatpush1.bf16.msra.mxu0 %v1266_v45  ;;  %v9105_v45 = vrot.slane %v6971_v9, 1 }
 0x189   :  { %1730 = vmatprep.subr.bf16.mxu0 %v1269_v4  ;;  %v9285_v4 = vrot.slane %v6961_v13, 1 }
 0x18b   :  { %1692 = vmatmul.mubr.bf16.gmra.mrb[28].mxu0 %v7273_v59  ;;  %v4879_v44 = vpack.c.bf16 %v9285_v4, %v7268_v63  ;;  %v1275_v59 = vld [vmem:[#allocation2 + $0x318] sm:$0xff]  ;;  %v9110_v4 = vrot.slane %v6979_v62, 1 }
 0x18c   :  { %1731 = vmatpush1.bf16.msra.mxu0 %v1268_v11  ;;  %4877 = vmatprep.mubr.msk.bf16.mxu0 %vm7278_vm4, %v4876_v37  ;;  %v7294_v11 = vpack.c.bf16 %v9105_v45, %v9106_v52  ;;  %v1272_v37 = vld [vmem:[#allocation2 + $0x300] sm:$0xff]  ;;  %v1274_v45 = vld [vmem:[#allocation2 + $0x310] sm:$0xff]  ;;  %v1277_v52 = vld [vmem:[#allocation2 + $0x328] sm:$0xff] }
 0x18d   :  { %1732 = vmatprep.subr.bf16.mxu0 %v1271_v24  ;;  %v9111_v24 = vrot.slane %v6969_v26, 1 }
 0x18e   :  { %9286 = vst [vmem:[#allocation74_spill] sm:$0xff] %v7294_v11 }
 0x190   :  { %1733 = vmatpush1.bf16.msra.mxu0 %v1270_v21  ;;  %v9112_v21 = vrot.slane %v6975_v15, 1 }
 0x191   :  { %1815 = vmatprep.subr.bf16.mxu0 %v1273_v50  ;;  %v9287_v50 = vrot.slane %v6965_v2, 1 }
 0x193   :  { %4880 = vmatmul.mubr.msk.bf16.vlgmr.msra.gmra.mrb[0].mxu0 %vm7278_vm4, %v4879_v44  ;;  %v7308_v49 = vpack.c.bf16 %v9111_v24, %v9287_v50  ;;  %v7314_v44 = vpack.c.bf16 %v9110_v4, %v9112_v21  ;;  %v9115_v50 = vrot.slane %v6987_v5, 1  ;;  %v1281_v4 = vld [vmem:[#allocation2 + $0x348] sm:$0xff]  ;;  %v1280_v21 = vld [vmem:[#allocation2 + $0x340] sm:$0xff] }
 0x194   :  { %1816 = vmatpush1.bf16.msra.mxu0 %v1272_v37  ;;  %4883 = vmatprep.mubr.msk.bf16.mxu0 %vm7278_vm4, %v7294_v11  ;;  %v1276_v37 = vld [vmem:[#allocation2 + $0x320] sm:$0xff]  ;;  %v1279_v11 = vld [vmem:[#allocation2 + $0x338] sm:$0xff] }
 0x195   :  { %1817 = vmatprep.subr.bf16.mxu0 %v1275_v59  ;;  %9288 = vst [vmem:[#allocation75_spill] sm:$0xff] %v7308_v49  ;;  %9289 = vst [vmem:[#allocation76_spill] sm:$0xff] %v7314_v44  ;;  %v9118_v59 = vrot.slane %v6973_v10, 1 }
 0x197   :  { %v7330_v24 = vpack.c.bf16 %v9116_v35, %v9118_v59  ;;  %v1287_v59 = vld [vmem:[#allocation2 + $0x378] sm:$0xff] }
 0x198   :  { %1818 = vmatpush1.bf16.msra.mxu0 %v1274_v45  ;;  %v9117_v45 = vrot.slane %v6983_v55, 1 }
 0x199   :  { %1819 = vmatprep.subr.bf16.mxu0 %v1277_v52  ;;  %v1278_v52 = vld [vmem:[#allocation2 + $0x330] sm:$0xff] }
 0x19b   :  { %4886 = vmatmul.mubr.msk.bf16.gmra.mrb[4].mxu0 %vm7278_vm4, %v7308_v49  ;;  %v9119_v49 = vrot.slane %v6985_v57, 1 }
 0x19c   :  { %1820 = vmatpush1.bf16.msra.mxu0 %v1276_v37  ;;  %4889 = vmatprep.mubr.msk.bf16.mxu0 %vm7278_vm4, %v7314_v44  ;;  %v7336_v37 = vpack.c.bf16 %v9115_v50, %v9117_v45  ;;  %v1283_v44 = vld [vmem:[#allocation2 + $0x358] sm:$0xff]  ;;  %v1282_v50 = vld [vmem:[#allocation2 + $0x350] sm:$0xff]  ;;  %v1284_v45 = vld [vmem:[#allocation2 + $0x360] sm:$0xff] }
 0x19d   :  { %1821 = vmatprep.subr.bf16.mxu0 %v1279_v11  ;;  %v9120_v11 = vrot.slane %v6981_v41, 1 }
 0x19e   :  { %9290 = vst [vmem:[#allocation77_spill] sm:$0xff] %v7336_v37 }
 0x19f   :  { %v7351_v35 = vpack.c.bf16 %v9119_v49, %v9120_v11  ;;  %v9126_v49 = vrot.slane %v6999_v58, 1  ;;  %v1286_v11 = vld [vmem:[#allocation2 + $0x370] sm:$0xff] }
 0x1a0   :  { %1822 = vmatpush1.bf16.msra.mxu0 %v1278_v52  ;;  %v9121_v52 = vrot.slane %v6995_v17, 1 }
 0x1a1   :  { %1823 = vmatprep.subr.bf16.mxu0 %v1281_v4  ;;  %v1285_v4 = vld [vmem:[#allocation2 + $0x368] sm:$0xff]  ;;  %9291 = vst [vmem:[#allocation78_spill] sm:$0xff] %v7351_v35 }
 0x1a3   :  { %4892 = vmatmul.mubr.msk.bf16.gmra.mrb[8].mxu0 %vm7278_vm4, %v7330_v24 }
 0x1a4   :  { %1824 = vmatpush1.bf16.msra.mxu0 %v1280_v21  ;;  %4895 = vmatprep.mubr.msk.bf16.mxu0 %vm7278_vm4, %v7336_v37  ;;  %v4900_v21 = vpack.c.bf16 %v9121_v52, %v7268_v63  ;;  %v1289_v52 = vld [vmem:[#allocation2 + $0x388] sm:$0xff]  ;;  %v9131_v37 = vrot.slane %v7001_v54, 1 }
 0x1a5   :  { %1825 = vmatprep.subr.bf16.mxu0 %v1283_v44  ;;  %v9125_v44 = vrot.slane %v6993_v56, 1 }
 0x1a8   :  { %1826 = vmatpush1.bf16.msra.mxu0 %v1282_v50  ;;  %v9124_v50 = vrot.slane %v7003_v18, 1 }
 0x1a9   :  { %1827 = vmatprep.subr.bf16.mxu0 %v1285_v4  ;;  %v4903_v4 = vpack.c.bf16 %v9125_v44, %v7268_v63  ;;  %v1293_v44 = vld [vmem:[#allocation2 + $0x3a8] sm:$0xff]  ;;  %v9137_v63 = vrot.slane %v7009_v29, 1 }
 0x1ab   :  { %4898 = vmatmul.mubr.msk.bf16.gmra.mrb[12].mxu0 %vm7278_vm4, %v7351_v35  ;;  %v1291_v35 = vld [vmem:[#allocation2 + $0x398] sm:$0xff] }
 0x1ac   :  { %1828 = vmatpush1.bf16.msra.mxu0 %v1284_v45  ;;  %4901 = vmatprep.mubr.msk.bf16.mxu0 %vm7278_vm4, %v4900_v21  ;;  %v7371_v45 = vpack.c.bf16 %v9124_v50, %v9126_v49  ;;  %v1288_v21 = vld [vmem:[#allocation2 + $0x380] sm:$0xff]  ;;  %v9130_v50 = vrot.slane %v7011_v39, 1 }
 0x1ad   :  { %1829 = vmatprep.subr.bf16.mxu0 %v1287_v59  ;;  %v9133_v59 = vrot.slane %v6997_v42, 1  ;;  %v1292_v49 = vld [vmem:[#allocation2 + $0x3a0] sm:$0xff] }
 0x1ae   :  { %9292 = vst [vmem:[#allocation79_spill] sm:$0xff] %v7371_v45 }
 0x1b0   :  { %1830 = vmatpush1.bf16.msra.mxu0 %v1286_v11  ;;  %v9132_v11 = vrot.slane %v7007_v28, 1 }
 0x1b1   :  { %1831 = vmatprep.subr.bf16.mxu0 %v1289_v52  ;;  %v1290_v52 = vld [vmem:[#allocation2 + $0x390] sm:$0xff] }
 0x1b3   :  { %4904 = vmatmul.mubr.msk.bf16.gmra.mrb[16].mxu0 %vm7278_vm4, %v4903_v4  ;;  %v7386_v4 = vpack.c.bf16 %v9131_v37, %v9133_v59  ;;  %v1297_v37 = vld [vmem:[#allocation2 + $0x3c8] sm:$0xff]  ;;  %v1296_v59 = vld [vmem:[#allocation2 + $0x3c0] sm:$0xff] }
 0x1b4   :  { %1832 = vmatpush1.bf16.msra.mxu0 %v1288_v21  ;;  %4907 = vmatprep.mubr.msk.bf16.mxu0 %vm7278_vm4, %v7371_v45  ;;  %v7392_v21 = vpack.c.bf16 %v9130_v50, %v9132_v11  ;;  %v1295_v45 = vld [vmem:[#allocation2 + $0x3b8] sm:$0xff]  ;;  %v9136_v50 = vrot.slane %v7019_v30, 1 }
 0x1b5   :  { %1833 = vmatprep.subr.bf16.mxu0 %v1291_v35  ;;  %9293 = vst [vmem:[#allocation80_spill] sm:$0xff] %v7386_v4  ;;  %v9141_v35 = vrot.slane %v7005_v33, 1 }
 0x1b6   :  { %9294 = vst [vmem:[#allocation81_spill] sm:$0xff] %v7392_v21 }
 0x1b7   :  { %v7408_v11 = vpack.c.bf16 %v9137_v63, %v9141_v35  ;;  %v1300_v63 = vld [vmem:[#allocation2 + $0x3e0] sm:$0xff]  ;;  %v1307_v35 = vld [vmem:[#allocation2 + $0x418] sm:$0xff] }
 0x1b8   :  { %1834 = vmatpush1.bf16.msra.mxu0 %v1290_v52  ;;  %v9138_v52 = vrot.slane %v7015_v23, 1 }
 0x1b9   :  { %1835 = vmatprep.subr.bf16.mxu0 %v1293_v44  ;;  %v1294_v44 = vld [vmem:[#allocation2 + $0x3b0] sm:$0xff] }
 0x1bb   :  { %4910 = vmatmul.mubr.msk.bf16.gmra.mrb[20].mxu0 %vm7278_vm4, %v7386_v4  ;;  %v9139_v4 = vrot.slane %v7017_v51, 1 }
 0x1bc   :  { %1836 = vmatpush1.bf16.msra.mxu0 %v1292_v49  ;;  %4913 = vmatprep.mubr.msk.bf16.mxu0 %vm7278_vm4, %v7392_v21  ;;  %v7414_v49 = vpack.c.bf16 %v9136_v50, %v9138_v52  ;;  %v1299_v21 = vld [vmem:[#allocation2 + $0x3d8] sm:$0xff]  ;;  %v1301_v50 = vld [vmem:[#allocation2 + $0x3e8] sm:$0xff] }
 0x1bd   :  { %1837 = vmatprep.subr.bf16.mxu0 %v1295_v45  ;;  %v9140_v45 = vrot.slane %v7013_v40, 1  ;;  %v1303_v52 = vld [vmem:[#allocation2 + $0x3f8] sm:$0xff] }
 0x1c0   :  { %1838 = vmatpush1.bf16.msra.mxu0 %v1294_v44  ;;  %v1298_v44 = vld [vmem:[#allocation2 + $0x3d0] sm:$0xff] }
 0x1c1   :  { %1839 = vmatprep.subr.bf16.mxu0 %v1297_v37  ;;  %v7428_v37 = vpack.c.bf16 %v9139_v4, %v9140_v45  ;;  %v9296_v4 = vrot.slane %v6971_v9, 7  ;;  %v1304_v45 = vld [vmem:[#allocation2 + $0x400] sm:$0xff] }
 0x1c3   :  { %4916 = vmatmul.mubr.msk.bf16.gmra.mrb[24].mxu0 %vm7278_vm4, %v7408_v11  ;;  %9295 = vst [vmem:[#allocation82_spill] sm:$0xff] %v7428_v37 }
 0x1c4   :  { %1840 = vmatpush1.bf16.msra.mxu0 %v1296_v59  ;;  %4919 = vmatprep.mubr.msk.bf16.mxu0 %vm7278_vm4, %v7414_v49  ;;  %v1302_v59 = vld [vmem:[#allocation2 + $0x3f0] sm:$0xff] }
 0x1c5   :  { %1841 = vmatprep.subr.bf16.mxu0 %v1299_v21  ;;  %v1305_v21 = vld [vmem:[#allocation2 + $0x408] sm:$0xff] }
 0x1c8   :  { %1842 = vmatpush1.bf16.msra.mxu0 %v1298_v44  ;;  %v9297_v44 = vrot.slane %v6975_v15, 7 }
 0x1c9   :  { %1843 = vmatprep.subr.bf16.mxu0 %v1301_v50 }
 0x1ca   :  { %v4936_v50 = vpack.c.bf16 %v9297_v44, %v9296_v4  ;;  %v9300_v4 = vrot.slane %v6979_v62, 7 }
 0x1cb   :  { %4922 = vmatmul.mubr.msk.bf16.gmra.mrb[28].mxu0 %vm7278_vm4, %v7428_v37 }
 0x1cc   :  { %1844 = vmatpush1.bf16.msra.mxu0 %v1300_v63  ;;  %4927 = vmatprep.mubr.msk.bf16.mxu0 %vm7032_vm2, %v7038_v12  ;;  %v1306_v12 = vld [vmem:[#allocation2 + $0x410] sm:$0xff]  ;;  %v1309_v63 = vld [vmem:[#allocation2 + $0x428] sm:$0xff] }
 0x1cd   :  { %1845 = vmatprep.subr.bf16.mxu0 %v1303_v52  ;;  %v9298_v52 = vrot.slane %v6969_v26, 7 }
 0x1d0   :  { %1846 = vmatpush1.bf16.msra.mxu0 %v1302_v59  ;;  %v9299_v59 = vrot.slane %v6973_v10, 7 }
 0x1d1   :  { %1928 = vmatprep.subr.bf16.mxu0 %v1305_v21  ;;  %v9301_v21 = vrot.slane %v6983_v55, 7 }
 0x1d2   :  { %v4941_v37 = vpack.c.bf16 %v9299_v59, %v9298_v52  ;;  %v9302_v52 = vrot.slane %v6977_v16, 7  ;;  %v9303_v59 = vrot.slane %v6981_v41, 7 }
 0x1d3   :  { %4932 = vmatmul.mubr.msk.bf16.vlgmr.msra.gmra.mrb[0].mxu0 %vm7032_vm2, %v7045_v19  ;;  %v4946_v44 = vpack.c.bf16 %v9301_v21, %v9300_v4  ;;  %v1308_v19 = vld [vmem:[#allocation2 + $0x420] sm:$0xff] }
 0x1d4   :  { %1929 = vmatpush1.bf16.msra.mxu0 %v1304_v45  ;;  %4937 = vmatprep.mubr.msk.bf16.mxu0 %vm7032_vm2, %v4936_v50  ;;  %v1311_v45 = vld [vmem:[#allocation2 + $0x438] sm:$0xff]  ;;  %v1310_v50 = vld [vmem:[#allocation2 + $0x430] sm:$0xff]  ;;  %v4951_v4 = vpack.c.bf16 %v9303_v59, %v9302_v52  ;;  %v1312_v21 = vld [vmem:[#allocation2 + $0x440] sm:$0xff]  ;;  %v9305_v52 = vrot.slane %v6985_v57, 7 }
 0x1d5   :  { %1930 = vmatprep.subr.bf16.mxu0 %v1307_v35  ;;  %v9143_v35 = vrot.slane %v6991_v6, 7 }
 0x1d8   :  { %1931 = vmatpush1.bf16.msra.mxu0 %v1306_v12  ;;  %v1313_v12 = vld [vmem:[#allocation2 + $0x448] sm:$0xff] }
 0x1d9   :  { %1932 = vmatprep.subr.bf16.mxu0 %v1309_v63  ;;  %v9304_v63 = vrot.slane %v6987_v5, 7 }
 0x1db   :  { %4942 = vmatmul.mubr.msk.bf16.gmra.mrb[4].mxu0 %vm7032_vm2, %v4941_v37  ;;  %v4956_v37 = vpack.c.bf16 %v9143_v35, %v9304_v63  ;;  %v9307_v63 = vrot.slane %v6999_v58, 7  ;;  %v1316_v35 = vld [vmem:[#allocation2 + $0x460] sm:$0xff] }
 0x1dc   :  { %1933 = vmatpush1.bf16.msra.mxu0 %v1308_v19  ;;  %4947 = vmatprep.mubr.msk.bf16.mxu0 %vm7032_vm2, %v4946_v44  ;;  %v1315_v19 = vld [vmem:[#allocation2 + $0x458] sm:$0xff]  ;;  %v9144_v44 = vrot.slane %v6989_v53, 7 }
 0x1dd   :  { %1934 = vmatprep.subr.bf16.mxu0 %v1311_v45  ;;  %v1314_v45 = vld [vmem:[#allocation2 + $0x450] sm:$0xff] }
 0x1de   :  { %v4961_v59 = vpack.c.bf16 %v9144_v44, %v9305_v52  ;;  %v9309_v52 = vrot.slane %v6997_v42, 7 }
 0x1e0   :  { %1935 = vmatpush1.bf16.msra.mxu0 %v1310_v50  ;;  %v1317_v50 = vld [vmem:[#allocation2 + $0x468] sm:$0xff] }
 0x1e1   :  { %1936 = vmatprep.subr.bf16.mxu0 %v1313_v12  ;;  %v9306_v12 = vrot.slane %v6995_v17, 7 }
 0x1e3   :  { %4952 = vmatmul.mubr.msk.bf16.gmra.mrb[8].mxu0 %vm7032_vm2, %v4951_v4  ;;  %v4966_v4 = vpack.c.bf16 %v9307_v63, %v9306_v12  ;;  %v9311_v12 = vrot.slane %v7007_v28, 7 }
 0x1e4   :  { %1937 = vmatpush1.bf16.msra.mxu0 %v1312_v21  ;;  %4957 = vmatprep.mubr.msk.bf16.mxu0 %vm7032_vm2, %v4956_v37  ;;  %v1319_v21 = vld [vmem:[#allocation2 + $0x478] sm:$0xff]  ;;  %v1318_v37 = vld [vmem:[#allocation2 + $0x470] sm:$0xff] }
 0x1e5   :  { %1938 = vmatprep.subr.bf16.mxu0 %v1315_v19  ;;  %v1321_v19 = vld [vmem:[#allocation2 + $0x488] sm:$0xff] }
 0x1e8   :  { %1939 = vmatpush1.bf16.msra.mxu0 %v1314_v45  ;;  %v9308_v45 = vrot.slane %v6993_v56, 7 }
 0x1e9   :  { %1940 = vmatprep.subr.bf16.mxu0 %v1317_v50  ;;  %v9310_v50 = vrot.slane %v7003_v18, 7 }
 0x1ea   :  { %v4971_v44 = vpack.c.bf16 %v9309_v52, %v9308_v45  ;;  %v9313_v45 = vrot.slane %v7005_v33, 7 }
 0x1eb   :  { %4962 = vmatmul.mubr.msk.bf16.gmra.mrb[12].mxu0 %vm7032_vm2, %v4961_v59  ;;  %v4976_v63 = vpack.c.bf16 %v9311_v12, %v9310_v50  ;;  %v1320_v59 = vld [vmem:[#allocation2 + $0x480] sm:$0xff]  ;;  %v9315_v50 = vrot.slane %v7015_v23, 7 }
 0x1ec   :  { %1941 = vmatpush1.bf16.msra.mxu0 %v1316_v35  ;;  %4967 = vmatprep.mubr.msk.bf16.mxu0 %vm7032_vm2, %v4966_v4  ;;  %v1323_v35 = vld [vmem:[#allocation2 + $0x498] sm:$0xff]  ;;  %v1322_v4 = vld [vmem:[#allocation2 + $0x490] sm:$0xff] }
 0x1ed   :  { %1942 = vmatprep.subr.bf16.mxu0 %v1319_v21  ;;  %v1325_v21 = vld [vmem:[#allocation2 + $0x4a8] sm:$0xff] }
 0x1f0   :  { %1943 = vmatpush1.bf16.msra.mxu0 %v1318_v37  ;;  %v9312_v37 = vrot.slane %v7001_v54, 7 }
 0x1f1   :  { %1944 = vmatprep.subr.bf16.mxu0 %v1321_v19  ;;  %v9314_v19 = vrot.slane %v7011_v39, 7 }
 0x1f2   :  { %v4981_v52 = vpack.c.bf16 %v9313_v45, %v9312_v37  ;;  %v9316_v37 = vrot.slane %v7009_v29, 7  ;;  %v9317_v45 = vrot.slane %v7013_v40, 7 }
 0x1f3   :  { %4972 = vmatmul.mubr.msk.bf16.gmra.mrb[16].mxu0 %vm7032_vm2, %v4971_v44  ;;  %v4986_v12 = vpack.c.bf16 %v9315_v50, %v9314_v19  ;;  %v1324_v44 = vld [vmem:[#allocation2 + $0x4a0] sm:$0xff] }
 0x1f4   :  { %1945 = vmatpush1.bf16.msra.mxu0 %v1320_v59  ;;  %4977 = vmatprep.mubr.msk.bf16.mxu0 %vm7032_vm2, %v4976_v63  ;;  %v1327_v59 = vld [vmem:[#allocation2 + $0x4b8] sm:$0xff]  ;;  %v900_v63 = vrot.slane %v7023_v36, 7  ;;  %v4991_v19 = vpack.c.bf16 %v9317_v45, %v9316_v37  ;;  %v1328_v50 = vld [vmem:[#allocation2 + $0x4c0] sm:$0xff]  ;;  %v9319_v37 = vrot.slane %v7017_v51, 7 }
 0x1f5   :  { %1946 = vmatprep.subr.bf16.mxu0 %v1323_v35  ;;  %v1326_v35 = vld [vmem:[#allocation2 + $0x4b0] sm:$0xff] }
 0x1f8   :  { %1947 = vmatpush1.bf16.msra.mxu0 %v1322_v4  ;;  %v1329_v4 = vld [vmem:[#allocation2 + $0x4c8] sm:$0xff] }
 0x1f9   :  { %1948 = vmatprep.subr.bf16.mxu0 %v1325_v21  ;;  %v9318_v21 = vrot.slane %v7019_v30, 7 }
 0x1fb   :  { %4982 = vmatmul.mubr.msk.bf16.gmra.mrb[20].mxu0 %vm7032_vm2, %v4981_v52  ;;  %v4996_v52 = vpack.c.bf16 %v900_v63, %v9318_v21  ;;  %v1335_v21 = vld [vmem:[#allocation2 + $0x4f8] sm:$0xff] }
 0x1fc   :  { %1949 = vmatpush1.bf16.msra.mxu0 %v1324_v44  ;;  %4987 = vmatprep.mubr.msk.bf16.mxu0 %vm7032_vm2, %v4986_v12  ;;  %v1331_v44 = vld [vmem:[#allocation2 + $0x4d8] sm:$0xff]  ;;  %v899_v12 = vrot.slane %v7021_v31, 7 }
 0x1fd   :  { %1950 = vmatprep.subr.bf16.mxu0 %v1327_v59  ;;  %v1330_v59 = vld [vmem:[#allocation2 + $0x4d0] sm:$0xff] }
 0x1fe   :  { %v5001_v45 = vpack.c.bf16 %v899_v12, %v9319_v37  ;;  %v1336_v37 = vld [vmem:[#allocation2 + $0x500] sm:$0xff] }
 0x200   :  { %1951 = vmatpush1.bf16.msra.mxu0 %v1326_v35  ;;  %v1333_v35 = vld [vmem:[#allocation2 + $0x4e8] sm:$0xff] }
 0x201   :  { %1952 = vmatprep.subr.bf16.mxu0 %v1329_v4  ;;  %v1133_v4 = vpack.c.bf16 %v6967_v61, %v6963_v25 }
 0x203   :  { %4992 = vmatmul.mubr.msk.bf16.gmra.mrb[24].mxu0 %vm7032_vm2, %v4991_v19  ;;  %v1332_v19 = vld [vmem:[#allocation2 + $0x4e0] sm:$0xff] }
 0x204   :  { %1953 = vmatpush1.bf16.msra.mxu0 %v1328_v50  ;;  %4997 = vmatprep.mubr.msk.bf16.mxu0 %vm7032_vm2, %v4996_v52  ;;  %v1334_v52 = vld [vmem:[#allocation2 + $0x4f0] sm:$0xff]  ;;  %v1337_v50 = vld [vmem:[#allocation2 + $0x508] sm:$0xff] }
 0x205   :  { %1954 = vmatprep.subr.bf16.mxu0 %v1331_v44  ;;  %v1132_v44 = vpack.c.bf16 %v6965_v2, %v6961_v13  ;;  %v1137_v13 = vpack.c.bf16 %v6983_v55, %v6979_v62  ;;  %v1340_v2 = vld [vmem:[#allocation2 + $0x520] sm:$0xff] }
 0x208   :  { %1955 = vmatpush1.bf16.msra.mxu0 %v1330_v59  ;;  %v1135_v59 = vpack.c.bf16 %v6975_v15, %v6971_v9 }
 0x209   :  { %1956 = vmatprep.subr.bf16.mxu0 %v1333_v35  ;;  %v1339_v35 = vld [vmem:[#allocation2 + $0x518] sm:$0xff] }
 0x20b   :  { %5002 = vmatmul.mubr.msk.bf16.gmra.mrb[28].mxu0 %vm7032_vm2, %v5001_v45  ;;  %v1338_v45 = vld [vmem:[#allocation2 + $0x510] sm:$0xff] }
 0x20c   :  { %1957 = vmatpush1.bf16.msra.mxu0 %v1332_v19  ;;  %1960 = vmatprep.mubr.bf16.mxu0 %v1133_v4  ;;  %v1341_v19 = vld [vmem:[#allocation2 + $0x528] sm:$0xff]  ;;  %v1134_v4 = vpack.c.bf16 %v6973_v10, %v6969_v26 }
 0x20d   :  { %1958 = vmatprep.subr.bf16.mxu0 %v1335_v21  ;;  %v1343_v21 = vld [vmem:[#allocation2 + $0x538] sm:$0xff] }
 0x210   :  { %1959 = vmatpush1.bf16.msra.mxu0 %v1334_v52  ;;  %v1342_v52 = vld [vmem:[#allocation2 + $0x530] sm:$0xff] }
 0x211   :  { %2041 = vmatprep.subr.bf16.mxu0 %v1337_v50  ;;  %v1345_v50 = vld [vmem:[#allocation2 + $0x548] sm:$0xff] }
 0x213   :  { %1961 = vmatmul.mubr.bf16.vlgmr.msra.gmra.mrb[0].mxu0 %v1132_v44  ;;  %v1136_v44 = vpack.c.bf16 %v6981_v41, %v6977_v16 }
 0x214   :  { %2042 = vmatpush1.bf16.msra.mxu0 %v1336_v37  ;;  %1970 = vmatprep.mubr.bf16.mxu0 %v1135_v59  ;;  %v1139_v59 = vpack.c.bf16 %v6991_v6, %v6987_v5  ;;  %v1344_v37 = vld [vmem:[#allocation2 + $0x540] sm:$0xff] }
 0x215   :  { %2043 = vmatprep.subr.bf16.mxu0 %v1339_v35  ;;  %v1347_v35 = vld [vmem:[#allocation2 + $0x558] sm:$0xff] }
 0x218   :  { %2044 = vmatpush1.bf16.msra.mxu0 %v1338_v45  ;;  %v1346_v45 = vld [vmem:[#allocation2 + $0x550] sm:$0xff] }
 0x219   :  { %2045 = vmatprep.subr.bf16.mxu0 %v1341_v19  ;;  %v1349_v19 = vld [vmem:[#allocation2 + $0x568] sm:$0xff] }
 0x21b   :  { %1971 = vmatmul.mubr.bf16.gmra.mrb[4].mxu0 %v1134_v4  ;;  %v1138_v4 = vpack.c.bf16 %v6989_v53, %v6985_v57 }
 0x21c   :  { %2046 = vmatpush1.bf16.msra.mxu0 %v1340_v2  ;;  %1980 = vmatprep.mubr.bf16.mxu0 %v1137_v13  ;;  %v1141_v13 = vpack.c.bf16 %v6999_v58, %v6995_v17  ;;  %v1348_v2 = vld [vmem:[#allocation2 + $0x560] sm:$0xff] }
 0x21d   :  { %2047 = vmatprep.subr.bf16.mxu0 %v1343_v21  ;;  %v1351_v21 = vld [vmem:[#allocation2 + $0x578] sm:$0xff] }
 0x220   :  { %2048 = vmatpush1.bf16.msra.mxu0 %v1342_v52  ;;  %v1350_v52 = vld [vmem:[#allocation2 + $0x570] sm:$0xff] }
 0x221   :  { %2049 = vmatprep.subr.bf16.mxu0 %v1345_v50  ;;  %v1353_v50 = vld [vmem:[#allocation2 + $0x588] sm:$0xff] }
 0x223   :  { %1981 = vmatmul.mubr.bf16.gmra.mrb[8].mxu0 %v1136_v44  ;;  %v1140_v44 = vpack.c.bf16 %v6997_v42, %v6993_v56 }
 0x224   :  { %2050 = vmatpush1.bf16.msra.mxu0 %v1344_v37  ;;  %1990 = vmatprep.mubr.bf16.mxu0 %v1139_v59  ;;  %v1143_v59 = vpack.c.bf16 %v7007_v28, %v7003_v18  ;;  %v1352_v37 = vld [vmem:[#allocation2 + $0x580] sm:$0xff] }
 0x225   :  { %2051 = vmatprep.subr.bf16.mxu0 %v1347_v35  ;;  %v1355_v35 = vld [vmem:[#allocation2 + $0x598] sm:$0xff] }
 0x228   :  { %2052 = vmatpush1.bf16.msra.mxu0 %v1346_v45  ;;  %v1354_v45 = vld [vmem:[#allocation2 + $0x590] sm:$0xff] }
 0x229   :  { %2053 = vmatprep.subr.bf16.mxu0 %v1349_v19  ;;  %v1357_v19 = vld [vmem:[#allocation2 + $0x5a8] sm:$0xff] }
 0x22b   :  { %1991 = vmatmul.mubr.bf16.gmra.mrb[12].mxu0 %v1138_v4  ;;  %v1142_v4 = vpack.c.bf16 %v7005_v33, %v7001_v54 }
 0x22c   :  { %2054 = vmatpush1.bf16.msra.mxu0 %v1348_v2  ;;  %2000 = vmatprep.mubr.bf16.mxu0 %v1141_v13  ;;  %v1145_v13 = vpack.c.bf16 %v7015_v23, %v7011_v39  ;;  %v1356_v2 = vld [vmem:[#allocation2 + $0x5a0] sm:$0xff] }
 0x22d   :  { %2055 = vmatprep.subr.bf16.mxu0 %v1351_v21  ;;  %v1359_v21 = vld [vmem:[#allocation2 + $0x5b8] sm:$0xff] }
 0x230   :  { %2056 = vmatpush1.bf16.msra.mxu0 %v1350_v52  ;;  %v1358_v52 = vld [vmem:[#allocation2 + $0x5b0] sm:$0xff] }
 0x231   :  { %2057 = vmatprep.subr.bf16.mxu0 %v1353_v50  ;;  %v1361_v50 = vld [vmem:[#allocation2 + $0x5c8] sm:$0xff] }
 0x233   :  { %2001 = vmatmul.mubr.bf16.gmra.mrb[16].mxu0 %v1140_v44  ;;  %v1144_v44 = vpack.c.bf16 %v7013_v40, %v7009_v29 }
 0x234   :  { %2058 = vmatpush1.bf16.msra.mxu0 %v1352_v37  ;;  %2010 = vmatprep.mubr.bf16.mxu0 %v1143_v59  ;;  %v1147_v59 = vpack.c.bf16 %v7023_v36, %v7019_v30  ;;  %v1360_v37 = vld [vmem:[#allocation2 + $0x5c0] sm:$0xff] }
 0x235   :  { %2059 = vmatprep.subr.bf16.mxu0 %v1355_v35  ;;  %v1363_v35 = vld [vmem:[#allocation2 + $0x5d8] sm:$0xff] }
 0x238   :  { %2060 = vmatpush1.bf16.msra.mxu0 %v1354_v45  ;;  %v1362_v45 = vld [vmem:[#allocation2 + $0x5d0] sm:$0xff] }
 0x239   :  { %2061 = vmatprep.subr.bf16.mxu0 %v1357_v19  ;;  %v1365_v19 = vld [vmem:[#allocation2 + $0x5e8] sm:$0xff] }
 0x23b   :  { %2011 = vmatmul.mubr.bf16.gmra.mrb[20].mxu0 %v1142_v4  ;;  %v1146_v4 = vpack.c.bf16 %v7021_v31, %v7017_v51 }
 0x23c   :  { %2062 = vmatpush1.bf16.msra.mxu0 %v1356_v2  ;;  %2020 = vmatprep.mubr.bf16.mxu0 %v1145_v13  ;;  %v9320_v13 = vrot.slane %v6963_v25, 1  ;;  %v9321_v2 = vrot.slane %v6967_v61, 1  ;;  %v1368_v61 = vld [vmem:[#allocation2 + $0x600] sm:$0xff] }
 0x23d   :  { %2063 = vmatprep.subr.bf16.mxu0 %v1359_v21 }
 0x23e   :  { %v5004_v21 = vpack.c.bf16 %v9321_v2, %v9320_v13  ;;  %v9324_v13 = vrot.slane %v6969_v26, 1  ;;  %v9326_v2 = vrot.slane %v6979_v62, 1  ;;  %v984_v26 = vrot.slane %v6991_v6, 1 }
 0x23f   :  { %v9328_v62 = vrot.slane %v6977_v16, 1  ;;  %v1378_v16 = vld [vmem:[#allocation2 + $0x650] sm:$0xff] }
 0x240   :  { %2064 = vmatpush1.bf16.msra.mxu0 %v1358_v52  ;;  %v1364_v52 = vld [vmem:[#allocation2 + $0x5e0] sm:$0xff] }
 0x241   :  { %2065 = vmatprep.subr.bf16.mxu0 %v1361_v50  ;;  %v1367_v50 = vld [vmem:[#allocation2 + $0x5f8] sm:$0xff] }
 0x243   :  { %2021 = vmatmul.mubr.bf16.gmra.mrb[24].mxu0 %v1144_v44  ;;  %v1366_v44 = vld [vmem:[#allocation2 + $0x5f0] sm:$0xff] }
 0x244   :  { %2066 = vmatpush1.bf16.msra.mxu0 %v1360_v37  ;;  %2030 = vmatprep.mubr.bf16.mxu0 %v1147_v59  ;;  %v1369_v59 = vld [vmem:[#allocation2 + $0x608] sm:$0xff]  ;;  %v9322_v37 = vrot.slane %v6971_v9, 1  ;;  %v9325_v9 = vrot.slane %v6973_v10, 1  ;;  %v1374_v10 = vld [vmem:[#allocation2 + $0x630] sm:$0xff] }
 0x245   :  { %2067 = vmatprep.subr.bf16.mxu0 %v1363_v35  ;;  %v9323_v35 = vrot.slane %v6975_v15, 1 }
 0x246   :  { %v5013_v15 = vpack.c.bf16 %v9325_v9, %v9324_v13  ;;  %v9333_v13 = vrot.slane %v6999_v58, 1  ;;  %v9336_v58 = vrot.slane %v7003_v18, 1  ;;  %v9339_v18 = vrot.slane %v7005_v33, 1  ;;  %v1390_v33 = vld [vmem:[#allocation2 + $0x6b0] sm:$0xff] }
 0x247   :  { %v5010_v25 = vpack.c.bf16 %v9323_v35, %v9322_v37  ;;  %v9330_v37 = vrot.slane %v6987_v5, 1  ;;  %v9331_v5 = vrot.slane %v6985_v57, 1  ;;  %v1382_v57 = vld [vmem:[#allocation2 + $0x670] sm:$0xff] }
 0x248   :  { %2068 = vmatpush1.bf16.msra.mxu0 %v1362_v45  ;;  %v1371_v45 = vld [vmem:[#allocation2 + $0x618] sm:$0xff] }
 0x249   :  { %2069 = vmatprep.subr.bf16.mxu0 %v1365_v19  ;;  %v1370_v19 = vld [vmem:[#allocation2 + $0x610] sm:$0xff]  ;;  %v5022_v35 = vpack.c.bf16 %v984_v26, %v9330_v37  ;;  %v9341_v37 = vrot.slane %v7015_v23, 1  ;;  %v9343_v23 = vrot.slane %v7013_v40, 1  ;;  %v1397_v40 = vld [vmem:[#allocation2 + $0x6e8] sm:$0xff] }
 0x24b   :  { %2031 = vmatmul.mubr.bf16.gmra.mrb[28].mxu0 %v1146_v4  ;;  %v1373_v4 = vld [vmem:[#allocation2 + $0x628] sm:$0xff] }
 0x24c   :  { %2070 = vmatpush1.bf16.msra.mxu0 %v1364_v52  ;;  %5005 = vmatprep.mubr.msk.bf16.mxu0 %vm7278_vm4, %v5004_v21  ;;  %v9327_v21 = vrot.slane %v6983_v55, 1  ;;  %v9329_v55 = vrot.slane %v6981_v41, 1  ;;  %v1381_v41 = vld [vmem:[#allocation2 + $0x668] sm:$0xff] }
 0x24d   :  { %2071 = vmatprep.subr.bf16.mxu0 %v1367_v50  ;;  %v1375_v50 = vld [vmem:[#allocation2 + $0x638] sm:$0xff] }
 0x24e   :  { %v5016_v52 = vpack.c.bf16 %v9327_v21, %v9326_v2  ;;  %v1383_v2 = vld [vmem:[#allocation2 + $0x678] sm:$0xff]  ;;  %v1385_v21 = vld [vmem:[#allocation2 + $0x688] sm:$0xff] }
 0x250   :  { %2072 = vmatpush1.bf16.msra.mxu0 %v1366_v44  ;;  %v1377_v44 = vld [vmem:[#allocation2 + $0x648] sm:$0xff] }
 0x251   :  { %2154 = vmatprep.subr.bf16.mxu0 %v1369_v59  ;;  %v5019_v59 = vpack.c.bf16 %v9329_v55, %v9328_v62  ;;  %v1387_v62 = vld [vmem:[#allocation2 + $0x698] sm:$0xff]  ;;  %v9338_v55 = vrot.slane %v7001_v54, 1  ;;  %v1000_v54 = vrot.slane %v7023_v36, 1 }
 0x253   :  { %5008 = vmatmul.mubr.msk.bf16.vlgmr.msra.gmra.mrb[0].mxu0 %vm7278_vm4, %v7090_v1  ;;  %v1372_v1 = vld [vmem:[#allocation2 + $0x620] sm:$0xff] }
 0x254   :  { %2155 = vmatpush1.bf16.msra.mxu0 %v1368_v61  ;;  %5011 = vmatprep.mubr.msk.bf16.mxu0 %vm7278_vm4, %v5010_v25  ;;  %v1376_v25 = vld [vmem:[#allocation2 + $0x640] sm:$0xff]  ;;  %v1379_v61 = vld [vmem:[#allocation2 + $0x658] sm:$0xff] }
 0x255   :  { %2156 = vmatprep.subr.bf16.mxu0 %v1371_v45  ;;  %v983_v45 = vrot.slane %v6989_v53, 1 }
 0x258   :  { %2157 = vmatpush1.bf16.msra.mxu0 %v1370_v19  ;;  %v5025_v19 = vpack.c.bf16 %v983_v45, %v9331_v5  ;;  %v9344_v5 = vrot.slane %v7019_v30, 1  ;;  %v9345_v30 = vrot.slane %v7017_v51, 1  ;;  %v1400_v51 = vld [vmem:[#allocation2 + $0x700] sm:$0xff] }
 0x259   :  { %2158 = vmatprep.subr.bf16.mxu0 %v1373_v4  ;;  %v9332_v4 = vrot.slane %v6995_v17, 1  ;;  %v9335_v17 = vrot.slane %v6997_v42, 1  ;;  %v1389_v42 = vld [vmem:[#allocation2 + $0x6a8] sm:$0xff] }
 0x25b   :  { %5014 = vmatmul.mubr.msk.bf16.gmra.mrb[4].mxu0 %vm7278_vm4, %v5013_v15  ;;  %v5028_v9 = vpack.c.bf16 %v9333_v13, %v9332_v4  ;;  %v1380_v15 = vld [vmem:[#allocation2 + $0x660] sm:$0xff]  ;;  %v1395_v13 = vld [vmem:[#allocation2 + $0x6d8] sm:$0xff] }
 0x25c   :  { %2159 = vmatpush1.bf16.msra.mxu0 %v1372_v1  ;;  %5017 = vmatprep.mubr.msk.bf16.mxu0 %vm7278_vm4, %v5016_v52  ;;  %v9334_v52 = vrot.slane %v6993_v56, 1  ;;  %v1386_v56 = vld [vmem:[#allocation2 + $0x690] sm:$0xff]  ;;  %v1392_v4 = vld [vmem:[#allocation2 + $0x6c0] sm:$0xff] }
 0x25d   :  { %2160 = vmatprep.subr.bf16.mxu0 %v1375_v50  ;;  %v9337_v50 = vrot.slane %v7007_v28, 1  ;;  %v9340_v28 = vrot.slane %v7011_v39, 1  ;;  %v9342_v39 = vrot.slane %v7009_v29, 1  ;;  %v1394_v29 = vld [vmem:[#allocation2 + $0x6d0] sm:$0xff] }
 0x25e   :  { %v5031_v1 = vpack.c.bf16 %v9335_v17, %v9334_v52  ;;  %v1401_v52 = vld [vmem:[#allocation2 + $0x708] sm:$0xff]  ;;  %v1403_v17 = vld [vmem:[#allocation2 + $0x718] sm:$0xff] }
 0x260   :  { %2161 = vmatpush1.bf16.msra.mxu0 %v1374_v10  ;;  %v5034_v10 = vpack.c.bf16 %v9337_v50, %v9336_v58  ;;  %v1405_v58 = vld [vmem:[#allocation2 + $0x728] sm:$0xff]  ;;  %v1407_v50 = vld [vmem:[#allocation2 + $0x738] sm:$0xff] }
 0x261   :  { %2162 = vmatprep.subr.bf16.mxu0 %v1377_v44  ;;  %v1384_v44 = vld [vmem:[#allocation2 + $0x680] sm:$0xff] }
 0x263   :  { %5020 = vmatmul.mubr.msk.bf16.gmra.mrb[8].mxu0 %vm7278_vm4, %v5019_v59  ;;  %v5037_v59 = vpack.c.bf16 %v9339_v18, %v9338_v55  ;;  %v1412_v18 = vld [vmem:[#allocation2 + $0x760] sm:$0xff] }
 0x264   :  { %2163 = vmatpush1.bf16.msra.mxu0 %v1376_v25  ;;  %5023 = vmatprep.mubr.msk.bf16.mxu0 %vm7278_vm4, %v5022_v35  ;;  %v5040_v35 = vpack.c.bf16 %v9341_v37, %v9340_v28  ;;  %v1388_v25 = vld [vmem:[#allocation2 + $0x6a0] sm:$0xff]  ;;  %v1417_v28 = vld [vmem:[#allocation2 + $0x788] sm:$0xff] }
 0x265   :  { %2164 = vmatprep.subr.bf16.mxu0 %v1379_v61  ;;  %v1391_v61 = vld [vmem:[#allocation2 + $0x6b8] sm:$0xff]  ;;  %v1416_v37 = vld [vmem:[#allocation2 + $0x780] sm:$0xff] }
 0x268   :  { %2165 = vmatpush1.bf16.msra.mxu0 %v1378_v16  ;;  %v1393_v16 = vld [vmem:[#allocation2 + $0x6c8] sm:$0xff] }
 0x269   :  { %2166 = vmatprep.subr.bf16.mxu0 %v1381_v41  ;;  %v5043_v41 = vpack.c.bf16 %v9343_v23, %v9342_v39  ;;  %v1424_v39 = vld [vmem:[#allocation2 + $0x7c0] sm:$0xff]  ;;  %v1427_v23 = vld [vmem:[#allocation2 + $0x7d8] sm:$0xff] }
 0x26b   :  { %5026 = vmatmul.mubr.msk.bf16.gmra.mrb[12].mxu0 %vm7278_vm4, %v5025_v19  ;;  %v5046_v19 = vpack.c.bf16 %v1000_v54, %v9344_v5  ;;  %v1431_v5 = vld [vmem:[#allocation2 + $0x7f8] sm:$0xff] }
 0x26c   :  { %2167 = vmatpush1.bf16.msra.mxu0 %v1380_v15  ;;  %5029 = vmatprep.mubr.msk.bf16.mxu0 %vm7278_vm4, %v5028_v9  ;;  %v999_v9 = vrot.slane %v7021_v31, 1 }
 0x26d   :  { %2168 = vmatprep.subr.bf16.mxu0 %v1383_v2  ;;  %v1396_v2 = vld [vmem:[#allocation2 + $0x6e0] sm:$0xff] }
 0x26e   :  { %v5049_v15 = vpack.c.bf16 %v999_v9, %v9345_v30  ;;  %v1437_v30 = vld [vmem:[#allocation2 + $0x828] sm:$0xff] }
 0x270   :  { %2169 = vmatpush1.bf16.msra.mxu0 %v1382_v57  ;;  %v1399_v57 = vld [vmem:[#allocation2 + $0x6f8] sm:$0xff] }
 0x271   :  { %2170 = vmatprep.subr.bf16.mxu0 %v1385_v21  ;;  %v1398_v21 = vld [vmem:[#allocation2 + $0x6f0] sm:$0xff] }
 0x273   :  { %5032 = vmatmul.mubr.msk.bf16.gmra.mrb[16].mxu0 %vm7278_vm4, %v5031_v1  ;;  %v1402_v1 = vld [vmem:[#allocation2 + $0x710] sm:$0xff] }
 0x274   :  { %2171 = vmatpush1.bf16.msra.mxu0 %v1384_v44  ;;  %5035 = vmatprep.mubr.msk.bf16.mxu0 %vm7278_vm4, %v5034_v10  ;;  %v1409_v10 = vld [vmem:[#allocation2 + $0x748] sm:$0xff] }
 0x275   :  { %2172 = vmatprep.subr.bf16.mxu0 %v1387_v62  ;;  %v1408_v62 = vld [vmem:[#allocation2 + $0x740] sm:$0xff] }
 0x278   :  { %2173 = vmatpush1.bf16.msra.mxu0 %v1386_v56  ;;  %v1411_v56 = vld [vmem:[#allocation2 + $0x758] sm:$0xff] }
 0x279   :  { %2174 = vmatprep.subr.bf16.mxu0 %v1389_v42  ;;  %v9347_v42 = vrot.slane %v6989_v53, 7 }
 0x27b   :  { %5038 = vmatmul.mubr.msk.bf16.gmra.mrb[20].mxu0 %vm7278_vm4, %v5037_v59  ;;  %v5089_v55 = vpack.c.bf16 %v7028_v22, %v9347_v42  ;;  %v1415_v59 = vld [vmem:[#allocation2 + $0x778] sm:$0xff] }
 0x27c   :  { %2175 = vmatpush1.bf16.msra.mxu0 %v1388_v25  ;;  %5041 = vmatprep.mubr.msk.bf16.mxu0 %vm7278_vm4, %v5040_v35  ;;  %v1419_v35 = vld [vmem:[#allocation2 + $0x798] sm:$0xff]  ;;  %v1418_v25 = vld [vmem:[#allocation2 + $0x790] sm:$0xff] }
 0x27d   :  { %2176 = vmatprep.subr.bf16.mxu0 %v1391_v61  ;;  %v1421_v61 = vld [vmem:[#allocation2 + $0x7a8] sm:$0xff]  ;;  %v1451_v42 = vld [vmem:[#allocation2 + $0x898] sm:$0xff] }
 0x280   :  { %2177 = vmatpush1.bf16.msra.mxu0 %v1390_v33  ;;  %v1423_v33 = vld [vmem:[#allocation2 + $0x7b8] sm:$0xff] }
 0x281   :  { %2178 = vmatprep.subr.bf16.mxu0 %v1393_v16  ;;  %v1425_v16 = vld [vmem:[#allocation2 + $0x7c8] sm:$0xff] }
 0x283   :  { %5044 = vmatmul.mubr.msk.bf16.gmra.mrb[24].mxu0 %vm7278_vm4, %v5043_v41  ;;  %v5129_v41 = vpack.c.bf16 %v7028_v22, %v899_v12  ;;  %v9349_v12 = vld [vmem:[#allocation62_spill] sm:$0xff] }
 0x284   :  { %2179 = vmatpush1.bf16.msra.mxu0 %v1392_v4  ;;  %5047 = vmatprep.mubr.msk.bf16.mxu0 %vm7278_vm4, %v5046_v19  ;;  %v1433_v19 = vld [vmem:[#allocation2 + $0x808] sm:$0xff]  ;;  %v1432_v4 = vld [vmem:[#allocation2 + $0x800] sm:$0xff] }
 0x285   :  { %2180 = vmatprep.subr.bf16.mxu0 %v1395_v13  ;;  %v1435_v13 = vld [vmem:[#allocation2 + $0x818] sm:$0xff] }
 0x288   :  { %2181 = vmatpush1.bf16.msra.mxu0 %v1394_v29  ;;  %v9348_v29 = vld [vmem:[#allocation61_spill] sm:$0xff] }
 0x289   :  { %2182 = vmatprep.subr.bf16.mxu0 %v1397_v40  ;;  %v1434_v40 = vld [vmem:[#allocation2 + $0x810] sm:$0xff] }
 0x28b   :  { %5050 = vmatmul.mubr.msk.bf16.gmra.mrb[28].mxu0 %vm7278_vm4, %v5049_v15  ;;  %v1436_v15 = vld [vmem:[#allocation2 + $0x820] sm:$0xff] }
 0x28c   :  { %2183 = vmatpush1.bf16.msra.mxu0 %v1396_v2  ;;  %5055 = vmatprep.mubr.msk.bf16.mxu0 %vm7032_vm2, %v7057_v43  ;;  %v1404_v43 = vld [vmem:[#allocation2 + $0x720] sm:$0xff]  ;;  %v1439_v2 = vld [vmem:[#allocation2 + $0x838] sm:$0xff] }
 0x28d   :  { %2184 = vmatprep.subr.bf16.mxu0 %v1399_v57  ;;  %v9351_v57 = vld [vmem:[#allocation64_spill] sm:$0xff] }
 0x290   :  { %2185 = vmatpush1.bf16.msra.mxu0 %v1398_v21  ;;  %v1438_v21 = vld [vmem:[#allocation2 + $0x830] sm:$0xff] }
 0x291   :  { %2267 = vmatprep.subr.bf16.mxu0 %v1401_v52  ;;  %v1441_v52 = vld [vmem:[#allocation2 + $0x848] sm:$0xff] }
 0x293   :  { %5060 = vmatmul.mubr.msk.bf16.vlgmr.msra.gmra.mrb[0].mxu0 %vm7032_vm2, %v7071_v32  ;;  %v1406_v32 = vld [vmem:[#allocation2 + $0x730] sm:$0xff] }
 0x294   :  { %2268 = vmatpush1.bf16.msra.mxu0 %v1400_v51  ;;  %5065 = vmatprep.mubr.msk.bf16.mxu0 %vm7032_vm2, %v7077_v27  ;;  %v9346_v27 = vrot.slane %v6991_v6, 7  ;;  %v9352_v51 = vmov 0.0  }
 0x295   :  { %2269 = vmatprep.subr.bf16.mxu0 %v1403_v17  ;;  %v1169_v17 = vpack.c.bf16 %v9352_v51, %v6991_v6  ;;  %v9367_v6 = vld [vmem:[#allocation80_spill] sm:$0xff] }
 0x296   :  { %v5084_v44 = vpack.c.bf16 %v7028_v22, %v9346_v27  ;;  %v1444_v27 = vld [vmem:[#allocation2 + $0x860] sm:$0xff] }
 0x298   :  { %2270 = vmatpush1.bf16.msra.mxu0 %v1402_v1  ;;  %v1440_v1 = vld [vmem:[#allocation2 + $0x840] sm:$0xff] }
 0x299   :  { %2271 = vmatprep.subr.bf16.mxu0 %v1405_v58  ;;  %v1443_v58 = vld [vmem:[#allocation2 + $0x858] sm:$0xff] }
 0x29b   :  { %5070 = vmatmul.mubr.msk.bf16.gmra.mrb[4].mxu0 %vm7032_vm2, %v7101_v8  ;;  %v1410_v8 = vld [vmem:[#allocation2 + $0x750] sm:$0xff] }
 0x29c   :  { %2272 = vmatpush1.bf16.msra.mxu0 %v1404_v43  ;;  %5075 = vmatprep.mubr.msk.bf16.mxu0 %vm7032_vm2, %v7107_v0  ;;  %v1413_v0 = vld [vmem:[#allocation2 + $0x768] sm:$0xff] }
 0x29d   :  { %2273 = vmatprep.subr.bf16.mxu0 %v1407_v50  ;;  %v9353_v43 = vld [vmem:[#allocation65_spill] sm:$0xff] }
 0x29e   :  { %v1442_v50 = vld [vmem:[#allocation2 + $0x850] sm:$0xff] }
 0x2a0   :  { %2274 = vmatpush1.bf16.msra.mxu0 %v1406_v32  ;;  %v1445_v32 = vld [vmem:[#allocation2 + $0x868] sm:$0xff] }
 0x2a1   :  { %2275 = vmatprep.subr.bf16.mxu0 %v1409_v10  ;;  %v1168_v10 = vpack.c.bf16 %v9352_v51, %v6989_v53 }
 0x2a3   :  { %5080 = vmatmul.mubr.msk.bf16.gmra.mrb[8].mxu0 %vm7032_vm2, %v7122_v20  ;;  %v1414_v20 = vld [vmem:[#allocation2 + $0x770] sm:$0xff] }
 0x2a4   :  { %2276 = vmatpush1.bf16.msra.mxu0 %v1408_v62  ;;  %5085 = vmatprep.mubr.msk.bf16.mxu0 %vm7032_vm2, %v5084_v44  ;;  %v1447_v44 = vld [vmem:[#allocation2 + $0x878] sm:$0xff] }
 0x2a5   :  { %2277 = vmatprep.subr.bf16.mxu0 %v1411_v56  ;;  %v9354_v62 = vld [vmem:[#allocation66_spill] sm:$0xff] }
 0x2a6   :  { %v1446_v56 = vld [vmem:[#allocation2 + $0x870] sm:$0xff] }
 0x2a8   :  { %2278 = vmatpush1.bf16.msra.mxu0 %v1410_v8  ;;  %v1449_v8 = vld [vmem:[#allocation2 + $0x888] sm:$0xff] }
 0x2a9   :  { %2279 = vmatprep.subr.bf16.mxu0 %v1413_v0  ;;  %v1448_v0 = vld [vmem:[#allocation2 + $0x880] sm:$0xff] }
 0x2ab   :  { %5090 = vmatmul.mubr.msk.bf16.gmra.mrb[12].mxu0 %vm7032_vm2, %v5089_v55  ;;  %v9355_v55 = vld [vmem:[#allocation67_spill] sm:$0xff] }
 0x2ac   :  { %2280 = vmatpush1.bf16.msra.mxu0 %v1412_v18  ;;  %5095 = vmatprep.mubr.msk.bf16.mxu0 %vm7032_vm2, %v7142_v38  ;;  %v1420_v38 = vld [vmem:[#allocation2 + $0x7a0] sm:$0xff] }
 0x2ad   :  { %2281 = vmatprep.subr.bf16.mxu0 %v1415_v59  ;;  %v9356_v18 = vld [vmem:[#allocation68_spill] sm:$0xff]  ;;  %v1450_v59 = vld [vmem:[#allocation2 + $0x890] sm:$0xff] }
 0x2b0   :  { %2282 = vmatpush1.bf16.msra.mxu0 %v1414_v20  ;;  %v1453_v20 = vld [vmem:[#allocation2 + $0x8a8] sm:$0xff] }
 0x2b1   :  { %2283 = vmatprep.subr.bf16.mxu0 %v1417_v28  ;;  %v1452_v28 = vld [vmem:[#allocation2 + $0x8a0] sm:$0xff] }
 0x2b3   :  { %5100 = vmatmul.mubr.msk.bf16.gmra.mrb[16].mxu0 %vm7032_vm2, %v7157_v7  ;;  %v1422_v7 = vld [vmem:[#allocation2 + $0x7b0] sm:$0xff] }
 0x2b4   :  { %2284 = vmatpush1.bf16.msra.mxu0 %v1416_v37  ;;  %5105 = vmatprep.mubr.msk.bf16.mxu0 %vm7032_vm2, %v7163_v47  ;;  %v5124_v47 = vpack.c.bf16 %v7028_v22, %v900_v63  ;;  %v1428_v63 = vld [vmem:[#allocation2 + $0x7e0] sm:$0xff]  ;;  %v1455_v37 = vld [vmem:[#allocation2 + $0x8b8] sm:$0xff] }
 0x2b5   :  { %2285 = vmatprep.subr.bf16.mxu0 %v1419_v35  ;;  %v9357_v35 = vld [vmem:[#allocation69_spill] sm:$0xff] }
 0x2b8   :  { %2286 = vmatpush1.bf16.msra.mxu0 %v1418_v25  ;;  %v9358_v25 = vld [vmem:[#allocation70_spill] sm:$0xff] }
 0x2b9   :  { %2287 = vmatprep.subr.bf16.mxu0 %v1421_v61  ;;  %v1454_v61 = vld [vmem:[#allocation2 + $0x8b0] sm:$0xff] }
 0x2bb   :  { %5110 = vmatmul.mubr.msk.bf16.gmra.mrb[20].mxu0 %vm7032_vm2, %v7179_v48  ;;  %v1426_v48 = vld [vmem:[#allocation2 + $0x7d0] sm:$0xff] }
 0x2bc   :  { %2288 = vmatpush1.bf16.msra.mxu0 %v1420_v38  ;;  %5115 = vmatprep.mubr.msk.bf16.mxu0 %vm7032_vm2, %v7185_v14  ;;  %v1429_v14 = vld [vmem:[#allocation2 + $0x7e8] sm:$0xff] }
 0x2bd   :  { %2289 = vmatprep.subr.bf16.mxu0 %v1423_v33  ;;  %v1457_v38 = vld [vmem:[#allocation2 + $0x8c8] sm:$0xff]  ;;  %v1171_v33 = vpack.c.bf16 %v9352_v51, %v7023_v36 }
 0x2c0   :  { %2290 = vmatpush1.bf16.msra.mxu0 %v1422_v7  ;;  %v1456_v7 = vld [vmem:[#allocation2 + $0x8c0] sm:$0xff] }
 0x2c1   :  { %2291 = vmatprep.subr.bf16.mxu0 %v1425_v16  ;;  %v1459_v16 = vld [vmem:[#allocation2 + $0x8d8] sm:$0xff] }
 0x2c3   :  { %5120 = vmatmul.mubr.msk.bf16.gmra.mrb[24].mxu0 %vm7032_vm2, %v7199_v60  ;;  %v1430_v60 = vld [vmem:[#allocation2 + $0x7f0] sm:$0xff] }
 0x2c4   :  { %2292 = vmatpush1.bf16.msra.mxu0 %v1424_v39  ;;  %5125 = vmatprep.mubr.msk.bf16.mxu0 %vm7032_vm2, %v5124_v47  ;;  %v9359_v47 = vld [vmem:[#allocation72_spill] sm:$0xff]  ;;  %v1458_v39 = vld [vmem:[#allocation2 + $0x8d0] sm:$0xff] }
 0x2c5   :  { %2293 = vmatprep.subr.bf16.mxu0 %v1427_v23  ;;  %v1461_v23 = vld [vmem:[#allocation2 + $0x8e8] sm:$0xff] }
 0x2c8   :  { %2294 = vmatpush1.bf16.msra.mxu0 %v1426_v48  ;;  %v1170_v48 = vpack.c.bf16 %v9352_v51, %v7021_v31 }
 0x2c9   :  { %2295 = vmatprep.subr.bf16.mxu0 %v1429_v14  ;;  %v1460_v14 = vld [vmem:[#allocation2 + $0x8e0] sm:$0xff] }
 0x2cb   :  { %5130 = vmatmul.mubr.msk.bf16.gmra.mrb[28].mxu0 %vm7032_vm2, %v5129_v41  ;;  %v1463_v41 = vld [vmem:[#allocation2 + $0x8f8] sm:$0xff] }
 0x2cc   :  { %2296 = vmatpush1.bf16.msra.mxu0 %v1428_v63  ;;  %2299 = vmatprep.mubr.bf16.mxu0 %v7210_v46  ;;  %v9350_v46 = vld [vmem:[#allocation63_spill] sm:$0xff]  ;;  %v9360_v63 = vld [vmem:[#allocation74_spill] sm:$0xff] }
 0x2cd   :  { %2297 = vmatprep.subr.bf16.mxu0 %v1431_v5  ;;  %v1462_v5 = vld [vmem:[#allocation2 + $0x8f0] sm:$0xff] }
 0x2d0   :  { %2298 = vmatpush1.bf16.msra.mxu0 %v1430_v60  ;;  %v9361_v60 = vld [vmem:[#allocation75_spill] sm:$0xff] }
 0x2d1   :  { %2380 = vmatprep.subr.bf16.mxu0 %v1433_v19  ;;  %v9362_v19 = vld [vmem:[#allocation76_spill] sm:$0xff] }
 0x2d3   :  { %2300 = vmatmul.mubr.bf16.vlgmr.msra.gmra.mrb[0].mxu0 %v9348_v29 }
 0x2d4   :  { %2381 = vmatpush1.bf16.msra.mxu0 %v1432_v4  ;;  %2309 = vmatprep.mubr.bf16.mxu0 %v9349_v12  ;;  %v9363_v4 = vld [vmem:[#allocation77_spill] sm:$0xff]  ;;  %v9365_v12 = vld [vmem:[#allocation78_spill] sm:$0xff] }
 0x2d5   :  { %2382 = vmatprep.subr.bf16.mxu0 %v1435_v13  ;;  %v9364_v13 = vld [vmem:[#allocation71_spill] sm:$0xff] }
 0x2d6   :  { %v5150_v29 = vpack.c.bf16 %v9364_v13, %v984_v26  ;;  %v9368_v26 = vld [vmem:[#allocation81_spill] sm:$0xff]  ;;  %v5174_v53 = vpack.c.bf16 %v9364_v13, %v1000_v54 }
 0x2d8   :  { %2383 = vmatpush1.bf16.msra.mxu0 %v1434_v40  ;;  %v5153_v40 = vpack.c.bf16 %v9364_v13, %v983_v45  ;;  %v9369_v45 = vld [vmem:[#allocation82_spill] sm:$0xff] }
 0x2d9   :  { %2384 = vmatprep.subr.bf16.mxu0 %v1437_v30  ;;  %v5177_v30 = vpack.c.bf16 %v9364_v13, %v999_v9 }
 0x2db   :  { %2310 = vmatmul.mubr.bf16.gmra.mrb[4].mxu0 %v9350_v46  ;;  %v9370_v46 = vld [vmem:[#allocation59_spill] sm:$0xff] }
 0x2dc   :  { %2385 = vmatpush1.bf16.msra.mxu0 %v1436_v15  ;;  %2319 = vmatprep.mubr.bf16.mxu0 %v9351_v57 }
 0x2dd   :  { %2386 = vmatprep.subr.bf16.mxu0 %v1439_v2  ;;  %v1464_v2 = vld [vmem:[#allocation6] sm:$0x3] }
 0x2de   :  { %v7789_v57 = vrot.slane %v1464_v2, %v9370_v46 }
 0x2e0   :  { %2387 = vmatpush1.bf16.msra.mxu0 %v1438_v21 }
 0x2e1   :  { %2388 = vmatprep.subr.bf16.mxu0 %v1441_v52  ;;  %v9371_v52 = vld [vmem:[#allocation60_spill] sm:$0xff] }
 0x2e3   :  { %2320 = vmatmul.mubr.bf16.gmra.mrb[8].mxu0 %v9353_v43 }
 0x2e4   :  { %2389 = vmatpush1.bf16.msra.mxu0 %v1440_v1  ;;  %2329 = vmatprep.mubr.bf16.mxu0 %v1169_v17  ;;  %v7792_v17 = vrot.slane %v1464_v2, %v9371_v52 }
 0x2e5   :  { %2390 = vmatprep.subr.bf16.mxu0 %v1443_v58 }
 0x2e8   :  { %2391 = vmatpush1.bf16.msra.mxu0 %v1442_v50 }
 0x2e9   :  { %2392 = vmatprep.subr.bf16.mxu0 %v1445_v32 }
 0x2eb   :  { %2330 = vmatmul.mubr.bf16.gmra.mrb[12].mxu0 %v1168_v10 }
 0x2ec   :  { %2393 = vmatpush1.bf16.msra.mxu0 %v1444_v27  ;;  %2339 = vmatprep.mubr.bf16.mxu0 %v9354_v62 }
 0x2ed   :  { %2394 = vmatprep.subr.bf16.mxu0 %v1447_v44 }
 0x2f0   :  { %2395 = vmatpush1.bf16.msra.mxu0 %v1446_v56 }
 0x2f1   :  { %2396 = vmatprep.subr.bf16.mxu0 %v1449_v8 }
 0x2f3   :  { %2340 = vmatmul.mubr.bf16.gmra.mrb[16].mxu0 %v9355_v55 }
 0x2f4   :  { %2397 = vmatpush1.bf16.msra.mxu0 %v1448_v0  ;;  %2349 = vmatprep.mubr.bf16.mxu0 %v9356_v18 }
 0x2f5   :  { %2398 = vmatprep.subr.bf16.mxu0 %v1451_v42 }
 0x2f8   :  { %2399 = vmatpush1.bf16.msra.mxu0 %v1450_v59 }
 0x2f9   :  { %2400 = vmatprep.subr.bf16.mxu0 %v1453_v20 }
 0x2fb   :  { %2350 = vmatmul.mubr.bf16.gmra.mrb[20].mxu0 %v9357_v35 }
 0x2fc   :  { %2401 = vmatpush1.bf16.msra.mxu0 %v1452_v28  ;;  %2359 = vmatprep.mubr.bf16.mxu0 %v9358_v25 }
 0x2fd   :  { %2402 = vmatprep.subr.bf16.mxu0 %v1455_v37 }
 0x300   :  { %2403 = vmatpush1.bf16.msra.mxu0 %v1454_v61 }
 0x301   :  { %2404 = vmatprep.subr.bf16.mxu0 %v1457_v38 }
 0x303   :  { %2360 = vmatmul.mubr.bf16.gmra.mrb[24].mxu0 %v9359_v47 }
 0x304   :  { %2405 = vmatpush1.bf16.msra.mxu0 %v1456_v7  ;;  %2369 = vmatprep.mubr.bf16.mxu0 %v1171_v33 }
 0x305   :  { %2406 = vmatprep.subr.bf16.mxu0 %v1459_v16 }
 0x308   :  { %2407 = vmatpush1.bf16.msra.mxu0 %v1458_v39 }
 0x309   :  { %2408 = vmatprep.subr.bf16.mxu0 %v1461_v23 }
 0x30b   :  { %2370 = vmatmul.mubr.bf16.gmra.mrb[28].mxu0 %v1170_v48 }
 0x30c   :  { %2409 = vmatpush1.bf16.msra.mxu0 %v1460_v14  ;;  %5133 = vmatprep.mubr.msk.bf16.mxu0 %vm7278_vm4, %v9360_v63 }
 0x30d   :  { %2410 = vmatprep.subr.bf16.mxu0 %v1463_v41 }
 0x310   :  { %2411 = vmatpush1.bf16.msra.mxu0 %v1462_v5 }
 0x313   :  { %5136 = vmatmul.mubr.msk.bf16.vlgmr.msra.gmra.mrb[0].mxu0 %vm7278_vm4, %v9361_v60 }
 0x314   :  { %5139 = vmatprep.mubr.msk.bf16.mxu0 %vm7278_vm4, %v9362_v19 }
 0x31b   :  { %5142 = vmatmul.mubr.msk.bf16.gmra.mrb[4].mxu0 %vm7278_vm4, %v7330_v24  ;;  %v9366_v24 = vld [vmem:[#allocation79_spill] sm:$0xff] }
 0x31c   :  { %5145 = vmatprep.mubr.msk.bf16.mxu0 %vm7278_vm4, %v9363_v4 }
 0x323   :  { %5148 = vmatmul.mubr.msk.bf16.gmra.mrb[8].mxu0 %vm7278_vm4, %v9365_v12 }
 0x324   :  { %5151 = vmatprep.mubr.msk.bf16.mxu0 %vm7278_vm4, %v5150_v29 }
 0x32b   :  { %5154 = vmatmul.mubr.msk.bf16.gmra.mrb[12].mxu0 %vm7278_vm4, %v5153_v40 }
 0x32c   :  { %5157 = vmatprep.mubr.msk.bf16.mxu0 %vm7278_vm4, %v9366_v24 }
 0x333   :  { %5160 = vmatmul.mubr.msk.bf16.gmra.mrb[16].mxu0 %vm7278_vm4, %v9367_v6 }
 0x334   :  { %5163 = vmatprep.mubr.msk.bf16.mxu0 %vm7278_vm4, %v9368_v26 }
 0x33b   :  { %5166 = vmatmul.mubr.msk.bf16.gmra.mrb[20].mxu0 %vm7278_vm4, %v7408_v11 }
 0x33c   :  { %5169 = vmatprep.mubr.msk.bf16.mxu0 %vm7278_vm4, %v7414_v49 }
 0x343   :  { %5172 = vmatmul.mubr.msk.bf16.gmra.mrb[24].mxu0 %vm7278_vm4, %v9369_v45 }
 0x344   :  { %5175 = vmatprep.mubr.msk.bf16.mxu0 %vm7278_vm4, %v5174_v53 }
 0x34b   :  { %5178 = vmatmul.mubr.msk.bf16.gmra.mrb[28].mxu0 %vm7278_vm4, %v5177_v30 }
 0x3e6   :  { %v2414_v11 = vpop.f32.mrb[0].mxu0 }
 0x3e7   :  { %v2416_v49 = vpop.f32.mrb[1].mxu0  ;;  %v7801_v43 = vadd.f32 %v2414_v11, %v7789_v57 }
 0x3e8   :  { %v2418_v15 = vpop.f32.mrb[2].mxu0  ;;  %v7807_v32 = vadd.f32 %v2416_v49, %v7792_v17 }
 0x3e9   :  { %v2420_v36 = vpop.f32.mrb[3].mxu0  ;;  %v7795_v31 = vadd.f32 %v2418_v15, %v7789_v57  ;;  %v2535_v56 = vmul.f32 %v7801_v43, %v7801_v43 }
 0x3ea   :  { %v7798_v58 = vadd.f32 %v2420_v36, %v7792_v17  ;;  %v2536_v18 = vmul.f32 %v7807_v32, %v7807_v32 }
 0x3eb   :  { %v2537_v27 = vmul.f32 %v7795_v31, %v7795_v31  ;;  %v2493_v8 = vadd.f32 %v7795_v31, %v7801_v43 }
 0x3ec   :  { %v2538_v44 = vmul.f32 %v7798_v58, %v7798_v58  ;;  %v2514_v59 = vadd.f32 %v7798_v58, %v7807_v32 }
 0x3ed   :  { %v2567_v35 = vadd.f32 %v2537_v27, %v2535_v56 }
 0x3ee   :  { %v2424_v54 = vpop.f32.mrb[4].mxu0  ;;  %v2588_v33 = vadd.f32 %v2538_v44, %v2536_v18 }
 0x3ef   :  { %v2426_v21 = vpop.f32.mrb[5].mxu0  ;;  %v7804_v50 = vadd.f32 %v2424_v54, %v7789_v57 }
 0x3f0   :  { %v2428_v1 = vpop.f32.mrb[6].mxu0  ;;  %v7810_v10 = vadd.f32 %v2426_v21, %v7792_v17 }
 0x3f1   :  { %v2430_v9 = vpop.f32.mrb[7].mxu0  ;;  %v2539_v0 = vmul.f32 %v7804_v50, %v7804_v50  ;;  %v7823_v42 = vadd.f32 %v2428_v1, %v7789_v57  ;;  %v2494_v25 = vadd.f32 %v7804_v50, %v2493_v8 }
 0x3f2   :  { %v2540_v20 = vmul.f32 %v7810_v10, %v7810_v10  ;;  %v7832_v28 = vadd.f32 %v2430_v9, %v7792_v17  ;;  %v2515_v7 = vadd.f32 %v7810_v10, %v2514_v59 }
 0x3f3   :  { %v2568_v47 = vadd.f32 %v2567_v35, %v2539_v0  ;;  %v2541_v39 = vmul.f32 %v7823_v42, %v7823_v42  ;;  %v2495_v14 = vadd.f32 %v7823_v42, %v2494_v25 }
 0x3f4   :  { %v2589_v23 = vadd.f32 %v2588_v33, %v2540_v20  ;;  %v2542_v48 = vmul.f32 %v7832_v28, %v7832_v28  ;;  %v2516_v5 = vadd.f32 %v7832_v28, %v2515_v7 }
 0x3f5   :  { %v2569_v29 = vadd.f32 %v2568_v47, %v2541_v39 }
 0x3f6   :  { %v2434_v62 = vpop.f32.mrb[8].mxu0  ;;  %v2590_v6 = vadd.f32 %v2589_v23, %v2542_v48 }
 0x3f7   :  { %v2436_v55 = vpop.f32.mrb[9].mxu0  ;;  %v7836_v61 = vadd.f32 %v2434_v62, %v7789_v57 }
 0x3f8   :  { %v2438_v37 = vpop.f32.mrb[10].mxu0  ;;  %v7840_v16 = vadd.f32 %v2436_v55, %v7792_v17 }
 0x3f9   :  { %v2440_v38 = vpop.f32.mrb[11].mxu0  ;;  %v2543_v41 = vmul.f32 %v7836_v61, %v7836_v61  ;;  %v7850_v63 = vadd.f32 %v2438_v37, %v7789_v57  ;;  %v2496_v12 = vadd.f32 %v7836_v61, %v2495_v14 }
 0x3fa   :  { %v2544_v60 = vmul.f32 %v7840_v16, %v7840_v16  ;;  %v7856_v19 = vadd.f32 %v2440_v38, %v7792_v17  ;;  %v2517_v26 = vadd.f32 %v7840_v16, %v2516_v5 }
 0x3fb   :  { %v2570_v30 = vadd.f32 %v2569_v29, %v2543_v41  ;;  %v2545_v11 = vmul.f32 %v7850_v63, %v7850_v63  ;;  %v2497_v2 = vadd.f32 %v7850_v63, %v2496_v12 }
 0x3fc   :  { %v2591_v15 = vadd.f32 %v2590_v6, %v2544_v60  ;;  %v2546_v36 = vmul.f32 %v7856_v19, %v7856_v19  ;;  %v2518_v1 = vadd.f32 %v7856_v19, %v2517_v26 }
 0x3fd   :  { %v2571_v44 = vadd.f32 %v2570_v30, %v2545_v11 }
 0x3fe   :  { %v2444_v4 = vpop.f32.mrb[12].mxu0  ;;  %v2592_v56 = vadd.f32 %v2591_v15, %v2546_v36 }
 0x3ff   :  { %v7860_v40 = vadd.f32 %v2444_v4, %v7789_v57  ;;  %v2446_v24 = vpop.f32.mrb[13].mxu0 }
 0x400   :  { %v7864_v53 = vadd.f32 %v2446_v24, %v7792_v17  ;;  %v2448_v45 = vpop.f32.mrb[14].mxu0 }
 0x401   :  { %v2450_v49 = vpop.f32.mrb[15].mxu0  ;;  %v2547_v54 = vmul.f32 %v7860_v40, %v7860_v40  ;;  %v7874_v21 = vadd.f32 %v2448_v45, %v7789_v57  ;;  %v2498_v62 = vadd.f32 %v7860_v40, %v2497_v2 }
 0x402   :  { %v2548_v9 = vmul.f32 %v7864_v53, %v7864_v53  ;;  %v7880_v27 = vadd.f32 %v2450_v49, %v7792_v17  ;;  %v2519_v8 = vadd.f32 %v7864_v53, %v2518_v1 }
 0x403   :  { %v2572_v55 = vadd.f32 %v2571_v44, %v2547_v54  ;;  %v2549_v18 = vmul.f32 %v7874_v21, %v7874_v21  ;;  %v2499_v33 = vadd.f32 %v7874_v21, %v2498_v62 }
 0x404   :  { %v2593_v37 = vadd.f32 %v2592_v56, %v2548_v9  ;;  %v2550_v35 = vmul.f32 %v7880_v27, %v7880_v27  ;;  %v2520_v23 = vadd.f32 %v7880_v27, %v2519_v8 }
 0x405   :  { %v2573_v41 = vadd.f32 %v2572_v55, %v2549_v18 }
 0x406   :  { %v2454_v0 = vpop.f32.mrb[16].mxu0  ;;  %v2594_v60 = vadd.f32 %v2593_v37, %v2550_v35 }
 0x407   :  { %v7887_v59 = vadd.f32 %v2454_v0, %v7789_v57  ;;  %v2456_v20 = vpop.f32.mrb[17].mxu0 }
 0x408   :  { %v7892_v25 = vadd.f32 %v2456_v20, %v7792_v17  ;;  %v2458_v38 = vpop.f32.mrb[18].mxu0 }
 0x409   :  { %v2551_v7 = vmul.f32 %v7887_v59, %v7887_v59  ;;  %v7898_v47 = vadd.f32 %v2458_v38, %v7789_v57  ;;  %v2460_v39 = vpop.f32.mrb[19].mxu0  ;;  %v2500_v5 = vadd.f32 %v7887_v59, %v2499_v33 }
 0x40a   :  { %v2552_v48 = vmul.f32 %v7892_v25, %v7892_v25  ;;  %v7904_v14 = vadd.f32 %v2460_v39, %v7792_v17  ;;  %v2521_v4 = vadd.f32 %v7892_v25, %v2520_v23 }
 0x40b   :  { %v2574_v29 = vadd.f32 %v2573_v41, %v2551_v7  ;;  %v2553_v12 = vmul.f32 %v7898_v47, %v7898_v47  ;;  %v2501_v45 = vadd.f32 %v7898_v47, %v2500_v5 }
 0x40c   :  { %v2595_v24 = vadd.f32 %v2594_v60, %v2552_v48  ;;  %v2554_v6 = vmul.f32 %v7904_v14, %v7904_v14  ;;  %v2522_v49 = vadd.f32 %v7904_v14, %v2521_v4 }
 0x40d   :  { %v2575_v2 = vadd.f32 %v2574_v29, %v2553_v12 }
 0x40e   :  { %v2464_v26 = vpop.f32.mrb[20].mxu0  ;;  %v2596_v62 = vadd.f32 %v2595_v24, %v2554_v6 }
 0x40f   :  { %v7914_v30 = vadd.f32 %v2464_v26, %v7789_v57  ;;  %v2466_v11 = vpop.f32.mrb[21].mxu0 }
 0x410   :  { %v7918_v15 = vadd.f32 %v2466_v11, %v7792_v17  ;;  %v2468_v36 = vpop.f32.mrb[22].mxu0 }
 0x411   :  { %v2502_v54 = vadd.f32 %v7914_v30, %v2501_v45  ;;  %v2555_v1 = vmul.f32 %v7914_v30, %v7914_v30  ;;  %v7924_v9 = vadd.f32 %v2468_v36, %v7789_v57  ;;  %v2470_v44 = vpop.f32.mrb[23].mxu0 }
 0x412   :  { %v2523_v56 = vadd.f32 %v7918_v15, %v2522_v49  ;;  %v2556_v8 = vmul.f32 %v7918_v15, %v7918_v15  ;;  %v7930_v0 = vadd.f32 %v2470_v44, %v7792_v17 }
 0x413   :  { %v2576_v55 = vadd.f32 %v2575_v2, %v2555_v1  ;;  %v2503_v18 = vadd.f32 %v7924_v9, %v2502_v54  ;;  %v2557_v20 = vmul.f32 %v7924_v9, %v7924_v9 }
 0x414   :  { %v2597_v37 = vadd.f32 %v2596_v62, %v2556_v8  ;;  %v2524_v35 = vadd.f32 %v7930_v0, %v2523_v56  ;;  %v2558_v38 = vmul.f32 %v7930_v0, %v7930_v0 }
 0x415   :  { %v2577_v33 = vadd.f32 %v2576_v55, %v2557_v20 }
 0x416   :  { %v2598_v7 = vadd.f32 %v2597_v37, %v2558_v38  ;;  %v2474_v39 = vpop.f32.mrb[24].mxu0 }
 0x417   :  { %v7939_v23 = vadd.f32 %v2474_v39, %v7789_v57  ;;  %v2476_v48 = vpop.f32.mrb[25].mxu0 }
 0x418   :  { %v7942_v41 = vadd.f32 %v2476_v48, %v7792_v17  ;;  %v2478_v5 = vpop.f32.mrb[26].mxu0 }
 0x419   :  { %v2504_v60 = vadd.f32 %v7939_v23, %v2503_v18  ;;  %v2559_v4 = vmul.f32 %v7939_v23, %v7939_v23  ;;  %v7948_v29 = vadd.f32 %v2478_v5, %v7789_v57  ;;  %v2480_v12 = vpop.f32.mrb[27].mxu0 }
 0x41a   :  { %v2525_v24 = vadd.f32 %v7942_v41, %v2524_v35  ;;  %v2560_v6 = vmul.f32 %v7942_v41, %v7942_v41  ;;  %v7954_v26 = vadd.f32 %v2480_v12, %v7792_v17 }
 0x41b   :  { %v2578_v45 = vadd.f32 %v2577_v33, %v2559_v4  ;;  %v2505_v11 = vadd.f32 %v7948_v29, %v2504_v60  ;;  %v2561_v49 = vmul.f32 %v7948_v29, %v7948_v29 }
 0x41c   :  { %v2599_v36 = vadd.f32 %v2598_v7, %v2560_v6  ;;  %v2526_v2 = vadd.f32 %v7954_v26, %v2525_v24  ;;  %v2562_v54 = vmul.f32 %v7954_v26, %v7954_v26 }
 0x41d   :  { %v2579_v1 = vadd.f32 %v2578_v45, %v2561_v49 }
 0x41e   :  { %v2600_v44 = vadd.f32 %v2599_v36, %v2562_v54  ;;  %v2484_v62 = vpop.f32.mrb[28].mxu0 }
 0x41f   :  { %v7963_v56 = vadd.f32 %v2484_v62, %v7789_v57  ;;  %v2486_v8 = vpop.f32.mrb[29].mxu0 }
 0x420   :  { %v7966_v55 = vadd.f32 %v2486_v8, %v7792_v17  ;;  %v2488_v18 = vpop.f32.mrb[30].mxu0 }
 0x421   :  { %v2506_v20 = vadd.f32 %v7963_v56, %v2505_v11  ;;  %v2563_v37 = vmul.f32 %v7963_v56, %v7963_v56  ;;  %v7972_v35 = vadd.f32 %v2488_v18, %v7789_v57  ;;  %v2490_v38 = vpop.f32.mrb[31].mxu0 }
 0x422   :  { %v2527_v33 = vadd.f32 %v7966_v55, %v2526_v2  ;;  %v2564_v7 = vmul.f32 %v7966_v55, %v7966_v55  ;;  %v7978_v39 = vadd.f32 %v2490_v38, %v7792_v17 }
 0x423   :  { %v2580_v48 = vadd.f32 %v2579_v1, %v2563_v37  ;;  %v2507_v5 = vadd.f32 %v7972_v35, %v2506_v20  ;;  %v2565_v60 = vmul.f32 %v7972_v35, %v7972_v35 }
 0x424   :  { %v2601_v4 = vadd.f32 %v2600_v44, %v2564_v7  ;;  %v2528_v12 = vadd.f32 %v7978_v39, %v2527_v33  ;;  %v2566_v57 = vmul.f32 %v7978_v39, %v7978_v39 }
 0x425   :  { %v2508_v24 = vrot.slane %v2507_v5, 4  ;;  %v2581_v6 = vadd.f32 %v2580_v48, %v2565_v60 }
 0x426   :  { %v2529_v45 = vrot.slane %v2528_v12, 4  ;;  %v2602_v11 = vadd.f32 %v2601_v4, %v2566_v57 }
 0x427   :  { %v2509_v49 = vadd.f32 %v2508_v24, %v2507_v5  ;;  %v2582_v36 = vrot.slane %v2581_v6, 4 }
 0x428   :  { %v2530_v17 = vadd.f32 %v2529_v45, %v2528_v12  ;;  %v2603_v2 = vrot.slane %v2602_v11, 4 }
 0x429   :  { %v2510_v54 = vrot.slane %v2509_v49, 2  ;;  %v2583_v1 = vadd.f32 %v2582_v36, %v2581_v6 }
 0x42a   :  { %v2531_v62 = vrot.slane %v2530_v17, 2  ;;  %v2604_v8 = vadd.f32 %v2603_v2, %v2602_v11 }
 0x42b   :  { %v2511_v18 = vadd.f32 %v2510_v54, %v2509_v49  ;;  %v2584_v20 = vrot.slane %v2583_v1, 2 }
 0x42c   :  { %v2532_v44 = vadd.f32 %v2531_v62, %v2530_v17  ;;  %v2605_v37 = vrot.slane %v2604_v8, 2 }
 0x42d   :  { %v2512_v38 = vrot.slane %v2511_v18, 1  ;;  %v2585_v33 = vadd.f32 %v2584_v20, %v2583_v1 }
 0x42e   :  { %v2533_v7 = vrot.slane %v2532_v44, 1  ;;  %v2606_v34 = vadd.f32 %v2605_v37, %v2604_v8 }
 0x42f   :  { %v2513_v13 = vadd.f32 %v2512_v38, %v2511_v18  ;;  %v2586_v48 = vrot.slane %v2585_v33, 1  ;;  %v9372_v18 = vld [vmem:[#allocation42_spill] sm:$0xff] }
 0x430   :  { %v2534_v60 = vadd.f32 %v2533_v7, %v2532_v44  ;;  %v2607_v4 = vrot.slane %v2606_v34, 1  ;;  %v2629_v20 = vcombine.high %v9372_v18, %v9372_v18  ;;  %v9373_v44 = vld [vmem:[#allocation58_spill] sm:$0xff] }
 0x431   :  { %v2587_v5 = vadd.f32 %v2586_v48, %v2585_v33  ;;  %v2609_v57 = vmul.f32 0.0078125, %v2513_v13 }
 0x432   :  { %v2608_v12 = vadd.f32 %v2607_v4, %v2606_v34  ;;  %v2610_v24 = vmul.f32 0.0078125, %v2534_v60 }
 0x433   :  { %v2611_v45 = vmul.f32 0.0078125, %v2587_v5  ;;  %v2613_v6 = vmul.f32 %v2609_v57, %v2609_v57 }
 0x434   :  { %v2612_v36 = vmul.f32 0.0078125, %v2608_v12  ;;  %v2614_v11 = vmul.f32 %v2610_v24, %v2610_v24 }
 0x435   :  { %v2615_v49 = vsub.f32 %v2611_v45, %v2613_v6  ;;  %v9374_v6 = vld [vmem:[#allocation43_spill] sm:$0xff] }
 0x436   :  { %v2616_v2 = vsub.f32 %v2612_v36, %v2614_v11  ;;  %v2660_v36 = vcombine.high %v9374_v6, %v9374_v6 }
 0x437   :  { %v2617_v17 = vadd.f32 1e-05, %v2615_v49 }
 0x438   :  { %v2618_v54 = vadd.f32 1e-05, %v2616_v2 }
 0x439   :  { %6262 = vrsqrt.f32 %v2617_v17 }
 0x43a   :  { %6264 = vrsqrt.f32 %v2618_v54 }
 0x443   :  { %v6263_v1 = vpop.eup %6262 }
 0x444   :  { %v6265_v62 = vpop.eup %6264 }
 0x445   :  { %v2634_v8 = vcombine.low %v6263_v1, %v6265_v62 }
 0x447   :  { %v2641_v13 = vrot.slane %v2634_v8, %v9373_v44 }
 0x449   :  { %v2648_v34 = vrot.slane %v2641_v13, %v9373_v44 }
 0x44b   :  { %v2650_v37 = vmul.f32 %v9372_v18, %v2648_v34  ;;  %v2651_v38 = vmul.f32 %v2648_v34, %v2629_v20 }
 0x44d   :  { %v2668_v33 = vrot.slane %v2650_v37, %v9370_v46  ;;  %v2672_v7 = vrot.slane %v2650_v37, %v9371_v52  ;;  %v2676_v48 = vrot.slane %v2651_v38, %v9370_v46  ;;  %v2680_v60 = vrot.slane %v2651_v38, %v9371_v52 }
 0x44f   :  { %v2685_v4 = vmul.f32 %v2668_v33, %v2609_v57  ;;  %v2686_v5 = vmul.f32 %v2672_v7, %v2610_v24  ;;  %v2687_v12 = vmul.f32 %v2676_v48, %v2609_v57  ;;  %v2688_v45 = vmul.f32 %v2680_v60, %v2610_v24 }
 0x450   :  { %v2727_v2 = vmul.f32 %v7801_v43, %v2668_v33  ;;  %v2728_v17 = vmul.f32 %v7807_v32, %v2672_v7  ;;  %v2729_v54 = vmul.f32 %v7795_v31, %v2668_v33  ;;  %v2730_v1 = vmul.f32 %v7798_v58, %v2672_v7 }
 0x451   :  { %v2693_v11 = vcombine.low %v2685_v4, %v2686_v5  ;;  %v2708_v49 = vcombine.low %v2687_v12, %v2688_v45  ;;  %v2731_v62 = vmul.f32 %v7804_v50, %v2668_v33  ;;  %v2732_v8 = vmul.f32 %v7810_v10, %v2672_v7 }
 0x452   :  { %v2733_v18 = vmul.f32 %v7823_v42, %v2668_v33  ;;  %v2734_v20 = vmul.f32 %v7832_v28, %v2672_v7  ;;  %v2735_v43 = vmul.f32 %v7836_v61, %v2668_v33  ;;  %v2736_v32 = vmul.f32 %v7840_v16, %v2672_v7 }
 0x453   :  { %v2700_v57 = vrot.slane %v2693_v11, %v9373_v44  ;;  %v2715_v24 = vrot.slane %v2708_v49, %v9373_v44  ;;  %v2737_v31 = vmul.f32 %v7850_v63, %v2668_v33  ;;  %v2738_v58 = vmul.f32 %v7856_v19, %v2672_v7 }
 0x454   :  { %v2739_v13 = vmul.f32 %v7860_v40, %v2668_v33  ;;  %v2740_v34 = vmul.f32 %v7864_v53, %v2672_v7  ;;  %v2741_v42 = vmul.f32 %v7874_v21, %v2668_v33  ;;  %v2742_v28 = vmul.f32 %v7880_v27, %v2672_v7 }
 0x455   :  { %v2707_v50 = vrot.slane %v2700_v57, %v9373_v44  ;;  %v2722_v10 = vrot.slane %v2715_v24, %v9373_v44  ;;  %v2747_v61 = vmul.f32 %v7914_v30, %v2676_v48  ;;  %v2748_v16 = vmul.f32 %v7918_v15, %v2680_v60 }
 0x456   :  { %v2749_v19 = vmul.f32 %v7924_v9, %v2676_v48  ;;  %v2750_v38 = vmul.f32 %v7930_v0, %v2680_v60  ;;  %v2751_v44 = vmul.f32 %v7939_v23, %v2676_v48  ;;  %v2752_v40 = vmul.f32 %v7942_v41, %v2680_v60 }
 0x457   :  { %v2725_v63 = vsub.f32 %v9374_v6, %v2707_v50  ;;  %v2726_v37 = vsub.f32 %v2660_v36, %v2722_v10  ;;  %v2753_v53 = vmul.f32 %v7948_v29, %v2676_v48  ;;  %v2754_v21 = vmul.f32 %v7954_v26, %v2680_v60 }
 0x458   :  { %v2755_v27 = vmul.f32 %v7963_v56, %v2676_v48  ;;  %v2756_v30 = vmul.f32 %v7966_v55, %v2680_v60  ;;  %v2757_v15 = vmul.f32 %v7972_v35, %v2676_v48  ;;  %v2758_v33 = vmul.f32 %v7978_v39, %v2680_v60 }
 0x459   :  { %v2743_v9 = vmul.f32 %v7887_v59, %v2676_v48  ;;  %v2744_v0 = vmul.f32 %v7892_v25, %v2680_v60  ;;  %v2764_v23 = vrot.slane %v2725_v63, %v9370_v46  ;;  %v2768_v41 = vrot.slane %v2725_v63, %v9371_v52 }
 0x45a   :  { %v2745_v29 = vmul.f32 %v7898_v47, %v2676_v48  ;;  %v2746_v26 = vmul.f32 %v7904_v14, %v2680_v60  ;;  %v2772_v56 = vrot.slane %v2726_v37, %v9370_v46  ;;  %v2776_v55 = vrot.slane %v2726_v37, %v9371_v52 }
 0x45b   :  { %v2781_v7 = vadd.f32 %v2764_v23, %v2727_v2  ;;  %v2782_v35 = vadd.f32 %v2768_v41, %v2728_v17  ;;  %v2783_v4 = vadd.f32 %v2764_v23, %v2729_v54  ;;  %v2784_v39 = vadd.f32 %v2768_v41, %v2730_v1 }
 0x45c   :  { %v2785_v5 = vadd.f32 %v2764_v23, %v2731_v62  ;;  %v2786_v59 = vadd.f32 %v2768_v41, %v2732_v8  ;;  %v2787_v12 = vadd.f32 %v2764_v23, %v2733_v18  ;;  %v2788_v25 = vadd.f32 %v2768_v41, %v2734_v20 }
 0x45d   :  { %v2789_v45 = vadd.f32 %v2764_v23, %v2735_v43  ;;  %v2790_v6 = vadd.f32 %v2768_v41, %v2736_v32  ;;  %v2791_v36 = vadd.f32 %v2764_v23, %v2737_v31  ;;  %v2792_v11 = vadd.f32 %v2768_v41, %v2738_v58 }
 0x45e   :  { %v2793_v49 = vadd.f32 %v2764_v23, %v2739_v13  ;;  %v2794_v47 = vadd.f32 %v2768_v41, %v2740_v34  ;;  %v2795_v48 = vadd.f32 %v2764_v23, %v2741_v42  ;;  %v2796_v14 = vadd.f32 %v2768_v41, %v2742_v28 }
 0x45f   :  { %v2797_v60 = vadd.f32 %v2772_v56, %v2743_v9  ;;  %v2798_v57 = vadd.f32 %v2776_v55, %v2744_v0  ;;  %v2799_v24 = vadd.f32 %v2772_v56, %v2745_v29  ;;  %v2800_v50 = vadd.f32 %v2776_v55, %v2746_v26 }
 0x460   :  { %v2801_v2 = vadd.f32 %v2772_v56, %v2747_v61  ;;  %v2802_v17 = vadd.f32 %v2776_v55, %v2748_v16  ;;  %v2803_v54 = vadd.f32 %v2772_v56, %v2749_v19  ;;  %v2804_v1 = vadd.f32 %v2776_v55, %v2750_v38 }
 0x461   :  { %v2805_v62 = vadd.f32 %v2772_v56, %v2751_v44  ;;  %v2806_v8 = vadd.f32 %v2776_v55, %v2752_v40  ;;  %v2807_v18 = vadd.f32 %v2772_v56, %v2753_v53  ;;  %v2808_v20 = vadd.f32 %v2776_v55, %v2754_v21 }
 0x462   :  { %v2809_v43 = vadd.f32 %v2772_v56, %v2755_v27  ;;  %v2810_v32 = vadd.f32 %v2776_v55, %v2756_v30  ;;  %v2811_v31 = vadd.f32 %v2772_v56, %v2757_v15  ;;  %v2812_v58 = vadd.f32 %v2776_v55, %v2758_v33 }
 0x463   :  { %v8038_v10 = vmax.f32 %v2781_v7, 0.0  ;;  %v8040_v13 = vmax.f32 %v2782_v35, 0.0  ;;  %v8042_v34 = vmax.f32 %v2783_v4, 0.0  ;;  %v8044_v42 = vmax.f32 %v2784_v39, 0.0 }
 0x464   :  { %v8046_v28 = vmax.f32 %v2785_v5, 0.0  ;;  %v8048_v61 = vmax.f32 %v2786_v59, 0.0  ;;  %v8050_v16 = vmax.f32 %v2787_v12, 0.0  ;;  %v8052_v63 = vmax.f32 %v2788_v25, 0.0 }
 0x465   :  { %v8054_v37 = vmax.f32 %v2789_v45, 0.0  ;;  %v8056_v19 = vmax.f32 %v2790_v6, 0.0  ;;  %v8058_v38 = vmax.f32 %v2791_v36, 0.0  ;;  %v8060_v44 = vmax.f32 %v2792_v11, 0.0 }
 0x466   :  { %v8062_v40 = vmax.f32 %v2793_v49, 0.0  ;;  %v8064_v53 = vmax.f32 %v2794_v47, 0.0  ;;  %v8066_v21 = vmax.f32 %v2795_v48, 0.0  ;;  %v8068_v27 = vmax.f32 %v2796_v14, 0.0 }
 0x467   :  { %v8070_v30 = vmax.f32 %v2797_v60, 0.0  ;;  %v8072_v15 = vmax.f32 %v2798_v57, 0.0  ;;  %v8074_v33 = vmax.f32 %v2799_v24, 0.0  ;;  %v8076_v9 = vmax.f32 %v2800_v50, 0.0 }
 0x468   :  { %v8078_v0 = vmax.f32 %v2801_v2, 0.0  ;;  %v8080_v23 = vmax.f32 %v2802_v17, 0.0  ;;  %v8082_v41 = vmax.f32 %v2803_v54, 0.0  ;;  %v8084_v29 = vmax.f32 %v2804_v1, 0.0 }
 0x469   :  { %v8086_v26 = vmax.f32 %v2805_v62, 0.0  ;;  %v8088_v56 = vmax.f32 %v2806_v8, 0.0  ;;  %v8090_v55 = vmax.f32 %v2807_v18, 0.0  ;;  %v8092_v7 = vmax.f32 %v2808_v20, 0.0 }
 0x46a   :  { %v8094_v35 = vmax.f32 %v2809_v43, 0.0  ;;  %v8096_v4 = vmax.f32 %v2810_v32, 0.0  ;;  %v8098_v39 = vmax.f32 %v2811_v31, 0.0  ;;  %v8100_v5 = vmax.f32 %v2812_v58, 0.0 }
 0x46b   :  { %6360 = dma.done.wait [#allocation5 + $0x1], 36864 }
 0x46c   :  { %6361 = vsyncadd [#allocation5 + $0x1], 4294930432  ;;  %v9167_v59 = vrot.slane %v8040_v13, 7  ;;  %v2879_v12 = vrot.slane %v8038_v10, 7  ;;  %v2881_v25 = vrot.slane %v8042_v34, 7  ;;  %v3180_v11 = vld [vmem:[#allocation3 + $0x8] sm:$0xff] }
 0x46d   :  { %v3467_v36 = vld [vmem:[#allocation9] sm:$0x3]  ;;  %3479 = vmatprep.subr.bf16.mxu1 %v3180_v11  ;;  %v3182_v14 = vld [vmem:[#allocation3 + $0x18] sm:$0xff]  ;;  %v3181_v60 = vld [vmem:[#allocation3 + $0x10] sm:$0xff] }
 0x46e   :  { %v5184_v45 = vpack.c.bf16 %v9167_v59, %v7028_v22  ;;  %v8112_v6 = vpack.c.bf16 %v2881_v25, %v2879_v12  ;;  %v3179_v49 = vld [vmem:[#allocation3] sm:$0xff]  ;;  %v8117_v47 = vrot.slane %v3467_v36, %v9370_v46  ;;  %v8120_v48 = vrot.slane %v3467_v36, %v9371_v52  ;;  %v3184_v57 = vld [vmem:[#allocation3 + $0x28] sm:$0xff]  ;;  %v3186_v50 = vld [vmem:[#allocation3 + $0x38] sm:$0xff] }
 0x46f   :  { %3480 = vmatpush1.bf16.msra.mxu1 %v3179_v49  ;;  %v3183_v24 = vld [vmem:[#allocation3 + $0x20] sm:$0xff]  ;;  %v3185_v2 = vld [vmem:[#allocation3 + $0x30] sm:$0xff]  ;;  %v3188_v17 = vld [vmem:[#allocation3 + $0x48] sm:$0xff]  ;;  %v9172_v59 = vrot.slane %v8094_v35, 7 }
 0x470   :  { %5185 = vmatprep.mubr.msk.bf16.mxu1 %vm7032_vm2, %v5184_v45  ;;  %9375 = vst [vmem:[#allocation61_spill] sm:$0xff] %v8117_v47  ;;  %9376 = vst [vmem:[#allocation62_spill] sm:$0xff] %v8120_v48  ;;  %3481 = vmatprep.subr.bf16.mxu1 %v3182_v14  ;;  %v3187_v54 = vld [vmem:[#allocation3 + $0x40] sm:$0xff]  ;;  %v3190_v1 = vld [vmem:[#allocation3 + $0x58] sm:$0xff]  ;;  %v8309_v48 = vpack.c.bf16 %v8062_v40, %v8058_v38  ;;  %v3095_v47 = vpack.c.bf16 %v8070_v30, %v9352_v51 }
 0x471   :  { %v3189_v62 = vld [vmem:[#allocation3 + $0x50] sm:$0xff]  ;;  %v3192_v8 = vld [vmem:[#allocation3 + $0x68] sm:$0xff]  ;;  %v3191_v18 = vld [vmem:[#allocation3 + $0x60] sm:$0xff] }
 0x472   :  { %v3194_v20 = vld [vmem:[#allocation3 + $0x78] sm:$0xff]  ;;  %v3193_v43 = vld [vmem:[#allocation3 + $0x70] sm:$0xff]  ;;  %v3196_v32 = vld [vmem:[#allocation3 + $0x88] sm:$0xff]  ;;  %9380 = vst [vmem:[#allocation66_spill] sm:$0xff] %v8309_v48 }
 0x473   :  { %3482 = vmatpush1.bf16.msra.mxu1 %v3181_v60  ;;  %v3195_v31 = vld [vmem:[#allocation3 + $0x80] sm:$0xff]  ;;  %v3198_v58 = vld [vmem:[#allocation3 + $0x98] sm:$0xff]  ;;  %v3197_v45 = vld [vmem:[#allocation3 + $0x90] sm:$0xff] }
 0x474   :  { %3483 = vmatprep.subr.bf16.mxu1 %v3184_v57  ;;  %v3200_v36 = vld [vmem:[#allocation3 + $0xa8] sm:$0xff]  ;;  %v3199_v11 = vld [vmem:[#allocation3 + $0xa0] sm:$0xff]  ;;  %v3202_v49 = vld [vmem:[#allocation3 + $0xb8] sm:$0xff] }
 0x475   :  { %v3201_v14 = vld [vmem:[#allocation3 + $0xb0] sm:$0xff]  ;;  %v3204_v60 = vld [vmem:[#allocation3 + $0xc8] sm:$0xff]  ;;  %v3203_v57 = vld [vmem:[#allocation3 + $0xc0] sm:$0xff] }
 0x476   :  { %v3258_v52 = vld [vmem:[#allocation3 + $0x278] sm:$0xff]  ;;  %v3259_v46 = vld [vmem:[#allocation3 + $0x280] sm:$0xff] }
 0x477   :  { %3484 = vmatpush1.bf16.msra.mxu1 %v3183_v24  ;;  %v3206_v24 = vld [vmem:[#allocation3 + $0xd8] sm:$0xff]  ;;  %v3439_v3 = vld [vmem:[#allocation3 + $0x820] sm:$0xff] }
 0x478   :  { %3485 = vmatprep.subr.bf16.mxu1 %v3186_v50  ;;  %v3205_v50 = vld [vmem:[#allocation3 + $0xd0] sm:$0xff] }
 0x47b   :  { %3486 = vmatpush1.bf16.msra.mxu1 %v3185_v2  ;;  %v3208_v2 = vld [vmem:[#allocation3 + $0xe8] sm:$0xff] }
 0x47c   :  { %3487 = vmatprep.subr.bf16.mxu1 %v3188_v17  ;;  %v3207_v17 = vld [vmem:[#allocation3 + $0xe0] sm:$0xff] }
 0x47f   :  { %3488 = vmatpush1.bf16.msra.mxu1 %v3187_v54  ;;  %v3210_v54 = vld [vmem:[#allocation3 + $0xf8] sm:$0xff] }
 0x480   :  { %3489 = vmatprep.subr.bf16.mxu1 %v3190_v1  ;;  %v9166_v1 = vrot.slane %v8044_v42, 7 }
 0x483   :  { %3490 = vmatpush1.bf16.msra.mxu1 %v3189_v62  ;;  %v9161_v62 = vrot.slane %v8048_v61, 7 }
 0x484   :  { %3491 = vmatprep.subr.bf16.mxu1 %v3192_v8  ;;  %v3209_v8 = vld [vmem:[#allocation3 + $0xf0] sm:$0xff] }
 0x487   :  { %3492 = vmatpush1.bf16.msra.mxu1 %v3191_v18  ;;  %v3212_v18 = vld [vmem:[#allocation3 + $0x108] sm:$0xff] }
 0x488   :  { %3493 = vmatprep.subr.bf16.mxu1 %v3194_v20  ;;  %v5189_v20 = vpack.c.bf16 %v2879_v12, %v7028_v22  ;;  %v9160_v12 = vrot.slane %v8052_v63, 7 }
 0x48b   :  { %3494 = vmatpush1.bf16.msra.mxu1 %v3193_v43  ;;  %v8131_v43 = vpack.c.bf16 %v9161_v62, %v9166_v1  ;;  %v9169_v62 = vrot.slane %v8086_v26, 7  ;;  %v3238_v1 = vld [vmem:[#allocation3 + $0x1d8] sm:$0xff] }
 0x48c   :  { %3495 = vmatprep.subr.bf16.mxu1 %v3196_v32  ;;  %v3211_v32 = vld [vmem:[#allocation3 + $0x100] sm:$0xff] }
 0x48f   :  { %3496 = vmatpush1.bf16.msra.mxu1 %v3195_v31  ;;  %v3214_v31 = vld [vmem:[#allocation3 + $0x118] sm:$0xff] }
 0x490   :  { %3497 = vmatprep.subr.bf16.mxu1 %v3198_v58  ;;  %v9156_v58 = vrot.slane %v8046_v28, 7 }
 0x493   :  { %3498 = vmatpush1.bf16.msra.mxu1 %v3197_v45  ;;  %v9151_v45 = vrot.slane %v8056_v19, 7 }
 0x494   :  { %3499 = vmatprep.subr.bf16.mxu1 %v3200_v36  ;;  %v3213_v36 = vld [vmem:[#allocation3 + $0x110] sm:$0xff] }
 0x497   :  { %3500 = vmatpush1.bf16.msra.mxu1 %v3199_v11  ;;  %v3216_v11 = vld [vmem:[#allocation3 + $0x128] sm:$0xff] }
 0x498   :  { %3501 = vmatprep.subr.bf16.mxu1 %v3202_v49  ;;  %v8145_v49 = vpack.c.bf16 %v9156_v58, %v2881_v25  ;;  %v9155_v25 = vrot.slane %v8050_v16, 7  ;;  %v9163_v58 = vrot.slane %v8078_v0, 7 }
 0x49b   :  { %3502 = vmatpush1.bf16.msra.mxu1 %v3201_v14  ;;  %v8151_v14 = vpack.c.bf16 %v9151_v45, %v9160_v12  ;;  %v3226_v45 = vld [vmem:[#allocation3 + $0x178] sm:$0xff] }
 0x49c   :  { %3503 = vmatprep.subr.bf16.mxu1 %v3204_v60  ;;  %v3215_v60 = vld [vmem:[#allocation3 + $0x120] sm:$0xff]  ;;  %v3234_v12 = vld [vmem:[#allocation3 + $0x1b8] sm:$0xff] }
 0x49f   :  { %3504 = vmatpush1.bf16.msra.mxu1 %v3203_v57  ;;  %v9175_v57 = vrot.slane %v8038_v10, 1 }
 0x4a0   :  { %3505 = vmatprep.subr.bf16.mxu1 %v3206_v24  ;;  %v9174_v24 = vrot.slane %v8042_v34, 1 }
 0x4a3   :  { %3506 = vmatpush1.bf16.msra.mxu1 %v3205_v50  ;;  %v3218_v50 = vld [vmem:[#allocation3 + $0x138] sm:$0xff] }
 0x4a4   :  { %3507 = vmatprep.subr.bf16.mxu1 %v3208_v2  ;;  %v9149_v2 = vrot.slane %v8054_v37, 7 }
 0x4a7   :  { %3508 = vmatpush1.bf16.msra.mxu1 %v3207_v17  ;;  %v8164_v17 = vpack.c.bf16 %v9174_v24, %v9175_v57  ;;  %v3250_v24 = vld [vmem:[#allocation3 + $0x238] sm:$0xff] }
 0x4a8   :  { %3509 = vmatprep.subr.bf16.mxu1 %v3210_v54  ;;  %v9150_v54 = vrot.slane %v8060_v44, 7  ;;  %v3254_v57 = vld [vmem:[#allocation3 + $0x258] sm:$0xff] }
 0x4ab   :  { %3510 = vmatpush1.bf16.msra.mxu1 %v3209_v8  ;;  %v9148_v8 = vrot.slane %v8064_v53, 7 }
 0x4ac   :  { %3592 = vmatprep.subr.bf16.mxu1 %v3212_v18  ;;  %v3217_v18 = vld [vmem:[#allocation3 + $0x130] sm:$0xff] }
 0x4ae   :  { %5190 = vmatmul.mubr.msk.bf16.vlgmr.msra.gmra.mrb[0].mxu1 %vm7032_vm2, %v5189_v20  ;;  %v3220_v20 = vld [vmem:[#allocation3 + $0x148] sm:$0xff] }
 0x4af   :  { %3593 = vmatpush1.bf16.msra.mxu1 %v3211_v32  ;;  %5195 = vmatprep.mubr.msk.bf16.mxu1 %vm7032_vm2, %v8131_v43  ;;  %v8175_v32 = vpack.c.bf16 %v9149_v2, %v9155_v25  ;;  %v3230_v25 = vld [vmem:[#allocation3 + $0x198] sm:$0xff] }
 0x4b0   :  { %3594 = vmatprep.subr.bf16.mxu1 %v3214_v31  ;;  %v8181_v31 = vpack.c.bf16 %v9148_v8, %v9150_v54  ;;  %v3221_v8 = vld [vmem:[#allocation3 + $0x150] sm:$0xff]  ;;  %v3223_v54 = vld [vmem:[#allocation3 + $0x160] sm:$0xff] }
 0x4b3   :  { %3595 = vmatpush1.bf16.msra.mxu1 %v3213_v36  ;;  %v3219_v36 = vld [vmem:[#allocation3 + $0x140] sm:$0xff] }
 0x4b4   :  { %3596 = vmatprep.subr.bf16.mxu1 %v3216_v11  ;;  %v3222_v11 = vld [vmem:[#allocation3 + $0x158] sm:$0xff] }
 0x4b6   :  { %5200 = vmatmul.mubr.msk.bf16.gmra.mrb[4].mxu1 %vm7032_vm2, %v8145_v49 }
 0x4b7   :  { %3597 = vmatpush1.bf16.msra.mxu1 %v3215_v60  ;;  %5205 = vmatprep.mubr.msk.bf16.mxu1 %vm7032_vm2, %v8151_v14  ;;  %v9153_v60 = vrot.slane %v8058_v38, 7 }
 0x4b8   :  { %3598 = vmatprep.subr.bf16.mxu1 %v3218_v50  ;;  %v9152_v50 = vrot.slane %v8062_v40, 7 }
 0x4ba   :  { %v8196_v2 = vpack.c.bf16 %v9152_v50, %v9153_v60  ;;  %v9159_v50 = vrot.slane %v8076_v9, 7  ;;  %v3225_v60 = vld [vmem:[#allocation3 + $0x170] sm:$0xff] }
 0x4bb   :  { %3599 = vmatpush1.bf16.msra.mxu1 %v3217_v18  ;;  %v9154_v18 = vrot.slane %v8072_v15, 7 }
 0x4bc   :  { %3600 = vmatprep.subr.bf16.mxu1 %v3220_v20  ;;  %v3224_v20 = vld [vmem:[#allocation3 + $0x168] sm:$0xff] }
 0x4be   :  { %5210 = vmatmul.mubr.msk.bf16.gmra.mrb[8].mxu1 %vm7032_vm2, %v8175_v32 }
 0x4bf   :  { %3601 = vmatpush1.bf16.msra.mxu1 %v3219_v36  ;;  %5215 = vmatprep.mubr.msk.bf16.mxu1 %vm7032_vm2, %v8181_v31  ;;  %v5224_v36 = vpack.c.bf16 %v9154_v18, %v7028_v22  ;;  %v3228_v18 = vld [vmem:[#allocation3 + $0x188] sm:$0xff] }
 0x4c0   :  { %3602 = vmatprep.subr.bf16.mxu1 %v3222_v11  ;;  %v9158_v11 = vrot.slane %v8070_v30, 7 }
 0x4c3   :  { %3603 = vmatpush1.bf16.msra.mxu1 %v3221_v8  ;;  %v9157_v8 = vrot.slane %v8080_v23, 7 }
 0x4c4   :  { %3604 = vmatprep.subr.bf16.mxu1 %v3224_v20  ;;  %v5229_v20 = vpack.c.bf16 %v9158_v11, %v7028_v22  ;;  %v3232_v11 = vld [vmem:[#allocation3 + $0x1a8] sm:$0xff] }
 0x4c6   :  { %5220 = vmatmul.mubr.msk.bf16.gmra.mrb[12].mxu1 %vm7032_vm2, %v8196_v2 }
 0x4c7   :  { %3605 = vmatpush1.bf16.msra.mxu1 %v3223_v54  ;;  %5225 = vmatprep.mubr.msk.bf16.mxu1 %vm7032_vm2, %v5224_v36  ;;  %v8216_v54 = vpack.c.bf16 %v9157_v8, %v9159_v50  ;;  %v3227_v36 = vld [vmem:[#allocation3 + $0x180] sm:$0xff]  ;;  %v9162_v8 = vrot.slane %v8088_v56, 7 }
 0x4c8   :  { %3606 = vmatprep.subr.bf16.mxu1 %v3226_v45  ;;  %v9165_v45 = vrot.slane %v8074_v33, 7  ;;  %v3231_v50 = vld [vmem:[#allocation3 + $0x1a0] sm:$0xff] }
 0x4cb   :  { %3607 = vmatpush1.bf16.msra.mxu1 %v3225_v60  ;;  %v9164_v60 = vrot.slane %v8084_v29, 7 }
 0x4cc   :  { %3608 = vmatprep.subr.bf16.mxu1 %v3228_v18  ;;  %v3229_v18 = vld [vmem:[#allocation3 + $0x190] sm:$0xff] }
 0x4ce   :  { %5230 = vmatmul.mubr.msk.bf16.gmra.mrb[16].mxu1 %vm7032_vm2, %v5229_v20  ;;  %v8231_v20 = vpack.c.bf16 %v9163_v58, %v9165_v45  ;;  %v3236_v58 = vld [vmem:[#allocation3 + $0x1c8] sm:$0xff]  ;;  %v3235_v45 = vld [vmem:[#allocation3 + $0x1c0] sm:$0xff] }
 0x4cf   :  { %3609 = vmatpush1.bf16.msra.mxu1 %v3227_v36  ;;  %5235 = vmatprep.mubr.msk.bf16.mxu1 %vm7032_vm2, %v8216_v54  ;;  %v8237_v36 = vpack.c.bf16 %v9162_v8, %v9164_v60  ;;  %v9168_v8 = vrot.slane %v8096_v4, 7 }
 0x4d0   :  { %3610 = vmatprep.subr.bf16.mxu1 %v3230_v25  ;;  %v9171_v25 = vrot.slane %v8082_v41, 7 }
 0x4d2   :  { %v8253_v60 = vpack.c.bf16 %v9169_v62, %v9171_v25  ;;  %v3088_v62 = vpack.c.bf16 %v8040_v13, %v9352_v51  ;;  %v3244_v25 = vld [vmem:[#allocation3 + $0x208] sm:$0xff] }
 0x4d3   :  { %3611 = vmatpush1.bf16.msra.mxu1 %v3229_v18  ;;  %v9170_v18 = vrot.slane %v8092_v7, 7 }
 0x4d4   :  { %3612 = vmatprep.subr.bf16.mxu1 %v3232_v11  ;;  %v3233_v11 = vld [vmem:[#allocation3 + $0x1b0] sm:$0xff] }
 0x4d6   :  { %5240 = vmatmul.mubr.msk.bf16.gmra.mrb[20].mxu1 %vm7032_vm2, %v8231_v20 }
 0x4d7   :  { %3613 = vmatpush1.bf16.msra.mxu1 %v3231_v50  ;;  %5245 = vmatprep.mubr.msk.bf16.mxu1 %vm7032_vm2, %v8237_v36  ;;  %v8259_v50 = vpack.c.bf16 %v9168_v8, %v9170_v18  ;;  %v3240_v8 = vld [vmem:[#allocation3 + $0x1e8] sm:$0xff]  ;;  %v3239_v18 = vld [vmem:[#allocation3 + $0x1e0] sm:$0xff] }
 0x4d8   :  { %3614 = vmatprep.subr.bf16.mxu1 %v3234_v12  ;;  %v9173_v12 = vrot.slane %v8090_v55, 7 }
 0x4db   :  { %3615 = vmatpush1.bf16.msra.mxu1 %v3233_v11  ;;  %v3237_v11 = vld [vmem:[#allocation3 + $0x1d0] sm:$0xff] }
 0x4dc   :  { %3616 = vmatprep.subr.bf16.mxu1 %v3236_v58  ;;  %v8273_v58 = vpack.c.bf16 %v9172_v59, %v9173_v12  ;;  %v3087_v59 = vpack.c.bf16 %v8038_v10, %v9352_v51  ;;  %v3246_v12 = vld [vmem:[#allocation3 + $0x218] sm:$0xff] }
 0x4de   :  { %5250 = vmatmul.mubr.msk.bf16.gmra.mrb[24].mxu1 %vm7032_vm2, %v8253_v60 }
 0x4df   :  { %3617 = vmatpush1.bf16.msra.mxu1 %v3235_v45  ;;  %5255 = vmatprep.mubr.msk.bf16.mxu1 %vm7032_vm2, %v8259_v50  ;;  %v3242_v45 = vld [vmem:[#allocation3 + $0x1f8] sm:$0xff] }
 0x4e0   :  { %3618 = vmatprep.subr.bf16.mxu1 %v3238_v1  ;;  %v3241_v1 = vld [vmem:[#allocation3 + $0x1f0] sm:$0xff] }
 0x4e3   :  { %3619 = vmatpush1.bf16.msra.mxu1 %v3237_v11  ;;  %v8284_v11 = vpack.c.bf16 %v8048_v61, %v8044_v42 }
 0x4e4   :  { %3620 = vmatprep.subr.bf16.mxu1 %v3240_v8  ;;  %v3243_v8 = vld [vmem:[#allocation3 + $0x200] sm:$0xff] }
 0x4e6   :  { %5260 = vmatmul.mubr.msk.bf16.gmra.mrb[28].mxu1 %vm7032_vm2, %v8273_v58 }
 0x4e7   :  { %3621 = vmatpush1.bf16.msra.mxu1 %v3239_v18  ;;  %3624 = vmatprep.mubr.bf16.mxu1 %v3088_v62  ;;  %v3245_v62 = vld [vmem:[#allocation3 + $0x210] sm:$0xff]  ;;  %v3248_v18 = vld [vmem:[#allocation3 + $0x228] sm:$0xff] }
 0x4e8   :  { %3622 = vmatprep.subr.bf16.mxu1 %v3242_v45  ;;  %v8289_v45 = vpack.c.bf16 %v8046_v28, %v8042_v34 }
 0x4eb   :  { %3623 = vmatpush1.bf16.msra.mxu1 %v3241_v1  ;;  %v8293_v1 = vpack.c.bf16 %v8056_v19, %v8052_v63 }
 0x4ec   :  { %3705 = vmatprep.subr.bf16.mxu1 %v3244_v25  ;;  %v3247_v25 = vld [vmem:[#allocation3 + $0x220] sm:$0xff] }
 0x4ed   :  { %9377 = vst [vmem:[#allocation63_spill] sm:$0xff] %v8293_v1 }
 0x4ee   :  { %3625 = vmatmul.mubr.bf16.vlgmr.msra.gmra.mrb[0].mxu1 %v3087_v59  ;;  %v3249_v59 = vld [vmem:[#allocation3 + $0x230] sm:$0xff] }
 0x4ef   :  { %3706 = vmatpush1.bf16.msra.mxu1 %v3243_v8  ;;  %3634 = vmatprep.mubr.bf16.mxu1 %v8284_v11  ;;  %v8299_v8 = vpack.c.bf16 %v8054_v37, %v8050_v16 }
 0x4f0   :  { %3707 = vmatprep.subr.bf16.mxu1 %v3246_v12  ;;  %v3252_v12 = vld [vmem:[#allocation3 + $0x248] sm:$0xff] }
 0x4f1   :  { %9378 = vst [vmem:[#allocation64_spill] sm:$0xff] %v8299_v8 }
 0x4f3   :  { %3708 = vmatpush1.bf16.msra.mxu1 %v3245_v62  ;;  %v8303_v62 = vpack.c.bf16 %v8064_v53, %v8060_v44 }
 0x4f4   :  { %3709 = vmatprep.subr.bf16.mxu1 %v3248_v18  ;;  %v3251_v18 = vld [vmem:[#allocation3 + $0x240] sm:$0xff] }
 0x4f5   :  { %9379 = vst [vmem:[#allocation65_spill] sm:$0xff] %v8303_v62 }
 0x4f6   :  { %3635 = vmatmul.mubr.bf16.gmra.mrb[4].mxu1 %v8289_v45 }
 0x4f7   :  { %3710 = vmatpush1.bf16.msra.mxu1 %v3247_v25  ;;  %3644 = vmatprep.mubr.bf16.mxu1 %v8293_v1  ;;  %v3256_v25 = vld [vmem:[#allocation3 + $0x268] sm:$0xff]  ;;  %v9201_v1 = vrot.slane %v8054_v37, 1 }
 0x4f8   :  { %3711 = vmatprep.subr.bf16.mxu1 %v3250_v24  ;;  %v3253_v24 = vld [vmem:[#allocation3 + $0x250] sm:$0xff] }
 0x4fb   :  { %3712 = vmatpush1.bf16.msra.mxu1 %v3249_v59  ;;  %v3096_v59 = vpack.c.bf16 %v8072_v15, %v9352_v51  ;;  %v3271_v51 = vld [vmem:[#allocation3 + $0x2e0] sm:$0xff] }
 0x4fc   :  { %3713 = vmatprep.subr.bf16.mxu1 %v3252_v12  ;;  %v3255_v12 = vld [vmem:[#allocation3 + $0x260] sm:$0xff] }
 0x4fe   :  { %3645 = vmatmul.mubr.bf16.gmra.mrb[8].mxu1 %v8299_v8  ;;  %v9389_v8 = vrot.slane %v8038_v10, 1 }
 0x4ff   :  { %3714 = vmatpush1.bf16.msra.mxu1 %v3251_v18  ;;  %3654 = vmatprep.mubr.bf16.mxu1 %v8303_v62  ;;  %v3257_v18 = vld [vmem:[#allocation3 + $0x270] sm:$0xff] }
 0x500   :  { %3715 = vmatprep.subr.bf16.mxu1 %v3254_v57  ;;  %v3260_v57 = vld [vmem:[#allocation3 + $0x288] sm:$0xff]  ;;  %v3273_v62 = vld [vmem:[#allocation3 + $0x2f0] sm:$0xff] }
 0x503   :  { %3716 = vmatpush1.bf16.msra.mxu1 %v3253_v24  ;;  %v8318_v24 = vpack.c.bf16 %v8080_v23, %v8076_v9 }
 0x504   :  { %3717 = vmatprep.subr.bf16.mxu1 %v3256_v25  ;;  %v3262_v25 = vld [vmem:[#allocation3 + $0x298] sm:$0xff] }
 0x505   :  { %9381 = vst [vmem:[#allocation67_spill] sm:$0xff] %v8318_v24 }
 0x506   :  { %3655 = vmatmul.mubr.bf16.gmra.mrb[12].mxu1 %v8309_v48  ;;  %v3266_v48 = vld [vmem:[#allocation3 + $0x2b8] sm:$0xff] }
 0x507   :  { %3718 = vmatpush1.bf16.msra.mxu1 %v3255_v12  ;;  %3664 = vmatprep.mubr.bf16.mxu1 %v3096_v59  ;;  %v3261_v59 = vld [vmem:[#allocation3 + $0x290] sm:$0xff]  ;;  %v8323_v12 = vpack.c.bf16 %v8078_v0, %v8074_v33 }
 0x508   :  { %3719 = vmatprep.subr.bf16.mxu1 %v3258_v52  ;;  %v3264_v52 = vld [vmem:[#allocation3 + $0x2a8] sm:$0xff] }
 0x509   :  { %9382 = vst [vmem:[#allocation68_spill] sm:$0xff] %v8323_v12 }
 0x50b   :  { %3720 = vmatpush1.bf16.msra.mxu1 %v3257_v18  ;;  %v8327_v18 = vpack.c.bf16 %v8088_v56, %v8084_v29 }
 0x50c   :  { %3721 = vmatprep.subr.bf16.mxu1 %v3260_v57  ;;  %v3263_v57 = vld [vmem:[#allocation3 + $0x2a0] sm:$0xff] }
 0x50d   :  { %9383 = vst [vmem:[#allocation69_spill] sm:$0xff] %v8327_v18 }
 0x50e   :  { %3665 = vmatmul.mubr.bf16.gmra.mrb[16].mxu1 %v3095_v47  ;;  %v3268_v47 = vld [vmem:[#allocation3 + $0x2c8] sm:$0xff] }
 0x50f   :  { %3722 = vmatpush1.bf16.msra.mxu1 %v3259_v46  ;;  %3674 = vmatprep.mubr.bf16.mxu1 %v8318_v24  ;;  %v3265_v46 = vld [vmem:[#allocation3 + $0x2b0] sm:$0xff]  ;;  %v3270_v24 = vld [vmem:[#allocation3 + $0x2d8] sm:$0xff] }
 0x510   :  { %3723 = vmatprep.subr.bf16.mxu1 %v3262_v25  ;;  %v8333_v25 = vpack.c.bf16 %v8086_v26, %v8082_v41 }
 0x512   :  { %9384 = vst [vmem:[#allocation70_spill] sm:$0xff] %v8333_v25 }
 0x513   :  { %3724 = vmatpush1.bf16.msra.mxu1 %v3261_v59  ;;  %v8337_v59 = vpack.c.bf16 %v8096_v4, %v8092_v7 }
 0x514   :  { %3725 = vmatprep.subr.bf16.mxu1 %v3264_v52  ;;  %v3267_v52 = vld [vmem:[#allocation3 + $0x2c0] sm:$0xff] }
 0x515   :  { %9385 = vst [vmem:[#allocation72_spill] sm:$0xff] %v8337_v59 }
 0x516   :  { %3675 = vmatmul.mubr.bf16.gmra.mrb[20].mxu1 %v8323_v12  ;;  %v9387_v12 = vld [vmem:[#allocation71_spill] sm:$0xff] }
 0x517   :  { %3726 = vmatpush1.bf16.msra.mxu1 %v3263_v57  ;;  %3684 = vmatprep.mubr.bf16.mxu1 %v8327_v18  ;;  %v3269_v57 = vld [vmem:[#allocation3 + $0x2d0] sm:$0xff]  ;;  %v3272_v18 = vld [vmem:[#allocation3 + $0x2e8] sm:$0xff] }
 0x518   :  { %3727 = vmatprep.subr.bf16.mxu1 %v3266_v48  ;;  %v9189_v48 = vrot.slane %v8040_v13, 1 }
 0x51b   :  { %3728 = vmatpush1.bf16.msra.mxu1 %v3265_v46  ;;  %v8344_v46 = vpack.c.bf16 %v8094_v35, %v8090_v55 }
 0x51c   :  { %3729 = vmatprep.subr.bf16.mxu1 %v3268_v47  ;;  %v5262_v47 = vpack.c.bf16 %v9189_v48, %v9387_v12  ;;  %v5265_v48 = vpack.c.bf16 %v9389_v8, %v9387_v12  ;;  %v9197_v8 = vrot.slane %v8052_v63, 1 }
 0x51d   :  { %9386 = vst [vmem:[#allocation74_spill] sm:$0xff] %v8344_v46 }
 0x51e   :  { %3685 = vmatmul.mubr.bf16.gmra.mrb[24].mxu1 %v8333_v25  ;;  %v3274_v25 = vld [vmem:[#allocation3 + $0x2f8] sm:$0xff] }
 0x51f   :  { %3730 = vmatpush1.bf16.msra.mxu1 %v3267_v52  ;;  %3694 = vmatprep.mubr.bf16.mxu1 %v8337_v59  ;;  %v9190_v59 = vrot.slane %v8048_v61, 1 }
 0x520   :  { %3731 = vmatprep.subr.bf16.mxu1 %v3270_v24  ;;  %v9191_v24 = vrot.slane %v8044_v42, 1 }
 0x523   :  { %3732 = vmatpush1.bf16.msra.mxu1 %v3269_v57  ;;  %v3276_v57 = vld [vmem:[#allocation3 + $0x308] sm:$0xff] }
 0x524   :  { %3733 = vmatprep.subr.bf16.mxu1 %v3272_v18  ;;  %v3275_v18 = vld [vmem:[#allocation3 + $0x300] sm:$0xff] }
 0x526   :  { %3695 = vmatmul.mubr.bf16.gmra.mrb[28].mxu1 %v8344_v46 }
 0x527   :  { %3734 = vmatpush1.bf16.msra.mxu1 %v3271_v51  ;;  %5263 = vmatprep.mubr.msk.bf16.mxu1 %vm7278_vm4, %v5262_v47  ;;  %v8361_v51 = vpack.c.bf16 %v9190_v59, %v9191_v24  ;;  %v3278_v47 = vld [vmem:[#allocation3 + $0x318] sm:$0xff]  ;;  %v3277_v59 = vld [vmem:[#allocation3 + $0x310] sm:$0xff]  ;;  %v3280_v24 = vld [vmem:[#allocation3 + $0x328] sm:$0xff] }
 0x528   :  { %3735 = vmatprep.subr.bf16.mxu1 %v3274_v25  ;;  %v9196_v25 = vrot.slane %v8046_v28, 1 }
 0x529   :  { %9390 = vst [vmem:[#allocation75_spill] sm:$0xff] %v8361_v51 }
 0x52b   :  { %3736 = vmatpush1.bf16.msra.mxu1 %v3273_v62  ;;  %v9195_v62 = vrot.slane %v8056_v19, 1 }
 0x52c   :  { %3818 = vmatprep.subr.bf16.mxu1 %v3276_v57  ;;  %v9391_v57 = vrot.slane %v8042_v34, 1 }
 0x52e   :  { %5266 = vmatmul.mubr.msk.bf16.vlgmr.msra.gmra.mrb[0].mxu1 %vm7278_vm4, %v5265_v48  ;;  %v8375_v46 = vpack.c.bf16 %v9196_v25, %v9391_v57  ;;  %v8381_v48 = vpack.c.bf16 %v9195_v62, %v9197_v8  ;;  %v9200_v57 = vrot.slane %v8064_v53, 1  ;;  %v3284_v62 = vld [vmem:[#allocation3 + $0x348] sm:$0xff]  ;;  %v3283_v8 = vld [vmem:[#allocation3 + $0x340] sm:$0xff] }
 0x52f   :  { %3819 = vmatpush1.bf16.msra.mxu1 %v3275_v18  ;;  %5269 = vmatprep.mubr.msk.bf16.mxu1 %vm7278_vm4, %v8361_v51  ;;  %v3279_v18 = vld [vmem:[#allocation3 + $0x320] sm:$0xff]  ;;  %v3282_v51 = vld [vmem:[#allocation3 + $0x338] sm:$0xff] }
 0x530   :  { %3820 = vmatprep.subr.bf16.mxu1 %v3278_v47  ;;  %9392 = vst [vmem:[#allocation76_spill] sm:$0xff] %v8375_v46  ;;  %9393 = vst [vmem:[#allocation77_spill] sm:$0xff] %v8381_v48  ;;  %v9203_v47 = vrot.slane %v8050_v16, 1 }
 0x532   :  { %v8397_v25 = vpack.c.bf16 %v9201_v1, %v9203_v47  ;;  %v3290_v47 = vld [vmem:[#allocation3 + $0x378] sm:$0xff] }
 0x533   :  { %3821 = vmatpush1.bf16.msra.mxu1 %v3277_v59  ;;  %v9202_v59 = vrot.slane %v8060_v44, 1 }
 0x534   :  { %3822 = vmatprep.subr.bf16.mxu1 %v3280_v24  ;;  %v3281_v24 = vld [vmem:[#allocation3 + $0x330] sm:$0xff] }
 0x536   :  { %5272 = vmatmul.mubr.msk.bf16.gmra.mrb[4].mxu1 %vm7278_vm4, %v8375_v46  ;;  %v9204_v46 = vrot.slane %v8062_v40, 1 }
 0x537   :  { %3823 = vmatpush1.bf16.msra.mxu1 %v3279_v18  ;;  %5275 = vmatprep.mubr.msk.bf16.mxu1 %vm7278_vm4, %v8381_v48  ;;  %v8403_v18 = vpack.c.bf16 %v9200_v57, %v9202_v59  ;;  %v3286_v48 = vld [vmem:[#allocation3 + $0x358] sm:$0xff]  ;;  %v3285_v57 = vld [vmem:[#allocation3 + $0x350] sm:$0xff]  ;;  %v3287_v59 = vld [vmem:[#allocation3 + $0x360] sm:$0xff] }
 0x538   :  { %3824 = vmatprep.subr.bf16.mxu1 %v3282_v51  ;;  %v9205_v51 = vrot.slane %v8058_v38, 1 }
 0x539   :  { %9394 = vst [vmem:[#allocation78_spill] sm:$0xff] %v8403_v18 }
 0x53a   :  { %v8418_v1 = vpack.c.bf16 %v9204_v46, %v9205_v51  ;;  %v9211_v46 = vrot.slane %v8076_v9, 1  ;;  %v3289_v51 = vld [vmem:[#allocation3 + $0x370] sm:$0xff] }
 0x53b   :  { %3825 = vmatpush1.bf16.msra.mxu1 %v3281_v24  ;;  %v9206_v24 = vrot.slane %v8072_v15, 1 }
 0x53c   :  { %3826 = vmatprep.subr.bf16.mxu1 %v3284_v62  ;;  %v3288_v62 = vld [vmem:[#allocation3 + $0x368] sm:$0xff]  ;;  %9395 = vst [vmem:[#allocation79_spill] sm:$0xff] %v8418_v1 }
 0x53e   :  { %5278 = vmatmul.mubr.msk.bf16.gmra.mrb[8].mxu1 %vm7278_vm4, %v8397_v25 }
 0x53f   :  { %3827 = vmatpush1.bf16.msra.mxu1 %v3283_v8  ;;  %5281 = vmatprep.mubr.msk.bf16.mxu1 %vm7278_vm4, %v8403_v18  ;;  %v5286_v8 = vpack.c.bf16 %v9206_v24, %v9387_v12  ;;  %v3292_v24 = vld [vmem:[#allocation3 + $0x388] sm:$0xff]  ;;  %v9215_v18 = vrot.slane %v8078_v0, 1 }
 0x540   :  { %3828 = vmatprep.subr.bf16.mxu1 %v3286_v48  ;;  %v9210_v48 = vrot.slane %v8070_v30, 1 }
 0x543   :  { %3829 = vmatpush1.bf16.msra.mxu1 %v3285_v57  ;;  %v9209_v57 = vrot.slane %v8080_v23, 1 }
 0x544   :  { %3830 = vmatprep.subr.bf16.mxu1 %v3288_v62  ;;  %v5289_v62 = vpack.c.bf16 %v9210_v48, %v9387_v12  ;;  %v3296_v48 = vld [vmem:[#allocation3 + $0x3a8] sm:$0xff]  ;;  %v9221_v12 = vrot.slane %v8086_v26, 1 }
 0x546   :  { %5284 = vmatmul.mubr.msk.bf16.gmra.mrb[12].mxu1 %vm7278_vm4, %v8418_v1  ;;  %v3294_v1 = vld [vmem:[#allocation3 + $0x398] sm:$0xff] }
 0x547   :  { %3831 = vmatpush1.bf16.msra.mxu1 %v3287_v59  ;;  %5287 = vmatprep.mubr.msk.bf16.mxu1 %vm7278_vm4, %v5286_v8  ;;  %v8438_v59 = vpack.c.bf16 %v9209_v57, %v9211_v46  ;;  %v3291_v8 = vld [vmem:[#allocation3 + $0x380] sm:$0xff]  ;;  %v9214_v57 = vrot.slane %v8088_v56, 1 }
 0x548   :  { %3832 = vmatprep.subr.bf16.mxu1 %v3290_v47  ;;  %v9217_v47 = vrot.slane %v8074_v33, 1  ;;  %v3295_v46 = vld [vmem:[#allocation3 + $0x3a0] sm:$0xff] }
 0x549   :  { %9396 = vst [vmem:[#allocation80_spill] sm:$0xff] %v8438_v59 }
 0x54b   :  { %3833 = vmatpush1.bf16.msra.mxu1 %v3289_v51  ;;  %v9216_v51 = vrot.slane %v8084_v29, 1 }
 0x54c   :  { %3834 = vmatprep.subr.bf16.mxu1 %v3292_v24  ;;  %v3293_v24 = vld [vmem:[#allocation3 + $0x390] sm:$0xff] }
 0x54e   :  { %5290 = vmatmul.mubr.msk.bf16.gmra.mrb[16].mxu1 %vm7278_vm4, %v5289_v62  ;;  %v8453_v62 = vpack.c.bf16 %v9215_v18, %v9217_v47  ;;  %v3300_v18 = vld [vmem:[#allocation3 + $0x3c8] sm:$0xff]  ;;  %v3299_v47 = vld [vmem:[#allocation3 + $0x3c0] sm:$0xff] }
 0x54f   :  { %3835 = vmatpush1.bf16.msra.mxu1 %v3291_v8  ;;  %5293 = vmatprep.mubr.msk.bf16.mxu1 %vm7278_vm4, %v8438_v59  ;;  %v8459_v8 = vpack.c.bf16 %v9214_v57, %v9216_v51  ;;  %v3298_v59 = vld [vmem:[#allocation3 + $0x3b8] sm:$0xff]  ;;  %v9220_v57 = vrot.slane %v8096_v4, 1 }
 0x550   :  { %3836 = vmatprep.subr.bf16.mxu1 %v3294_v1  ;;  %9397 = vst [vmem:[#allocation81_spill] sm:$0xff] %v8453_v62  ;;  %v9223_v1 = vrot.slane %v8082_v41, 1 }
 0x551   :  { %9398 = vst [vmem:[#allocation82_spill] sm:$0xff] %v8459_v8 }
 0x552   :  { %v8475_v51 = vpack.c.bf16 %v9221_v12, %v9223_v1  ;;  %v9401_v12 = vrot.slane %v8040_v13, 7 }
 0x553   :  { %3837 = vmatpush1.bf16.msra.mxu1 %v3293_v24  ;;  %v9222_v24 = vrot.slane %v8092_v7, 1 }
 0x554   :  { %3838 = vmatprep.subr.bf16.mxu1 %v3296_v48  ;;  %v3297_v48 = vld [vmem:[#allocation3 + $0x3b0] sm:$0xff]  ;;  %9399 = vst [vmem:[#allocation42_spill] sm:$0xff] %v8475_v51 }
 0x556   :  { %5296 = vmatmul.mubr.msk.bf16.gmra.mrb[20].mxu1 %vm7278_vm4, %v8453_v62  ;;  %v9225_v62 = vrot.slane %v8094_v35, 1 }
 0x557   :  { %3839 = vmatpush1.bf16.msra.mxu1 %v3295_v46  ;;  %5299 = vmatprep.mubr.msk.bf16.mxu1 %vm7278_vm4, %v8459_v8  ;;  %v8481_v46 = vpack.c.bf16 %v9220_v57, %v9222_v24  ;;  %v3302_v8 = vld [vmem:[#allocation3 + $0x3d8] sm:$0xff]  ;;  %v3304_v57 = vld [vmem:[#allocation3 + $0x3e8] sm:$0xff]  ;;  %v9402_v24 = vrot.slane %v8044_v42, 7 }
 0x558   :  { %3840 = vmatprep.subr.bf16.mxu1 %v3298_v59  ;;  %v9226_v59 = vrot.slane %v8090_v55, 1 }
 0x559   :  { %v5312_v1 = vpack.c.bf16 %v9402_v24, %v9401_v12  ;;  %v3310_v24 = vld [vmem:[#allocation3 + $0x418] sm:$0xff] }
 0x55b   :  { %3841 = vmatpush1.bf16.msra.mxu1 %v3297_v48  ;;  %v3301_v48 = vld [vmem:[#allocation3 + $0x3d0] sm:$0xff] }
 0x55c   :  { %3842 = vmatprep.subr.bf16.mxu1 %v3300_v18  ;;  %v8495_v18 = vpack.c.bf16 %v9225_v62, %v9226_v59  ;;  %v3308_v62 = vld [vmem:[#allocation3 + $0x408] sm:$0xff]  ;;  %v9404_v59 = vrot.slane %v8052_v63, 7 }
 0x55e   :  { %5302 = vmatmul.mubr.msk.bf16.gmra.mrb[24].mxu1 %vm7278_vm4, %v8475_v51  ;;  %9400 = vst [vmem:[#allocation58_spill] sm:$0xff] %v8495_v18  ;;  %v3306_v51 = vld [vmem:[#allocation3 + $0x3f8] sm:$0xff] }
 0x55f   :  { %3843 = vmatpush1.bf16.msra.mxu1 %v3299_v47  ;;  %5305 = vmatprep.mubr.msk.bf16.mxu1 %vm7278_vm4, %v8481_v46  ;;  %v3303_v47 = vld [vmem:[#allocation3 + $0x3e0] sm:$0xff] }
 0x560   :  { %3844 = vmatprep.subr.bf16.mxu1 %v3302_v8  ;;  %v3305_v8 = vld [vmem:[#allocation3 + $0x3f0] sm:$0xff] }
 0x563   :  { %3845 = vmatpush1.bf16.msra.mxu1 %v3301_v48  ;;  %v9403_v48 = vrot.slane %v8048_v61, 7 }
 0x564   :  { %3846 = vmatprep.subr.bf16.mxu1 %v3304_v57  ;;  %v3307_v57 = vld [vmem:[#allocation3 + $0x400] sm:$0xff] }
 0x565   :  { %v5322_v12 = vpack.c.bf16 %v9404_v59, %v9403_v48  ;;  %v9408_v59 = vrot.slane %v8060_v44, 7 }
 0x566   :  { %5308 = vmatmul.mubr.msk.bf16.gmra.mrb[28].mxu1 %vm7278_vm4, %v8495_v18 }
 0x567   :  { %3847 = vmatpush1.bf16.msra.mxu1 %v3303_v47  ;;  %5313 = vmatprep.mubr.msk.bf16.mxu1 %vm7032_vm2, %v5312_v1  ;;  %v3312_v1 = vld [vmem:[#allocation3 + $0x428] sm:$0xff]  ;;  %v9405_v47 = vrot.slane %v8046_v28, 7 }
 0x568   :  { %3848 = vmatprep.subr.bf16.mxu1 %v3306_v51  ;;  %v3309_v51 = vld [vmem:[#allocation3 + $0x410] sm:$0xff] }
 0x56b   :  { %3849 = vmatpush1.bf16.msra.mxu1 %v3305_v8  ;;  %v9406_v8 = vrot.slane %v8050_v16, 7 }
 0x56c   :  { %3931 = vmatprep.subr.bf16.mxu1 %v3308_v62  ;;  %v9407_v62 = vrot.slane %v8056_v19, 7 }
 0x56d   :  { %v5327_v18 = vpack.c.bf16 %v9406_v8, %v9405_v47  ;;  %v9409_v47 = vrot.slane %v8054_v37, 7  ;;  %v9410_v8 = vrot.slane %v8058_v38, 7 }
 0x56e   :  { %5318 = vmatmul.mubr.msk.bf16.vlgmr.msra.gmra.mrb[0].mxu1 %vm7032_vm2, %v8112_v6  ;;  %v5332_v48 = vpack.c.bf16 %v9408_v59, %v9407_v62  ;;  %v3311_v6 = vld [vmem:[#allocation3 + $0x420] sm:$0xff] }
 0x56f   :  { %3932 = vmatpush1.bf16.msra.mxu1 %v3307_v57  ;;  %5323 = vmatprep.mubr.msk.bf16.mxu1 %vm7032_vm2, %v5322_v12  ;;  %v3314_v57 = vld [vmem:[#allocation3 + $0x438] sm:$0xff]  ;;  %v9228_v12 = vrot.slane %v8068_v27, 7  ;;  %v5337_v62 = vpack.c.bf16 %v9410_v8, %v9409_v47  ;;  %v3315_v59 = vld [vmem:[#allocation3 + $0x440] sm:$0xff]  ;;  %v9412_v47 = vrot.slane %v8062_v40, 7 }
 0x570   :  { %3933 = vmatprep.subr.bf16.mxu1 %v3310_v24  ;;  %v3313_v24 = vld [vmem:[#allocation3 + $0x430] sm:$0xff] }
 0x573   :  { %3934 = vmatpush1.bf16.msra.mxu1 %v3309_v51  ;;  %v3316_v51 = vld [vmem:[#allocation3 + $0x448] sm:$0xff] }
 0x574   :  { %3935 = vmatprep.subr.bf16.mxu1 %v3312_v1  ;;  %v9411_v1 = vrot.slane %v8064_v53, 7 }
 0x576   :  { %5328 = vmatmul.mubr.msk.bf16.gmra.mrb[4].mxu1 %vm7032_vm2, %v5327_v18  ;;  %v5342_v18 = vpack.c.bf16 %v9228_v12, %v9411_v1  ;;  %v9414_v1 = vrot.slane %v8076_v9, 7  ;;  %v3319_v12 = vld [vmem:[#allocation3 + $0x460] sm:$0xff] }
 0x577   :  { %3936 = vmatpush1.bf16.msra.mxu1 %v3311_v6  ;;  %5333 = vmatprep.mubr.msk.bf16.mxu1 %vm7032_vm2, %v5332_v48  ;;  %v3318_v6 = vld [vmem:[#allocation3 + $0x458] sm:$0xff]  ;;  %v9229_v48 = vrot.slane %v8066_v21, 7 }
 0x578   :  { %3937 = vmatprep.subr.bf16.mxu1 %v3314_v57  ;;  %v3317_v57 = vld [vmem:[#allocation3 + $0x450] sm:$0xff] }
 0x579   :  { %v5347_v8 = vpack.c.bf16 %v9229_v48, %v9412_v47  ;;  %v9416_v47 = vrot.slane %v8074_v33, 7 }
 0x57b   :  { %3938 = vmatpush1.bf16.msra.mxu1 %v3313_v24  ;;  %v3320_v24 = vld [vmem:[#allocation3 + $0x468] sm:$0xff] }
 0x57c   :  { %3939 = vmatprep.subr.bf16.mxu1 %v3316_v51  ;;  %v9413_v51 = vrot.slane %v8072_v15, 7 }
 0x57e   :  { %5338 = vmatmul.mubr.msk.bf16.gmra.mrb[8].mxu1 %vm7032_vm2, %v5337_v62  ;;  %v5352_v62 = vpack.c.bf16 %v9414_v1, %v9413_v51  ;;  %v9418_v51 = vrot.slane %v8084_v29, 7 }
 0x57f   :  { %3940 = vmatpush1.bf16.msra.mxu1 %v3315_v59  ;;  %5343 = vmatprep.mubr.msk.bf16.mxu1 %vm7032_vm2, %v5342_v18  ;;  %v3322_v59 = vld [vmem:[#allocation3 + $0x478] sm:$0xff]  ;;  %v3321_v18 = vld [vmem:[#allocation3 + $0x470] sm:$0xff] }
 0x580   :  { %3941 = vmatprep.subr.bf16.mxu1 %v3318_v6  ;;  %v3324_v6 = vld [vmem:[#allocation3 + $0x488] sm:$0xff] }
 0x583   :  { %3942 = vmatpush1.bf16.msra.mxu1 %v3317_v57  ;;  %v9415_v57 = vrot.slane %v8070_v30, 7 }
 0x584   :  { %3943 = vmatprep.subr.bf16.mxu1 %v3320_v24  ;;  %v9417_v24 = vrot.slane %v8080_v23, 7 }
 0x585   :  { %v5357_v48 = vpack.c.bf16 %v9416_v47, %v9415_v57  ;;  %v9420_v57 = vrot.slane %v8082_v41, 7 }
 0x586   :  { %5348 = vmatmul.mubr.msk.bf16.gmra.mrb[12].mxu1 %vm7032_vm2, %v5347_v8  ;;  %v5362_v1 = vpack.c.bf16 %v9418_v51, %v9417_v24  ;;  %v3323_v8 = vld [vmem:[#allocation3 + $0x480] sm:$0xff]  ;;  %v9422_v24 = vrot.slane %v8092_v7, 7 }
 0x587   :  { %3944 = vmatpush1.bf16.msra.mxu1 %v3319_v12  ;;  %5353 = vmatprep.mubr.msk.bf16.mxu1 %vm7032_vm2, %v5352_v62  ;;  %v3326_v12 = vld [vmem:[#allocation3 + $0x498] sm:$0xff]  ;;  %v3325_v62 = vld [vmem:[#allocation3 + $0x490] sm:$0xff] }
 0x588   :  { %3945 = vmatprep.subr.bf16.mxu1 %v3322_v59  ;;  %v3328_v59 = vld [vmem:[#allocation3 + $0x4a8] sm:$0xff] }
 0x58b   :  { %3946 = vmatpush1.bf16.msra.mxu1 %v3321_v18  ;;  %v9419_v18 = vrot.slane %v8078_v0, 7 }
 0x58c   :  { %3947 = vmatprep.subr.bf16.mxu1 %v3324_v6  ;;  %v9421_v6 = vrot.slane %v8088_v56, 7 }
 0x58d   :  { %v5367_v47 = vpack.c.bf16 %v9420_v57, %v9419_v18  ;;  %v9423_v18 = vrot.slane %v8086_v26, 7  ;;  %v9424_v57 = vrot.slane %v8090_v55, 7 }
 0x58e   :  { %5358 = vmatmul.mubr.msk.bf16.gmra.mrb[16].mxu1 %vm7032_vm2, %v5357_v48  ;;  %v5372_v51 = vpack.c.bf16 %v9422_v24, %v9421_v6  ;;  %v3327_v48 = vld [vmem:[#allocation3 + $0x4a0] sm:$0xff] }
 0x58f   :  { %3948 = vmatpush1.bf16.msra.mxu1 %v3323_v8  ;;  %5363 = vmatprep.mubr.msk.bf16.mxu1 %vm7032_vm2, %v5362_v1  ;;  %v3330_v8 = vld [vmem:[#allocation3 + $0x4b8] sm:$0xff]  ;;  %v2910_v1 = vrot.slane %v8100_v5, 7  ;;  %v5377_v6 = vpack.c.bf16 %v9424_v57, %v9423_v18  ;;  %v3331_v24 = vld [vmem:[#allocation3 + $0x4c0] sm:$0xff]  ;;  %v9426_v18 = vrot.slane %v8094_v35, 7 }
 0x590   :  { %3949 = vmatprep.subr.bf16.mxu1 %v3326_v12  ;;  %v3329_v12 = vld [vmem:[#allocation3 + $0x4b0] sm:$0xff] }
 0x593   :  { %3950 = vmatpush1.bf16.msra.mxu1 %v3325_v62  ;;  %v3332_v62 = vld [vmem:[#allocation3 + $0x4c8] sm:$0xff] }
 0x594   :  { %3951 = vmatprep.subr.bf16.mxu1 %v3328_v59  ;;  %v9425_v59 = vrot.slane %v8096_v4, 7 }
 0x596   :  { %5368 = vmatmul.mubr.msk.bf16.gmra.mrb[20].mxu1 %vm7032_vm2, %v5367_v47  ;;  %v5382_v47 = vpack.c.bf16 %v2910_v1, %v9425_v59  ;;  %v3338_v59 = vld [vmem:[#allocation3 + $0x4f8] sm:$0xff] }
 0x597   :  { %3952 = vmatpush1.bf16.msra.mxu1 %v3327_v48  ;;  %5373 = vmatprep.mubr.msk.bf16.mxu1 %vm7032_vm2, %v5372_v51  ;;  %v3334_v48 = vld [vmem:[#allocation3 + $0x4d8] sm:$0xff]  ;;  %v2909_v51 = vrot.slane %v8098_v39, 7 }
 0x598   :  { %3953 = vmatprep.subr.bf16.mxu1 %v3330_v8  ;;  %v3333_v8 = vld [vmem:[#allocation3 + $0x4d0] sm:$0xff] }
 0x599   :  { %v5387_v57 = vpack.c.bf16 %v2909_v51, %v9426_v18  ;;  %v3339_v18 = vld [vmem:[#allocation3 + $0x500] sm:$0xff] }
 0x59b   :  { %3954 = vmatpush1.bf16.msra.mxu1 %v3329_v12  ;;  %v3336_v12 = vld [vmem:[#allocation3 + $0x4e8] sm:$0xff] }
 0x59c   :  { %3955 = vmatprep.subr.bf16.mxu1 %v3332_v62  ;;  %v3136_v62 = vpack.c.bf16 %v8044_v42, %v8040_v13 }
 0x59e   :  { %5378 = vmatmul.mubr.msk.bf16.gmra.mrb[24].mxu1 %vm7032_vm2, %v5377_v6  ;;  %v3335_v6 = vld [vmem:[#allocation3 + $0x4e0] sm:$0xff] }
 0x59f   :  { %3956 = vmatpush1.bf16.msra.mxu1 %v3331_v24  ;;  %5383 = vmatprep.mubr.msk.bf16.mxu1 %vm7032_vm2, %v5382_v47  ;;  %v3337_v47 = vld [vmem:[#allocation3 + $0x4f0] sm:$0xff]  ;;  %v3340_v24 = vld [vmem:[#allocation3 + $0x508] sm:$0xff] }
 0x5a0   :  { %3957 = vmatprep.subr.bf16.mxu1 %v3334_v48  ;;  %v3135_v48 = vpack.c.bf16 %v8042_v34, %v8038_v10  ;;  %v3140_v10 = vpack.c.bf16 %v8060_v44, %v8056_v19  ;;  %v3343_v34 = vld [vmem:[#allocation3 + $0x520] sm:$0xff] }
 0x5a3   :  { %3958 = vmatpush1.bf16.msra.mxu1 %v3333_v8  ;;  %v3138_v8 = vpack.c.bf16 %v8052_v63, %v8048_v61 }
 0x5a4   :  { %3959 = vmatprep.subr.bf16.mxu1 %v3336_v12  ;;  %v3342_v12 = vld [vmem:[#allocation3 + $0x518] sm:$0xff] }
 0x5a6   :  { %5388 = vmatmul.mubr.msk.bf16.gmra.mrb[28].mxu1 %vm7032_vm2, %v5387_v57  ;;  %v3341_v57 = vld [vmem:[#allocation3 + $0x510] sm:$0xff] }
 0x5a7   :  { %3960 = vmatpush1.bf16.msra.mxu1 %v3335_v6  ;;  %3963 = vmatprep.mubr.bf16.mxu1 %v3136_v62  ;;  %v3344_v6 = vld [vmem:[#allocation3 + $0x528] sm:$0xff]  ;;  %v3137_v62 = vpack.c.bf16 %v8050_v16, %v8046_v28 }
 0x5a8   :  { %3961 = vmatprep.subr.bf16.mxu1 %v3338_v59  ;;  %v3346_v59 = vld [vmem:[#allocation3 + $0x538] sm:$0xff] }
 0x5ab   :  { %3962 = vmatpush1.bf16.msra.mxu1 %v3337_v47  ;;  %v3345_v47 = vld [vmem:[#allocation3 + $0x530] sm:$0xff] }
 0x5ac   :  { %4044 = vmatprep.subr.bf16.mxu1 %v3340_v24  ;;  %v3348_v24 = vld [vmem:[#allocation3 + $0x548] sm:$0xff] }
 0x5ae   :  { %3964 = vmatmul.mubr.bf16.vlgmr.msra.gmra.mrb[0].mxu1 %v3135_v48  ;;  %v3139_v48 = vpack.c.bf16 %v8058_v38, %v8054_v37 }
 0x5af   :  { %4045 = vmatpush1.bf16.msra.mxu1 %v3339_v18  ;;  %3973 = vmatprep.mubr.bf16.mxu1 %v3138_v8  ;;  %v3142_v8 = vpack.c.bf16 %v8068_v27, %v8064_v53  ;;  %v3347_v18 = vld [vmem:[#allocation3 + $0x540] sm:$0xff] }
 0x5b0   :  { %4046 = vmatprep.subr.bf16.mxu1 %v3342_v12  ;;  %v3350_v12 = vld [vmem:[#allocation3 + $0x558] sm:$0xff] }
 0x5b3   :  { %4047 = vmatpush1.bf16.msra.mxu1 %v3341_v57  ;;  %v3349_v57 = vld [vmem:[#allocation3 + $0x550] sm:$0xff] }
 0x5b4   :  { %4048 = vmatprep.subr.bf16.mxu1 %v3344_v6  ;;  %v3352_v6 = vld [vmem:[#allocation3 + $0x568] sm:$0xff] }
 0x5b6   :  { %3974 = vmatmul.mubr.bf16.gmra.mrb[4].mxu1 %v3137_v62  ;;  %v3141_v62 = vpack.c.bf16 %v8066_v21, %v8062_v40 }
 0x5b7   :  { %4049 = vmatpush1.bf16.msra.mxu1 %v3343_v34  ;;  %3983 = vmatprep.mubr.bf16.mxu1 %v3140_v10  ;;  %v3144_v10 = vpack.c.bf16 %v8076_v9, %v8072_v15  ;;  %v3351_v34 = vld [vmem:[#allocation3 + $0x560] sm:$0xff] }
 0x5b8   :  { %4050 = vmatprep.subr.bf16.mxu1 %v3346_v59  ;;  %v3354_v59 = vld [vmem:[#allocation3 + $0x578] sm:$0xff] }
 0x5bb   :  { %4051 = vmatpush1.bf16.msra.mxu1 %v3345_v47  ;;  %v3353_v47 = vld [vmem:[#allocation3 + $0x570] sm:$0xff] }
 0x5bc   :  { %4052 = vmatprep.subr.bf16.mxu1 %v3348_v24  ;;  %v3356_v24 = vld [vmem:[#allocation3 + $0x588] sm:$0xff] }
 0x5be   :  { %3984 = vmatmul.mubr.bf16.gmra.mrb[8].mxu1 %v3139_v48  ;;  %v3143_v48 = vpack.c.bf16 %v8074_v33, %v8070_v30 }
 0x5bf   :  { %4053 = vmatpush1.bf16.msra.mxu1 %v3347_v18  ;;  %3993 = vmatprep.mubr.bf16.mxu1 %v3142_v8  ;;  %v3146_v8 = vpack.c.bf16 %v8084_v29, %v8080_v23  ;;  %v3355_v18 = vld [vmem:[#allocation3 + $0x580] sm:$0xff] }
 0x5c0   :  { %4054 = vmatprep.subr.bf16.mxu1 %v3350_v12  ;;  %v3358_v12 = vld [vmem:[#allocation3 + $0x598] sm:$0xff] }
 0x5c3   :  { %4055 = vmatpush1.bf16.msra.mxu1 %v3349_v57  ;;  %v3357_v57 = vld [vmem:[#allocation3 + $0x590] sm:$0xff] }
 0x5c4   :  { %4056 = vmatprep.subr.bf16.mxu1 %v3352_v6  ;;  %v3360_v6 = vld [vmem:[#allocation3 + $0x5a8] sm:$0xff] }
 0x5c6   :  { %3994 = vmatmul.mubr.bf16.gmra.mrb[12].mxu1 %v3141_v62  ;;  %v3145_v62 = vpack.c.bf16 %v8082_v41, %v8078_v0 }
 0x5c7   :  { %4057 = vmatpush1.bf16.msra.mxu1 %v3351_v34  ;;  %4003 = vmatprep.mubr.bf16.mxu1 %v3144_v10  ;;  %v3148_v10 = vpack.c.bf16 %v8092_v7, %v8088_v56  ;;  %v3359_v34 = vld [vmem:[#allocation3 + $0x5a0] sm:$0xff] }
 0x5c8   :  { %4058 = vmatprep.subr.bf16.mxu1 %v3354_v59  ;;  %v3362_v59 = vld [vmem:[#allocation3 + $0x5b8] sm:$0xff] }
 0x5cb   :  { %4059 = vmatpush1.bf16.msra.mxu1 %v3353_v47  ;;  %v3361_v47 = vld [vmem:[#allocation3 + $0x5b0] sm:$0xff] }
 0x5cc   :  { %4060 = vmatprep.subr.bf16.mxu1 %v3356_v24  ;;  %v3364_v24 = vld [vmem:[#allocation3 + $0x5c8] sm:$0xff] }
 0x5ce   :  { %4004 = vmatmul.mubr.bf16.gmra.mrb[16].mxu1 %v3143_v48  ;;  %v3147_v48 = vpack.c.bf16 %v8090_v55, %v8086_v26 }
 0x5cf   :  { %4061 = vmatpush1.bf16.msra.mxu1 %v3355_v18  ;;  %4013 = vmatprep.mubr.bf16.mxu1 %v3146_v8  ;;  %v3150_v8 = vpack.c.bf16 %v8100_v5, %v8096_v4  ;;  %v3363_v18 = vld [vmem:[#allocation3 + $0x5c0] sm:$0xff] }
 0x5d0   :  { %4062 = vmatprep.subr.bf16.mxu1 %v3358_v12  ;;  %v3366_v12 = vld [vmem:[#allocation3 + $0x5d8] sm:$0xff] }
 0x5d3   :  { %4063 = vmatpush1.bf16.msra.mxu1 %v3357_v57  ;;  %v3365_v57 = vld [vmem:[#allocation3 + $0x5d0] sm:$0xff] }
 0x5d4   :  { %4064 = vmatprep.subr.bf16.mxu1 %v3360_v6  ;;  %v3368_v6 = vld [vmem:[#allocation3 + $0x5e8] sm:$0xff] }
 0x5d6   :  { %4014 = vmatmul.mubr.bf16.gmra.mrb[20].mxu1 %v3145_v62  ;;  %v3149_v62 = vpack.c.bf16 %v8098_v39, %v8094_v35 }
 0x5d7   :  { %4065 = vmatpush1.bf16.msra.mxu1 %v3359_v34  ;;  %4023 = vmatprep.mubr.bf16.mxu1 %v3148_v10  ;;  %v9427_v10 = vrot.slane %v8040_v13, 1  ;;  %v9428_v34 = vrot.slane %v8044_v42, 1  ;;  %v3371_v42 = vld [vmem:[#allocation3 + $0x600] sm:$0xff] }
 0x5d8   :  { %4066 = vmatprep.subr.bf16.mxu1 %v3362_v59 }
 0x5d9   :  { %v5390_v59 = vpack.c.bf16 %v9428_v34, %v9427_v10  ;;  %v9431_v10 = vrot.slane %v8046_v28, 1  ;;  %v9433_v34 = vrot.slane %v8056_v19, 1  ;;  %v2990_v28 = vrot.slane %v8068_v27, 1 }
 0x5da   :  { %v9435_v19 = vrot.slane %v8054_v37, 1  ;;  %v3381_v37 = vld [vmem:[#allocation3 + $0x650] sm:$0xff] }
 0x5db   :  { %4067 = vmatpush1.bf16.msra.mxu1 %v3361_v47  ;;  %v3367_v47 = vld [vmem:[#allocation3 + $0x5e0] sm:$0xff] }
 0x5dc   :  { %4068 = vmatprep.subr.bf16.mxu1 %v3364_v24  ;;  %v3370_v24 = vld [vmem:[#allocation3 + $0x5f8] sm:$0xff] }
 0x5de   :  { %4024 = vmatmul.mubr.bf16.gmra.mrb[24].mxu1 %v3147_v48  ;;  %v3369_v48 = vld [vmem:[#allocation3 + $0x5f0] sm:$0xff] }
 0x5df   :  { %4069 = vmatpush1.bf16.msra.mxu1 %v3363_v18  ;;  %4033 = vmatprep.mubr.bf16.mxu1 %v3150_v8  ;;  %v3372_v8 = vld [vmem:[#allocation3 + $0x608] sm:$0xff]  ;;  %v9429_v18 = vrot.slane %v8048_v61, 1  ;;  %v9432_v61 = vrot.slane %v8050_v16, 1  ;;  %v3377_v16 = vld [vmem:[#allocation3 + $0x630] sm:$0xff] }
 0x5e0   :  { %4070 = vmatprep.subr.bf16.mxu1 %v3366_v12  ;;  %v9430_v12 = vrot.slane %v8052_v63, 1 }
 0x5e1   :  { %v5399_v63 = vpack.c.bf16 %v9432_v61, %v9431_v10  ;;  %v9440_v10 = vrot.slane %v8076_v9, 1  ;;  %v9443_v9 = vrot.slane %v8080_v23, 1  ;;  %v9446_v23 = vrot.slane %v8082_v41, 1  ;;  %v3393_v41 = vld [vmem:[#allocation3 + $0x6b0] sm:$0xff] }
 0x5e2   :  { %v5396_v13 = vpack.c.bf16 %v9430_v12, %v9429_v18  ;;  %v9437_v18 = vrot.slane %v8064_v53, 1  ;;  %v9438_v53 = vrot.slane %v8062_v40, 1  ;;  %v3385_v40 = vld [vmem:[#allocation3 + $0x670] sm:$0xff] }
 0x5e3   :  { %4071 = vmatpush1.bf16.msra.mxu1 %v3365_v57  ;;  %v3374_v57 = vld [vmem:[#allocation3 + $0x618] sm:$0xff] }
 0x5e4   :  { %4072 = vmatprep.subr.bf16.mxu1 %v3368_v6  ;;  %v3373_v6 = vld [vmem:[#allocation3 + $0x610] sm:$0xff]  ;;  %v5408_v12 = vpack.c.bf16 %v2990_v28, %v9437_v18  ;;  %v9448_v18 = vrot.slane %v8092_v7, 1  ;;  %v9450_v7 = vrot.slane %v8090_v55, 1  ;;  %v3400_v55 = vld [vmem:[#allocation3 + $0x6e8] sm:$0xff] }
 0x5e6   :  { %4034 = vmatmul.mubr.bf16.gmra.mrb[28].mxu1 %v3149_v62  ;;  %v3376_v62 = vld [vmem:[#allocation3 + $0x628] sm:$0xff] }
 0x5e7   :  { %4073 = vmatpush1.bf16.msra.mxu1 %v3367_v47  ;;  %5391 = vmatprep.mubr.msk.bf16.mxu1 %vm7278_vm4, %v5390_v59  ;;  %v9434_v59 = vrot.slane %v8060_v44, 1  ;;  %v9436_v44 = vrot.slane %v8058_v38, 1  ;;  %v3384_v38 = vld [vmem:[#allocation3 + $0x668] sm:$0xff] }
 0x5e8   :  { %4074 = vmatprep.subr.bf16.mxu1 %v3370_v24  ;;  %v3378_v24 = vld [vmem:[#allocation3 + $0x638] sm:$0xff] }
 0x5e9   :  { %v5402_v47 = vpack.c.bf16 %v9434_v59, %v9433_v34  ;;  %v3386_v34 = vld [vmem:[#allocation3 + $0x678] sm:$0xff]  ;;  %v3388_v59 = vld [vmem:[#allocation3 + $0x688] sm:$0xff] }
 0x5eb   :  { %4075 = vmatpush1.bf16.msra.mxu1 %v3369_v48  ;;  %v3380_v48 = vld [vmem:[#allocation3 + $0x648] sm:$0xff] }
 0x5ec   :  { %4157 = vmatprep.subr.bf16.mxu1 %v3372_v8  ;;  %v5405_v8 = vpack.c.bf16 %v9436_v44, %v9435_v19  ;;  %v3390_v19 = vld [vmem:[#allocation3 + $0x698] sm:$0xff]  ;;  %v9445_v44 = vrot.slane %v8078_v0, 1  ;;  %v3006_v0 = vrot.slane %v8100_v5, 1 }
 0x5ee   :  { %5394 = vmatmul.mubr.msk.bf16.vlgmr.msra.gmra.mrb[0].mxu1 %vm7278_vm4, %v8164_v17  ;;  %v3375_v17 = vld [vmem:[#allocation3 + $0x620] sm:$0xff] }
 0x5ef   :  { %4158 = vmatpush1.bf16.msra.mxu1 %v3371_v42  ;;  %5397 = vmatprep.mubr.msk.bf16.mxu1 %vm7278_vm4, %v5396_v13  ;;  %v3379_v13 = vld [vmem:[#allocation3 + $0x640] sm:$0xff]  ;;  %v3382_v42 = vld [vmem:[#allocation3 + $0x658] sm:$0xff] }
 0x5f0   :  { %4159 = vmatprep.subr.bf16.mxu1 %v3374_v57  ;;  %v2989_v57 = vrot.slane %v8066_v21, 1 }
 0x5f3   :  { %4160 = vmatpush1.bf16.msra.mxu1 %v3373_v6  ;;  %v5411_v6 = vpack.c.bf16 %v2989_v57, %v9438_v53  ;;  %v9451_v53 = vrot.slane %v8096_v4, 1  ;;  %v9452_v4 = vrot.slane %v8094_v35, 1  ;;  %v3403_v35 = vld [vmem:[#allocation3 + $0x700] sm:$0xff] }
 0x5f4   :  { %4161 = vmatprep.subr.bf16.mxu1 %v3376_v62  ;;  %v9439_v62 = vrot.slane %v8072_v15, 1  ;;  %v9442_v15 = vrot.slane %v8074_v33, 1  ;;  %v3392_v33 = vld [vmem:[#allocation3 + $0x6a8] sm:$0xff] }
 0x5f6   :  { %5400 = vmatmul.mubr.msk.bf16.gmra.mrb[4].mxu1 %vm7278_vm4, %v5399_v63  ;;  %v5414_v61 = vpack.c.bf16 %v9440_v10, %v9439_v62  ;;  %v3383_v63 = vld [vmem:[#allocation3 + $0x660] sm:$0xff]  ;;  %v3398_v10 = vld [vmem:[#allocation3 + $0x6d8] sm:$0xff] }
 0x5f7   :  { %4162 = vmatpush1.bf16.msra.mxu1 %v3375_v17  ;;  %5403 = vmatprep.mubr.msk.bf16.mxu1 %vm7278_vm4, %v5402_v47  ;;  %v9441_v47 = vrot.slane %v8070_v30, 1  ;;  %v3389_v30 = vld [vmem:[#allocation3 + $0x690] sm:$0xff]  ;;  %v3395_v62 = vld [vmem:[#allocation3 + $0x6c0] sm:$0xff] }
 0x5f8   :  { %4163 = vmatprep.subr.bf16.mxu1 %v3378_v24  ;;  %v9444_v24 = vrot.slane %v8084_v29, 1  ;;  %v9447_v29 = vrot.slane %v8088_v56, 1  ;;  %v9449_v56 = vrot.slane %v8086_v26, 1  ;;  %v3397_v26 = vld [vmem:[#allocation3 + $0x6d0] sm:$0xff] }
 0x5f9   :  { %v5417_v17 = vpack.c.bf16 %v9442_v15, %v9441_v47  ;;  %v3404_v47 = vld [vmem:[#allocation3 + $0x708] sm:$0xff]  ;;  %v3406_v15 = vld [vmem:[#allocation3 + $0x718] sm:$0xff] }
 0x5fb   :  { %4164 = vmatpush1.bf16.msra.mxu1 %v3377_v16  ;;  %v5420_v16 = vpack.c.bf16 %v9444_v24, %v9443_v9  ;;  %v3408_v9 = vld [vmem:[#allocation3 + $0x728] sm:$0xff]  ;;  %v3410_v24 = vld [vmem:[#allocation3 + $0x738] sm:$0xff] }
 0x5fc   :  { %4165 = vmatprep.subr.bf16.mxu1 %v3380_v48  ;;  %v3387_v48 = vld [vmem:[#allocation3 + $0x680] sm:$0xff] }
 0x5fe   :  { %5406 = vmatmul.mubr.msk.bf16.gmra.mrb[8].mxu1 %vm7278_vm4, %v5405_v8  ;;  %v5423_v8 = vpack.c.bf16 %v9446_v23, %v9445_v44  ;;  %v3415_v23 = vld [vmem:[#allocation3 + $0x760] sm:$0xff] }
 0x5ff   :  { %4166 = vmatpush1.bf16.msra.mxu1 %v3379_v13  ;;  %5409 = vmatprep.mubr.msk.bf16.mxu1 %vm7278_vm4, %v5408_v12  ;;  %v5426_v12 = vpack.c.bf16 %v9448_v18, %v9447_v29  ;;  %v3391_v13 = vld [vmem:[#allocation3 + $0x6a0] sm:$0xff]  ;;  %v3420_v29 = vld [vmem:[#allocation3 + $0x788] sm:$0xff] }
 0x600   :  { %4167 = vmatprep.subr.bf16.mxu1 %v3382_v42  ;;  %v3394_v42 = vld [vmem:[#allocation3 + $0x6b8] sm:$0xff]  ;;  %v3419_v18 = vld [vmem:[#allocation3 + $0x780] sm:$0xff] }
 0x603   :  { %4168 = vmatpush1.bf16.msra.mxu1 %v3381_v37  ;;  %v3396_v37 = vld [vmem:[#allocation3 + $0x6c8] sm:$0xff] }
 0x604   :  { %4169 = vmatprep.subr.bf16.mxu1 %v3384_v38  ;;  %v5429_v38 = vpack.c.bf16 %v9450_v7, %v9449_v56  ;;  %v3427_v56 = vld [vmem:[#allocation3 + $0x7c0] sm:$0xff]  ;;  %v3430_v7 = vld [vmem:[#allocation3 + $0x7d8] sm:$0xff] }
 0x606   :  { %5412 = vmatmul.mubr.msk.bf16.gmra.mrb[12].mxu1 %vm7278_vm4, %v5411_v6  ;;  %v5432_v6 = vpack.c.bf16 %v3006_v0, %v9451_v53  ;;  %v3434_v53 = vld [vmem:[#allocation3 + $0x7f8] sm:$0xff] }
 0x607   :  { %4170 = vmatpush1.bf16.msra.mxu1 %v3383_v63  ;;  %5415 = vmatprep.mubr.msk.bf16.mxu1 %vm7278_vm4, %v5414_v61  ;;  %v3005_v61 = vrot.slane %v8098_v39, 1 }
 0x608   :  { %4171 = vmatprep.subr.bf16.mxu1 %v3386_v34  ;;  %v3399_v34 = vld [vmem:[#allocation3 + $0x6e0] sm:$0xff] }
 0x609   :  { %v5435_v63 = vpack.c.bf16 %v3005_v61, %v9452_v4  ;;  %v9457_v4 = vld [vmem:[#allocation65_spill] sm:$0xff] }
 0x60b   :  { %4172 = vmatpush1.bf16.msra.mxu1 %v3385_v40  ;;  %v3402_v40 = vld [vmem:[#allocation3 + $0x6f8] sm:$0xff] }
 0x60c   :  { %4173 = vmatprep.subr.bf16.mxu1 %v3388_v59  ;;  %v3401_v59 = vld [vmem:[#allocation3 + $0x6f0] sm:$0xff] }
 0x60e   :  { %5418 = vmatmul.mubr.msk.bf16.gmra.mrb[16].mxu1 %vm7278_vm4, %v5417_v17  ;;  %v3405_v17 = vld [vmem:[#allocation3 + $0x710] sm:$0xff] }
 0x60f   :  { %4174 = vmatpush1.bf16.msra.mxu1 %v3387_v48  ;;  %5421 = vmatprep.mubr.msk.bf16.mxu1 %vm7278_vm4, %v5420_v16  ;;  %v3412_v16 = vld [vmem:[#allocation3 + $0x748] sm:$0xff] }
 0x610   :  { %4175 = vmatprep.subr.bf16.mxu1 %v3390_v19  ;;  %v3411_v19 = vld [vmem:[#allocation3 + $0x740] sm:$0xff] }
 0x613   :  { %4176 = vmatpush1.bf16.msra.mxu1 %v3389_v30  ;;  %v3414_v30 = vld [vmem:[#allocation3 + $0x758] sm:$0xff] }
 0x614   :  { %4177 = vmatprep.subr.bf16.mxu1 %v3392_v33  ;;  %v9454_v33 = vrot.slane %v8066_v21, 7 }
 0x616   :  { %5424 = vmatmul.mubr.msk.bf16.gmra.mrb[20].mxu1 %vm7278_vm4, %v5423_v8  ;;  %v5475_v44 = vpack.c.bf16 %v7028_v22, %v9454_v33  ;;  %v3418_v8 = vld [vmem:[#allocation3 + $0x778] sm:$0xff]  ;;  %v3456_v33 = vld [vmem:[#allocation3 + $0x8a8] sm:$0xff] }
 0x617   :  { %4178 = vmatpush1.bf16.msra.mxu1 %v3391_v13  ;;  %5427 = vmatprep.mubr.msk.bf16.mxu1 %vm7278_vm4, %v5426_v12  ;;  %v3422_v12 = vld [vmem:[#allocation3 + $0x798] sm:$0xff]  ;;  %v3421_v13 = vld [vmem:[#allocation3 + $0x790] sm:$0xff] }
 0x618   :  { %4179 = vmatprep.subr.bf16.mxu1 %v3394_v42  ;;  %v3424_v42 = vld [vmem:[#allocation3 + $0x7a8] sm:$0xff] }
 0x61b   :  { %4180 = vmatpush1.bf16.msra.mxu1 %v3393_v41  ;;  %v3426_v41 = vld [vmem:[#allocation3 + $0x7b8] sm:$0xff] }
 0x61c   :  { %4181 = vmatprep.subr.bf16.mxu1 %v3396_v37  ;;  %v3428_v37 = vld [vmem:[#allocation3 + $0x7c8] sm:$0xff] }
 0x61e   :  { %5430 = vmatmul.mubr.msk.bf16.gmra.mrb[24].mxu1 %vm7278_vm4, %v5429_v38  ;;  %v5515_v38 = vpack.c.bf16 %v7028_v22, %v2909_v51  ;;  %v3437_v51 = vld [vmem:[#allocation3 + $0x810] sm:$0xff] }
 0x61f   :  { %4182 = vmatpush1.bf16.msra.mxu1 %v3395_v62  ;;  %5433 = vmatprep.mubr.msk.bf16.mxu1 %vm7278_vm4, %v5432_v6  ;;  %v3436_v6 = vld [vmem:[#allocation3 + $0x808] sm:$0xff]  ;;  %v3435_v62 = vld [vmem:[#allocation3 + $0x800] sm:$0xff] }
 0x620   :  { %4183 = vmatprep.subr.bf16.mxu1 %v3398_v10  ;;  %v3438_v10 = vld [vmem:[#allocation3 + $0x818] sm:$0xff] }
 0x623   :  { %4184 = vmatpush1.bf16.msra.mxu1 %v3397_v26  ;;  %v3440_v26 = vld [vmem:[#allocation3 + $0x828] sm:$0xff] }
 0x624   :  { %4185 = vmatprep.subr.bf16.mxu1 %v3400_v55  ;;  %v3442_v55 = vld [vmem:[#allocation3 + $0x838] sm:$0xff] }
 0x626   :  { %5436 = vmatmul.mubr.msk.bf16.gmra.mrb[28].mxu1 %vm7278_vm4, %v5435_v63  ;;  %v3441_v63 = vld [vmem:[#allocation3 + $0x830] sm:$0xff] }
 0x627   :  { %4186 = vmatpush1.bf16.msra.mxu1 %v3399_v34  ;;  %5441 = vmatprep.mubr.msk.bf16.mxu1 %vm7032_vm2, %v8131_v43  ;;  %v3407_v43 = vld [vmem:[#allocation3 + $0x720] sm:$0xff]  ;;  %v3444_v34 = vld [vmem:[#allocation3 + $0x848] sm:$0xff] }
 0x628   :  { %4187 = vmatprep.subr.bf16.mxu1 %v3402_v40 }
 0x62b   :  { %4188 = vmatpush1.bf16.msra.mxu1 %v3401_v59  ;;  %v3443_v59 = vld [vmem:[#allocation3 + $0x840] sm:$0xff] }
 0x62c   :  { %4270 = vmatprep.subr.bf16.mxu1 %v3404_v47  ;;  %v3446_v47 = vld [vmem:[#allocation3 + $0x858] sm:$0xff] }
 0x62e   :  { %5446 = vmatmul.mubr.msk.bf16.vlgmr.msra.gmra.mrb[0].mxu1 %vm7032_vm2, %v8145_v49  ;;  %v3409_v49 = vld [vmem:[#allocation3 + $0x730] sm:$0xff] }
 0x62f   :  { %4271 = vmatpush1.bf16.msra.mxu1 %v3403_v35  ;;  %5451 = vmatprep.mubr.msk.bf16.mxu1 %vm7032_vm2, %v8151_v14  ;;  %v9453_v14 = vrot.slane %v8068_v27, 7  ;;  %v9459_v35 = vld [vmem:[#allocation66_spill] sm:$0xff] }
 0x630   :  { %4272 = vmatprep.subr.bf16.mxu1 %v3406_v15  ;;  %v3445_v15 = vld [vmem:[#allocation3 + $0x850] sm:$0xff] }
 0x631   :  { %v5470_v48 = vpack.c.bf16 %v7028_v22, %v9453_v14  ;;  %v3452_v14 = vld [vmem:[#allocation3 + $0x888] sm:$0xff] }
 0x633   :  { %4273 = vmatpush1.bf16.msra.mxu1 %v3405_v17  ;;  %v3448_v17 = vld [vmem:[#allocation3 + $0x868] sm:$0xff] }
 0x634   :  { %4274 = vmatprep.subr.bf16.mxu1 %v3408_v9 }
 0x636   :  { %5456 = vmatmul.mubr.msk.bf16.gmra.mrb[4].mxu1 %vm7032_vm2, %v8175_v32  ;;  %v3413_v32 = vld [vmem:[#allocation3 + $0x750] sm:$0xff] }
 0x637   :  { %4275 = vmatpush1.bf16.msra.mxu1 %v3407_v43  ;;  %5461 = vmatprep.mubr.msk.bf16.mxu1 %vm7032_vm2, %v8181_v31  ;;  %v3416_v31 = vld [vmem:[#allocation3 + $0x768] sm:$0xff]  ;;  %v3447_v43 = vld [vmem:[#allocation3 + $0x860] sm:$0xff] }
 0x638   :  { %4276 = vmatprep.subr.bf16.mxu1 %v3410_v24  ;;  %v3450_v24 = vld [vmem:[#allocation3 + $0x878] sm:$0xff] }
 0x63b   :  { %4277 = vmatpush1.bf16.msra.mxu1 %v3409_v49  ;;  %v9460_v49 = vld [vmem:[#allocation67_spill] sm:$0xff] }
 0x63c   :  { %4278 = vmatprep.subr.bf16.mxu1 %v3412_v16  ;;  %v3449_v16 = vld [vmem:[#allocation3 + $0x870] sm:$0xff] }
 0x63e   :  { %5466 = vmatmul.mubr.msk.bf16.gmra.mrb[8].mxu1 %vm7032_vm2, %v8196_v2  ;;  %v3417_v2 = vld [vmem:[#allocation3 + $0x770] sm:$0xff] }
 0x63f   :  { %4279 = vmatpush1.bf16.msra.mxu1 %v3411_v19  ;;  %5471 = vmatprep.mubr.msk.bf16.mxu1 %vm7032_vm2, %v5470_v48  ;;  %v3451_v48 = vld [vmem:[#allocation3 + $0x880] sm:$0xff]  ;;  %v3454_v19 = vld [vmem:[#allocation3 + $0x898] sm:$0xff] }
 0x640   :  { %4280 = vmatprep.subr.bf16.mxu1 %v3414_v30  ;;  %v9461_v30 = vld [vmem:[#allocation68_spill] sm:$0xff] }
 0x643   :  { %4281 = vmatpush1.bf16.msra.mxu1 %v3413_v32  ;;  %v9462_v32 = vld [vmem:[#allocation69_spill] sm:$0xff] }
 0x644   :  { %4282 = vmatprep.subr.bf16.mxu1 %v3416_v31  ;;  %v3453_v31 = vld [vmem:[#allocation3 + $0x890] sm:$0xff] }
 0x646   :  { %5476 = vmatmul.mubr.msk.bf16.gmra.mrb[12].mxu1 %vm7032_vm2, %v5475_v44  ;;  %v3455_v44 = vld [vmem:[#allocation3 + $0x8a0] sm:$0xff] }
 0x647   :  { %4283 = vmatpush1.bf16.msra.mxu1 %v3415_v23  ;;  %5481 = vmatprep.mubr.msk.bf16.mxu1 %vm7032_vm2, %v8216_v54  ;;  %v3423_v54 = vld [vmem:[#allocation3 + $0x7a0] sm:$0xff]  ;;  %v3458_v23 = vld [vmem:[#allocation3 + $0x8b8] sm:$0xff] }
 0x648   :  { %4284 = vmatprep.subr.bf16.mxu1 %v3418_v8  ;;  %v9463_v8 = vld [vmem:[#allocation70_spill] sm:$0xff] }
 0x64b   :  { %4285 = vmatpush1.bf16.msra.mxu1 %v3417_v2  ;;  %v9464_v2 = vld [vmem:[#allocation72_spill] sm:$0xff] }
 0x64c   :  { %4286 = vmatprep.subr.bf16.mxu1 %v3420_v29  ;;  %v3457_v29 = vld [vmem:[#allocation3 + $0x8b0] sm:$0xff] }
 0x64e   :  { %5486 = vmatmul.mubr.msk.bf16.gmra.mrb[16].mxu1 %vm7032_vm2, %v8231_v20  ;;  %v3425_v20 = vld [vmem:[#allocation3 + $0x7b0] sm:$0xff] }
 0x64f   :  { %4287 = vmatpush1.bf16.msra.mxu1 %v3419_v18  ;;  %5491 = vmatprep.mubr.msk.bf16.mxu1 %vm7032_vm2, %v8237_v36  ;;  %v5510_v36 = vpack.c.bf16 %v7028_v22, %v2910_v1  ;;  %v3431_v1 = vld [vmem:[#allocation3 + $0x7e0] sm:$0xff]  ;;  %v3460_v18 = vld [vmem:[#allocation3 + $0x8c8] sm:$0xff] }
 0x650   :  { %4288 = vmatprep.subr.bf16.mxu1 %v3422_v12  ;;  %v9455_v22 = vld [vmem:[#allocation63_spill] sm:$0xff] }
 0x653   :  { %4289 = vmatpush1.bf16.msra.mxu1 %v3421_v13  ;;  %v3459_v13 = vld [vmem:[#allocation3 + $0x8c0] sm:$0xff] }
 0x654   :  { %4290 = vmatprep.subr.bf16.mxu1 %v3424_v42  ;;  %v3462_v42 = vld [vmem:[#allocation3 + $0x8d8] sm:$0xff] }
 0x656   :  { %5496 = vmatmul.mubr.msk.bf16.gmra.mrb[20].mxu1 %vm7032_vm2, %v8253_v60  ;;  %v3429_v60 = vld [vmem:[#allocation3 + $0x7d0] sm:$0xff] }
 0x657   :  { %4291 = vmatpush1.bf16.msra.mxu1 %v3423_v54  ;;  %5501 = vmatprep.mubr.msk.bf16.mxu1 %vm7032_vm2, %v8259_v50  ;;  %v3432_v50 = vld [vmem:[#allocation3 + $0x7e8] sm:$0xff]  ;;  %v9465_v54 = vld [vmem:[#allocation74_spill] sm:$0xff] }
 0x658   :  { %4292 = vmatprep.subr.bf16.mxu1 %v3426_v41  ;;  %v3461_v41 = vld [vmem:[#allocation3 + $0x8d0] sm:$0xff] }
 0x65b   :  { %4293 = vmatpush1.bf16.msra.mxu1 %v3425_v20  ;;  %v3464_v20 = vld [vmem:[#allocation3 + $0x8e8] sm:$0xff] }
 0x65c   :  { %4294 = vmatprep.subr.bf16.mxu1 %v3428_v37 }
 0x65e   :  { %5506 = vmatmul.mubr.msk.bf16.gmra.mrb[24].mxu1 %vm7032_vm2, %v8273_v58  ;;  %v3433_v58 = vld [vmem:[#allocation3 + $0x7f0] sm:$0xff] }
 0x65f   :  { %4295 = vmatpush1.bf16.msra.mxu1 %v3427_v56  ;;  %5511 = vmatprep.mubr.msk.bf16.mxu1 %vm7032_vm2, %v5510_v36  ;;  %v3463_v36 = vld [vmem:[#allocation3 + $0x8e0] sm:$0xff]  ;;  %v3466_v56 = vld [vmem:[#allocation3 + $0x8f8] sm:$0xff] }
 0x660   :  { %4296 = vmatprep.subr.bf16.mxu1 %v3430_v7  ;;  %v9466_v7 = vld [vmem:[#allocation75_spill] sm:$0xff] }
 0x663   :  { %4297 = vmatpush1.bf16.msra.mxu1 %v3429_v60  ;;  %v3465_v60 = vld [vmem:[#allocation3 + $0x8f0] sm:$0xff] }
 0x664   :  { %4298 = vmatprep.subr.bf16.mxu1 %v3432_v50  ;;  %v9467_v50 = vld [vmem:[#allocation76_spill] sm:$0xff] }
 0x666   :  { %5516 = vmatmul.mubr.msk.bf16.gmra.mrb[28].mxu1 %vm7032_vm2, %v5515_v38  ;;  %v9468_v38 = vld [vmem:[#allocation77_spill] sm:$0xff] }
 0x667   :  { %4299 = vmatpush1.bf16.msra.mxu1 %v3431_v1  ;;  %4302 = vmatprep.mubr.bf16.mxu1 %v8284_v11  ;;  %v9456_v11 = vld [vmem:[#allocation64_spill] sm:$0xff]  ;;  %v9469_v1 = vld [vmem:[#allocation78_spill] sm:$0xff] }
 0x668   :  { %4300 = vmatprep.subr.bf16.mxu1 %v3434_v53  ;;  %v9470_v53 = vld [vmem:[#allocation71_spill] sm:$0xff] }
 0x66b   :  { %4301 = vmatpush1.bf16.msra.mxu1 %v3433_v58  ;;  %v5536_v58 = vpack.c.bf16 %v9470_v53, %v2990_v28  ;;  %v9474_v28 = vld [vmem:[#allocation82_spill] sm:$0xff] }
 0x66c   :  { %4383 = vmatprep.subr.bf16.mxu1 %v3436_v6  ;;  %v9471_v6 = vld [vmem:[#allocation79_spill] sm:$0xff] }
 0x66e   :  { %4303 = vmatmul.mubr.bf16.vlgmr.msra.gmra.mrb[0].mxu1 %v8289_v45  ;;  %v9458_v45 = vmov 0.0  }
 0x66f   :  { %4384 = vmatpush1.bf16.msra.mxu1 %v3435_v62  ;;  %4312 = vmatprep.mubr.bf16.mxu1 %v9455_v22  ;;  %v3172_v40 = vpack.c.bf16 %v9458_v45, %v8068_v27  ;;  %v3171_v9 = vpack.c.bf16 %v9458_v45, %v8066_v21  ;;  %v3174_v12 = vpack.c.bf16 %v9458_v45, %v8100_v5  ;;  %v9473_v27 = vld [vmem:[#allocation81_spill] sm:$0xff]  ;;  %v9476_v21 = vld [vmem:[#allocation58_spill] sm:$0xff] }
 0x670   :  { %4385 = vmatprep.subr.bf16.mxu1 %v3438_v10  ;;  %v3173_v37 = vpack.c.bf16 %v9458_v45, %v8098_v39  ;;  %v5539_v62 = vpack.c.bf16 %v9470_v53, %v2989_v57  ;;  %v9475_v10 = vld [vmem:[#allocation42_spill] sm:$0xff]  ;;  %v5560_v57 = vpack.c.bf16 %v9470_v53, %v3006_v0  ;;  %v5563_v22 = vpack.c.bf16 %v9470_v53, %v3005_v61 }
 0x673   :  { %4386 = vmatpush1.bf16.msra.mxu1 %v3437_v51 }
 0x674   :  { %4387 = vmatprep.subr.bf16.mxu1 %v3440_v26 }
 0x676   :  { %4313 = vmatmul.mubr.bf16.gmra.mrb[4].mxu1 %v9456_v11 }
 0x677   :  { %4388 = vmatpush1.bf16.msra.mxu1 %v3439_v3  ;;  %4322 = vmatprep.mubr.bf16.mxu1 %v9457_v4 }
 0x678   :  { %4389 = vmatprep.subr.bf16.mxu1 %v3442_v55 }
 0x67b   :  { %4390 = vmatpush1.bf16.msra.mxu1 %v3441_v63 }
 0x67c   :  { %4391 = vmatprep.subr.bf16.mxu1 %v3444_v34 }
 0x67e   :  { %4323 = vmatmul.mubr.bf16.gmra.mrb[8].mxu1 %v9459_v35 }
 0x67f   :  { %4392 = vmatpush1.bf16.msra.mxu1 %v3443_v59  ;;  %4332 = vmatprep.mubr.bf16.mxu1 %v3172_v40 }
 0x680   :  { %4393 = vmatprep.subr.bf16.mxu1 %v3446_v47 }
 0x683   :  { %4394 = vmatpush1.bf16.msra.mxu1 %v3445_v15 }
 0x684   :  { %4395 = vmatprep.subr.bf16.mxu1 %v3448_v17 }
 0x686   :  { %4333 = vmatmul.mubr.bf16.gmra.mrb[12].mxu1 %v3171_v9 }
 0x687   :  { %4396 = vmatpush1.bf16.msra.mxu1 %v3447_v43  ;;  %4342 = vmatprep.mubr.bf16.mxu1 %v9460_v49 }
 0x688   :  { %4397 = vmatprep.subr.bf16.mxu1 %v3450_v24 }
 0x68b   :  { %4398 = vmatpush1.bf16.msra.mxu1 %v3449_v16 }
 0x68c   :  { %4399 = vmatprep.subr.bf16.mxu1 %v3452_v14 }
 0x68e   :  { %4343 = vmatmul.mubr.bf16.gmra.mrb[16].mxu1 %v9461_v30 }
 0x68f   :  { %4400 = vmatpush1.bf16.msra.mxu1 %v3451_v48  ;;  %4352 = vmatprep.mubr.bf16.mxu1 %v9462_v32 }
 0x690   :  { %4401 = vmatprep.subr.bf16.mxu1 %v3454_v19 }
 0x693   :  { %4402 = vmatpush1.bf16.msra.mxu1 %v3453_v31 }
 0x694   :  { %4403 = vmatprep.subr.bf16.mxu1 %v3456_v33 }
 0x696   :  { %4353 = vmatmul.mubr.bf16.gmra.mrb[20].mxu1 %v9463_v8 }
 0x697   :  { %4404 = vmatpush1.bf16.msra.mxu1 %v3455_v44  ;;  %4362 = vmatprep.mubr.bf16.mxu1 %v9464_v2 }
 0x698   :  { %4405 = vmatprep.subr.bf16.mxu1 %v3458_v23 }
 0x69b   :  { %4406 = vmatpush1.bf16.msra.mxu1 %v3457_v29 }
 0x69c   :  { %4407 = vmatprep.subr.bf16.mxu1 %v3460_v18 }
 0x69e   :  { %4363 = vmatmul.mubr.bf16.gmra.mrb[24].mxu1 %v9465_v54 }
 0x69f   :  { %4408 = vmatpush1.bf16.msra.mxu1 %v3459_v13  ;;  %4372 = vmatprep.mubr.bf16.mxu1 %v3174_v12 }
 0x6a0   :  { %4409 = vmatprep.subr.bf16.mxu1 %v3462_v42 }
 0x6a3   :  { %4410 = vmatpush1.bf16.msra.mxu1 %v3461_v41 }
 0x6a4   :  { %4411 = vmatprep.subr.bf16.mxu1 %v3464_v20 }
 0x6a6   :  { %4373 = vmatmul.mubr.bf16.gmra.mrb[28].mxu1 %v3173_v37 }
 0x6a7   :  { %4412 = vmatpush1.bf16.msra.mxu1 %v3463_v36  ;;  %5519 = vmatprep.mubr.msk.bf16.mxu1 %vm7278_vm4, %v9466_v7 }
 0x6a8   :  { %4413 = vmatprep.subr.bf16.mxu1 %v3466_v56 }
 0x6ab   :  { %4414 = vmatpush1.bf16.msra.mxu1 %v3465_v60 }
 0x6ae   :  { %5522 = vmatmul.mubr.msk.bf16.vlgmr.msra.gmra.mrb[0].mxu1 %vm7278_vm4, %v9467_v50 }
 0x6af   :  { %5525 = vmatprep.mubr.msk.bf16.mxu1 %vm7278_vm4, %v9468_v38 }
 0x6b6   :  { %5528 = vmatmul.mubr.msk.bf16.gmra.mrb[4].mxu1 %vm7278_vm4, %v8397_v25  ;;  %v9472_v25 = vld [vmem:[#allocation80_spill] sm:$0xff] }
 0x6b7   :  { %5531 = vmatprep.mubr.msk.bf16.mxu1 %vm7278_vm4, %v9469_v1 }
 0x6be   :  { %5534 = vmatmul.mubr.msk.bf16.gmra.mrb[8].mxu1 %vm7278_vm4, %v9471_v6 }
 0x6bf   :  { %5537 = vmatprep.mubr.msk.bf16.mxu1 %vm7278_vm4, %v5536_v58 }
 0x6c6   :  { %5540 = vmatmul.mubr.msk.bf16.gmra.mrb[12].mxu1 %vm7278_vm4, %v5539_v62 }
 0x6c7   :  { %5543 = vmatprep.mubr.msk.bf16.mxu1 %vm7278_vm4, %v9472_v25 }
 0x6ce   :  { %5546 = vmatmul.mubr.msk.bf16.gmra.mrb[16].mxu1 %vm7278_vm4, %v9473_v27 }
 0x6cf   :  { %5549 = vmatprep.mubr.msk.bf16.mxu1 %vm7278_vm4, %v9474_v28 }
 0x6d6   :  { %5552 = vmatmul.mubr.msk.bf16.gmra.mrb[20].mxu1 %vm7278_vm4, %v9475_v10 }
 0x6d7   :  { %5555 = vmatprep.mubr.msk.bf16.mxu1 %vm7278_vm4, %v8481_v46 }
 0x6de   :  { %5558 = vmatmul.mubr.msk.bf16.gmra.mrb[24].mxu1 %vm7278_vm4, %v9476_v21 }
 0x6df   :  { %5561 = vmatprep.mubr.msk.bf16.mxu1 %vm7278_vm4, %v5560_v57 }
 0x6e6   :  { %5564 = vmatmul.mubr.msk.bf16.gmra.mrb[28].mxu1 %vm7278_vm4, %v5563_v22 }
 0x781   :  { %v8858_v51 = vpop.f32.mrb[0].mxu1 }
 0x782   :  { %v8860_v46 = vpop.f32.mrb[1].mxu1 }
 0x783   :  { %v8862_v26 = vpop.f32.mrb[2].mxu1 }
 0x784   :  { %v8864_v3 = vpop.f32.mrb[3].mxu1 }
 0x789   :  { %v8866_v5 = vpop.f32.mrb[4].mxu1 }
 0x78a   :  { %v8868_v0 = vpop.f32.mrb[5].mxu1 }
 0x78b   :  { %v8870_v39 = vpop.f32.mrb[6].mxu1 }
 0x78c   :  { %v8872_v61 = vpop.f32.mrb[7].mxu1 }
 0x791   :  { %v8874_v55 = vpop.f32.mrb[8].mxu1 }
 0x792   :  { %v8876_v52 = vpop.f32.mrb[9].mxu1 }
 0x793   :  { %v8878_v11 = vpop.f32.mrb[10].mxu1 }
 0x794   :  { %v8880_v4 = vpop.f32.mrb[11].mxu1 }
 0x799   :  { %v8882_v63 = vpop.f32.mrb[12].mxu1 }
 0x79a   :  { %v8884_v34 = vpop.f32.mrb[13].mxu1 }
 0x79b   :  { %v8886_v45 = vpop.f32.mrb[14].mxu1 }
 0x79c   :  { %v8888_v40 = vpop.f32.mrb[15].mxu1 }
 0x79d   :  { %6362 = dma.done.wait [#allocation5 + $0x2], 4096 }
 0x79e   :  { %6363 = vsyncadd [#allocation5 + $0x2], 4294963200  ;;  %v9477_v59 = vld [vmem:[#allocation25_spill] sm:$0xff]  ;;  %v9478_v47 = vld [vmem:[#allocation27_spill] sm:$0xff]  ;;  %s6382_s1 = smov [#allocation12]  }
 0x79f   :  { %v4501_v35 = vpack.c.bf16 %v9478_v47, %v9477_v59  ;;  %v9479_v15 = vld [vmem:[#allocation41_spill] sm:$0xff]  ;;  %v4516_v24 = vld [vmem:[#allocation4] sm:$0xff]  ;;  %v4519_v49 = vld [vmem:[#allocation4 + $0x18] sm:$0xff]  ;;  %s4742_s2 = sshll.u32 %s6382_s1, 4  ;;  %s4743_s2 = int_to_ptr.vmem [resolvable:$true] %s4742_s2 }
 0x7a0   :  { %v9480_v17 = vld [vmem:[#allocation45_spill] sm:$0xff]  ;;  %v4520_v48 = vld [vmem:[#allocation4 + $0x20] sm:$0xff]  ;;  %v4523_v19 = vld [vmem:[#allocation4 + $0x38] sm:$0xff]  ;;  %s6332_s4 = scalar_lea.vmem %s4743_s2, 4096  ;;  %p6337_p11 = scmp.lt.s32.totalorder %s4743_s2, %s4743_s2 }
 0x7a1   :  { %v4509_v9 = vpack.c.bf16 %v9480_v17, %v9479_v15  ;;  %4592 = vmatprep.mubr.bf16.mxu0 %v4501_v35  ;;  %v4517_v43 = vld [vmem:[#allocation4 + $0x8] sm:$0xff]  ;;  %v4518_v16 = vld [vmem:[#allocation4 + $0x10] sm:$0xff]  ;;  %v4524_v31 = vld [vmem:[#allocation4 + $0x40] sm:$0xff]  ;;  %p6333_p10 = scmp.ne.s32.totalorder %s4743_s2, %s6332_s4  ;;  %p6338_p12 = scmp.lt.s32.totalorder %s6332_s4, %s6332_s4 }
 0x7a2   :  { %4560 = vmatprep.subr.bf16.mxu0 %v4517_v43  ;;  %5568 = vmatprep.subr.bf16.mxu1 %v4517_v43  ;;  %v4521_v14 = vld [vmem:[#allocation4 + $0x28] sm:$0xff]  ;;  %v4522_v30 = vld [vmem:[#allocation4 + $0x30] sm:$0xff]  ;;  %v4527_v33 = vld [vmem:[#allocation4 + $0x58] sm:$0xff] }
 0x7a3   :  { %4632 = vmatprep.mubr.bf16.mxu1 %v4509_v9  ;;  %4561 = vmatpush1.bf16.msra.mxu0 %v4516_v24  ;;  %v4525_v32 = vld [vmem:[#allocation4 + $0x48] sm:$0xff]  ;;  %v4526_v44 = vld [vmem:[#allocation4 + $0x50] sm:$0xff]  ;;  %v4528_v8 = vld [vmem:[#allocation4 + $0x60] sm:$0xff]  ;;  %p6339_p13 = por %p6338_p12, %p6337_p11 }
 0x7a4   :  { %5584 = vmatpush1.bf16.msra.mxu1 %v4516_v24  ;;  %4562 = vmatprep.subr.bf16.mxu0 %v4519_v49  ;;  %v4529_v23 = vld [vmem:[#allocation4 + $0x68] sm:$0xff]  ;;  %v4531_v2 = vld [vmem:[#allocation4 + $0x78] sm:$0xff]  ;;  %v4530_v29 = vld [vmem:[#allocation4 + $0x70] sm:$0xff] }
 0x7a5   :  { %5569 = vmatprep.subr.bf16.mxu1 %v4519_v49  ;;  %v4533_v18 = vld [vmem:[#allocation4 + $0x88] sm:$0xff]  ;;  %v4532_v12 = vld [vmem:[#allocation4 + $0x80] sm:$0xff]  ;;  %v4535_v13 = vld [vmem:[#allocation4 + $0x98] sm:$0xff]  ;;  %p6340_p0 = pnand %p6339_p13, %p6333_p10 }
 0x7a6   :  { %v4534_v42 = vld [vmem:[#allocation4 + $0x90] sm:$0xff]  ;;  %v4537_v54 = vld [vmem:[#allocation4 + $0xa8] sm:$0xff]  ;;  %v4536_v41 = vld [vmem:[#allocation4 + $0xa0] sm:$0xff] }
 0x7a7   :  { %4563 = vmatpush1.bf16.msra.mxu0 %v4518_v16  ;;  %v4539_v20 = vld [vmem:[#allocation4 + $0xb8] sm:$0xff]  ;;  %v4538_v37 = vld [vmem:[#allocation4 + $0xb0] sm:$0xff]  ;;  %v4541_v36 = vld [vmem:[#allocation4 + $0xc8] sm:$0xff] }
 0x7a8   :  { %5585 = vmatpush1.bf16.msra.mxu1 %v4518_v16  ;;  %4564 = vmatprep.subr.bf16.mxu0 %v4521_v14  ;;  %v4540_v56 = vld [vmem:[#allocation4 + $0xc0] sm:$0xff]  ;;  %v4543_v7 = vld [vmem:[#allocation4 + $0xd8] sm:$0xff]  ;;  %v4542_v60 = vld [vmem:[#allocation4 + $0xd0] sm:$0xff] }
 0x7a9   :  { %5570 = vmatprep.subr.bf16.mxu1 %v4521_v14  ;;  %v4545_v50 = vld [vmem:[#allocation4 + $0xe8] sm:$0xff]  ;;  %v4544_v38 = vld [vmem:[#allocation4 + $0xe0] sm:$0xff]  ;;  %v4547_v1 = vld [vmem:[#allocation4 + $0xf8] sm:$0xff] }
 0x7aa   :  { %v4546_v53 = vld [vmem:[#allocation4 + $0xf0] sm:$0xff]  ;;  %v9481_v58 = vld [vmem:[#allocation24_spill] sm:$0xff]  ;;  %v9486_v21 = vld [vmem:[#allocation31_spill] sm:$0xff] }
 0x7ab   :  { %4565 = vmatpush1.bf16.msra.mxu0 %v4520_v48  ;;  %v9482_v6 = vld [vmem:[#allocation26_spill] sm:$0xff]  ;;  %v9483_v25 = vld [vmem:[#allocation40_spill] sm:$0xff]  ;;  %v9485_v10 = vld [vmem:[#allocation29_spill] sm:$0xff] }
 0x7ac   :  { %5586 = vmatpush1.bf16.msra.mxu1 %v4520_v48  ;;  %4566 = vmatprep.subr.bf16.mxu0 %v4523_v19  ;;  %v4500_v62 = vpack.c.bf16 %v9482_v6, %v9481_v58  ;;  %v9484_v27 = vld [vmem:[#allocation44_spill] sm:$0xff]  ;;  %v4503_v57 = vpack.c.bf16 %v9486_v21, %v9485_v10  ;;  %v9487_v22 = vld [vmem:[#allocation47_spill] sm:$0xff]  ;;  %v9488_v59 = vld [vmem:[#allocation49_spill] sm:$0xff] }
 0x7ad   :  { %5571 = vmatprep.subr.bf16.mxu1 %v4523_v19  ;;  %v4508_v28 = vpack.c.bf16 %v9484_v27, %v9483_v25  ;;  %v4511_v47 = vpack.c.bf16 %v9488_v59, %v9487_v22  ;;  %v9489_v35 = vld [vmem:[#allocation28_spill] sm:$0xff]  ;;  %v9490_v15 = vld [vmem:[#allocation30_spill] sm:$0xff]  ;;  %v9493_v49 = vld [vmem:[#allocation33_spill] sm:$0xff] }
 0x7ae   :  { %v4502_v17 = vpack.c.bf16 %v9490_v15, %v9489_v35  ;;  %v9491_v9 = vld [vmem:[#allocation46_spill] sm:$0xff]  ;;  %v9492_v43 = vld [vmem:[#allocation48_spill] sm:$0xff]  ;;  %v9494_v16 = vld [vmem:[#allocation35_spill] sm:$0xff] }
 0x7af   :  { %4567 = vmatpush1.bf16.msra.mxu0 %v4522_v30  ;;  %v4510_v24 = vpack.c.bf16 %v9492_v43, %v9491_v9  ;;  %v4505_v14 = vpack.c.bf16 %v9494_v16, %v9493_v49  ;;  %v9495_v48 = vld [vmem:[#allocation51_spill] sm:$0xff]  ;;  %v9496_v19 = vld [vmem:[#allocation53_spill] sm:$0xff]  ;;  %v9512_v6 = vld [vmem:[#allocation62_spill] sm:$0xff] }
 0x7b0   :  { %5587 = vmatpush1.bf16.msra.mxu1 %v4522_v30  ;;  %4568 = vmatprep.subr.bf16.mxu0 %v4525_v32  ;;  %v4513_v30 = vpack.c.bf16 %v9496_v19, %v9495_v48  ;;  %v5641_v27 = vadd.f32 %v8864_v3, %v9512_v6  ;;  %v5647_v49 = vadd.f32 %v8868_v0, %v9512_v6 }
 0x7b1   :  { %5572 = vmatprep.subr.bf16.mxu1 %v4525_v32  ;;  %v9497_v32 = vld [vmem:[#allocation32_spill] sm:$0xff] }
 0x7b3   :  { %4569 = vmatpush1.bf16.msra.mxu0 %v4524_v31 }
 0x7b4   :  { %5588 = vmatpush1.bf16.msra.mxu1 %v4524_v31  ;;  %4570 = vmatprep.subr.bf16.mxu0 %v4527_v33  ;;  %v9498_v31 = vld [vmem:[#allocation34_spill] sm:$0xff] }
 0x7b5   :  { %5573 = vmatprep.subr.bf16.mxu1 %v4527_v33  ;;  %v4504_v33 = vpack.c.bf16 %v9498_v31, %v9497_v32  ;;  %v5653_v31 = vadd.f32 %v8872_v61, %v9512_v6 }
 0x7b7   :  { %4571 = vmatpush1.bf16.msra.mxu0 %v4526_v44 }
 0x7b8   :  { %5589 = vmatpush1.bf16.msra.mxu1 %v4526_v44  ;;  %4572 = vmatprep.subr.bf16.mxu0 %v4529_v23  ;;  %v9499_v44 = vld [vmem:[#allocation50_spill] sm:$0xff] }
 0x7b9   :  { %5574 = vmatprep.subr.bf16.mxu1 %v4529_v23  ;;  %v9500_v23 = vld [vmem:[#allocation52_spill] sm:$0xff] }
 0x7bb   :  { %4573 = vmatpush1.bf16.msra.mxu0 %v4528_v8 }
 0x7bc   :  { %5590 = vmatpush1.bf16.msra.mxu1 %v4528_v8  ;;  %4574 = vmatprep.subr.bf16.mxu0 %v4531_v2  ;;  %v4512_v8 = vpack.c.bf16 %v9500_v23, %v9499_v44 }
 0x7bd   :  { %5575 = vmatprep.subr.bf16.mxu1 %v4531_v2  ;;  %v9501_v2 = vld [vmem:[#allocation37_spill] sm:$0xff] }
 0x7bf   :  { %4575 = vmatpush1.bf16.msra.mxu0 %v4530_v29 }
 0x7c0   :  { %5591 = vmatpush1.bf16.msra.mxu1 %v4530_v29  ;;  %4576 = vmatprep.subr.bf16.mxu0 %v4533_v18  ;;  %v9502_v29 = vld [vmem:[#allocation39_spill] sm:$0xff] }
 0x7c1   :  { %5576 = vmatprep.subr.bf16.mxu1 %v4533_v18  ;;  %v4507_v18 = vpack.c.bf16 %v9502_v29, %v9501_v2 }
 0x7c3   :  { %4577 = vmatpush1.bf16.msra.mxu0 %v4532_v12 }
 0x7c4   :  { %5592 = vmatpush1.bf16.msra.mxu1 %v4532_v12  ;;  %4578 = vmatprep.subr.bf16.mxu0 %v4535_v13  ;;  %v9503_v12 = vld [vmem:[#allocation55_spill] sm:$0xff] }
 0x7c5   :  { %5577 = vmatprep.subr.bf16.mxu1 %v4535_v13  ;;  %v9504_v13 = vld [vmem:[#allocation57_spill] sm:$0xff] }
 0x7c7   :  { %4579 = vmatpush1.bf16.msra.mxu0 %v4534_v42 }
 0x7c8   :  { %5593 = vmatpush1.bf16.msra.mxu1 %v4534_v42  ;;  %4580 = vmatprep.subr.bf16.mxu0 %v4537_v54  ;;  %v4515_v42 = vpack.c.bf16 %v9504_v13, %v9503_v12 }
 0x7c9   :  { %5578 = vmatprep.subr.bf16.mxu1 %v4537_v54  ;;  %v9505_v54 = vld [vmem:[#allocation36_spill] sm:$0xff] }
 0x7cb   :  { %4581 = vmatpush1.bf16.msra.mxu0 %v4536_v41 }
 0x7cc   :  { %5594 = vmatpush1.bf16.msra.mxu1 %v4536_v41  ;;  %4582 = vmatprep.subr.bf16.mxu0 %v4539_v20  ;;  %v9506_v41 = vld [vmem:[#allocation38_spill] sm:$0xff] }
 0x7cd   :  { %5579 = vmatprep.subr.bf16.mxu1 %v4539_v20  ;;  %v4506_v20 = vpack.c.bf16 %v9506_v41, %v9505_v54 }
 0x7cf   :  { %4583 = vmatpush1.bf16.msra.mxu0 %v4538_v37 }
 0x7d0   :  { %5595 = vmatpush1.bf16.msra.mxu1 %v4538_v37  ;;  %4584 = vmatprep.subr.bf16.mxu0 %v4541_v36  ;;  %v9507_v37 = vld [vmem:[#allocation54_spill] sm:$0xff] }
 0x7d1   :  { %5580 = vmatprep.subr.bf16.mxu1 %v4541_v36  ;;  %v9508_v36 = vld [vmem:[#allocation56_spill] sm:$0xff] }
 0x7d3   :  { %4585 = vmatpush1.bf16.msra.mxu0 %v4540_v56 }
 0x7d4   :  { %5596 = vmatpush1.bf16.msra.mxu1 %v4540_v56  ;;  %4586 = vmatprep.subr.bf16.mxu0 %v4543_v7  ;;  %v4514_v56 = vpack.c.bf16 %v9508_v36, %v9507_v37 }
 0x7d5   :  { %5581 = vmatprep.subr.bf16.mxu1 %v4543_v7  ;;  %v4548_v7 = vld [vmem:[#allocation11] sm:$0x3] }
 0x7d7   :  { %4587 = vmatpush1.bf16.msra.mxu0 %v4542_v60 }
 0x7d8   :  { %5597 = vmatpush1.bf16.msra.mxu1 %v4542_v60  ;;  %4588 = vmatprep.subr.bf16.mxu0 %v4545_v50  ;;  %v9509_v60 = vld [vmem:[#allocation59_spill] sm:$0xff] }
 0x7d9   :  { %5582 = vmatprep.subr.bf16.mxu1 %v4545_v50  ;;  %v8923_v50 = vrot.slane %v4548_v7, %v9509_v60 }
 0x7db   :  { %4589 = vmatpush1.bf16.msra.mxu0 %v4544_v38 }
 0x7dc   :  { %5598 = vmatpush1.bf16.msra.mxu1 %v4544_v38  ;;  %4590 = vmatprep.subr.bf16.mxu0 %v4547_v1  ;;  %v9510_v38 = vld [vmem:[#allocation61_spill] sm:$0xff] }
 0x7dd   :  { %5583 = vmatprep.subr.bf16.mxu1 %v4547_v1  ;;  %v5632_v1 = vadd.f32 %v8858_v51, %v9510_v38  ;;  %v5638_v25 = vadd.f32 %v8862_v26, %v9510_v38  ;;  %v8939_v10 = vadd.f32 %v8923_v50, %v9510_v38  ;;  %v5644_v15 = vadd.f32 %v8866_v5, %v9510_v38 }
 0x7de   :  { %v5656_v61 = vadd.f32 %v8874_v55, %v9510_v38  ;;  %v5662_v60 = vadd.f32 %v8878_v11, %v9510_v38 }
 0x7df   :  { %4591 = vmatpush1.bf16.msra.mxu0 %v4546_v53  ;;  %v5645_v0 = vadd.f32 %v5644_v15, %v8923_v50 }
 0x7e0   :  { %5599 = vmatpush1.bf16.msra.mxu1 %v4546_v53  ;;  %v9511_v53 = vld [vmem:[#allocation60_spill] sm:$0xff] }
 0x7e1   :  { %v8928_v58 = vrot.slane %v4548_v7, %v9511_v53  ;;  %v5665_v53 = vadd.f32 %v8880_v4, %v9512_v6  ;;  %v5668_v4 = vadd.f32 %v8882_v63, %v9510_v38 }
 0x7e2   :  { %4593 = vmatmul.mubr.bf16.vlgmr.msra.gmra.mrb[32].mxu0 %v4500_v62  ;;  %v5635_v62 = vadd.f32 %v8860_v46, %v9512_v6  ;;  %v5639_v46 = vadd.f32 %v5638_v25, %v8923_v50  ;;  %v5663_v25 = vadd.f32 %v5662_v60, %v8923_v50 }
 0x7e3   :  { %4633 = vmatmul.mubr.bf16.vlgmr.msra.gmra.mrb[16].mxu1 %v4508_v28  ;;  %4602 = vmatprep.mubr.bf16.mxu0 %v4503_v57  ;;  %v5633_v28 = vadd.f32 %v5632_v1, %v8923_v50  ;;  %v8944_v21 = vadd.f32 %v8928_v58, %v9512_v6  ;;  %v5642_v26 = vadd.f32 %v5641_v27, %v8928_v58 }
 0x7e4   :  { %4642 = vmatprep.mubr.bf16.mxu1 %v4511_v47  ;;  %v5636_v51 = vadd.f32 %v5635_v62, %v8928_v58 }
 0x7ea   :  { %4603 = vmatmul.mubr.bf16.gmra.mrb[36].mxu0 %v4502_v17 }
 0x7eb   :  { %4643 = vmatmul.mubr.bf16.gmra.mrb[20].mxu1 %v4510_v24  ;;  %4612 = vmatprep.mubr.bf16.mxu0 %v4505_v14 }
 0x7ec   :  { %4652 = vmatprep.mubr.bf16.mxu1 %v4513_v30  ;;  %v5650_v30 = vadd.f32 %v8870_v39, %v9510_v38 }
 0x7ee   :  { %v5651_v44 = vadd.f32 %v5650_v30, %v8923_v50 }
 0x7f2   :  { %4613 = vmatmul.mubr.bf16.gmra.mrb[40].mxu0 %v4504_v33  ;;  %v5648_v33 = vadd.f32 %v5647_v49, %v8928_v58 }
 0x7f3   :  { %4653 = vmatmul.mubr.bf16.gmra.mrb[24].mxu1 %v4512_v8  ;;  %4622 = vmatprep.mubr.bf16.mxu0 %v4507_v18  ;;  %v5654_v8 = vadd.f32 %v5653_v31, %v8928_v58 }
 0x7f4   :  { %4662 = vmatprep.mubr.bf16.mxu1 %v4515_v42 }
 0x7fa   :  { %4623 = vmatmul.mubr.bf16.gmra.mrb[44].mxu0 %v4506_v20  ;;  %v5659_v20 = vadd.f32 %v8876_v52, %v9512_v6  ;;  %v5657_v52 = vadd.f32 %v5656_v61, %v8923_v50 }
 0x7fb   :  { %4663 = vmatmul.mubr.bf16.gmra.mrb[28].mxu1 %v4514_v56 }
 0x7fc   :  { %v5660_v62 = vadd.f32 %v5659_v20, %v8928_v58 }
 0x8b5   :  { %v4594_v57 = vpop.f32.mrb[32].mxu0 }
 0x8b6   :  { %v4634_v22 = vpop.f32.mrb[16].mxu1  ;;  %v5634_v59 = vadd.f32 %v5633_v28, %v4594_v57  ;;  %v4596_v47 = vpop.f32.mrb[33].mxu0  ;;  %v5666_v28 = vadd.f32 %v5665_v53, %v8928_v58 }
 0x8b7   :  { %v5681_v3 = vadd.f32 %v8939_v10, %v4634_v22  ;;  %v4636_v35 = vpop.f32.mrb[17].mxu1  ;;  %v5637_v17 = vadd.f32 %v5636_v51, %v4596_v47  ;;  %v4598_v43 = vpop.f32.mrb[34].mxu0 }
 0x8b8   :  { %v5683_v9 = vadd.f32 %v8944_v21, %v4636_v35  ;;  %v4638_v24 = vpop.f32.mrb[18].mxu1  ;;  %4705 = vst [vmem:[#allocation12] sm:$0xff] %v5634_v59  ;;  %v5640_v16 = vadd.f32 %v5639_v46, %v4598_v43  ;;  %v4600_v48 = vpop.f32.mrb[35].mxu0  ;;  %v5671_v35 = vadd.f32 %v8884_v34, %v9512_v6  ;;  %v5669_v34 = vadd.f32 %v5668_v4, %v8923_v50 }
 0x8b9   :  { %4721 = vst [vmem:[#allocation12 + $0x80] sm:$0xff] %v5681_v3  ;;  %v5685_v14 = vadd.f32 %v8939_v10, %v4638_v24  ;;  %v4640_v19 = vpop.f32.mrb[19].mxu1  ;;  %4706 = vst [vmem:[#allocation12 + $0x8] sm:$0xff] %v5637_v17  ;;  %v5643_v5 = vadd.f32 %v5642_v26, %v4600_v48  ;;  %v5674_v24 = vadd.f32 %v8886_v45, %v9510_v38 }
 0x8ba   :  { %4722 = vst [vmem:[#allocation12 + $0x88] sm:$0xff] %v5683_v9  ;;  %v5687_v32 = vadd.f32 %v8944_v21, %v4640_v19  ;;  %4707 = vst [vmem:[#allocation12 + $0x10] sm:$0xff] %v5640_v16  ;;  %v5677_v16 = vadd.f32 %v8888_v40, %v9512_v6 }
 0x8bb   :  { %4723 = vst [vmem:[#allocation12 + $0x90] sm:$0xff] %v5685_v14  ;;  %4708 = vst [vmem:[#allocation12 + $0x18] sm:$0xff] %v5643_v5  ;;  %v5672_v14 = vadd.f32 %v5671_v35, %v8928_v58  ;;  %v5675_v48 = vadd.f32 %v5674_v24, %v8923_v50 }
 0x8bc   :  { %4724 = vst [vmem:[#allocation12 + $0x98] sm:$0xff] %v5687_v32  ;;  %v5678_v38 = vadd.f32 %v5677_v16, %v8928_v58 }
 0x8bd   :  { %v4604_v23 = vpop.f32.mrb[36].mxu0 }
 0x8be   :  { %v4644_v39 = vpop.f32.mrb[20].mxu1  ;;  %v5646_v2 = vadd.f32 %v5645_v0, %v4604_v23  ;;  %v4606_v18 = vpop.f32.mrb[37].mxu0 }
 0x8bf   :  { %v5689_v29 = vadd.f32 %v8939_v10, %v4644_v39  ;;  %v4646_v12 = vpop.f32.mrb[21].mxu1  ;;  %v5649_v13 = vadd.f32 %v5648_v33, %v4606_v18  ;;  %v4608_v54 = vpop.f32.mrb[38].mxu0 }
 0x8c0   :  { %v5691_v42 = vadd.f32 %v8944_v21, %v4646_v12  ;;  %v4648_v41 = vpop.f32.mrb[22].mxu1  ;;  %4709 = vst [vmem:[#allocation12 + $0x20] sm:$0xff] %v5646_v2  ;;  %v5652_v37 = vadd.f32 %v5651_v44, %v4608_v54  ;;  %v4610_v56 = vpop.f32.mrb[39].mxu0 }
 0x8c1   :  { %4725 = vst [vmem:[#allocation12 + $0xa0] sm:$0xff] %v5689_v29  ;;  %v5693_v36 = vadd.f32 %v8939_v10, %v4648_v41  ;;  %v4650_v7 = vpop.f32.mrb[23].mxu1  ;;  %4710 = vst [vmem:[#allocation12 + $0x28] sm:$0xff] %v5649_v13  ;;  %v5655_v55 = vadd.f32 %v5654_v8, %v4610_v56 }
 0x8c2   :  { %4726 = vst [vmem:[#allocation12 + $0xa8] sm:$0xff] %v5691_v42  ;;  %v5695_v1 = vadd.f32 %v8944_v21, %v4650_v7  ;;  %4711 = vst [vmem:[#allocation12 + $0x30] sm:$0xff] %v5652_v37 }
 0x8c3   :  { %4727 = vst [vmem:[#allocation12 + $0xb0] sm:$0xff] %v5693_v36  ;;  %4712 = vst [vmem:[#allocation12 + $0x38] sm:$0xff] %v5655_v55 }
 0x8c4   :  { %4728 = vst [vmem:[#allocation12 + $0xb8] sm:$0xff] %v5695_v1 }
 0x8c5   :  { %v4614_v27 = vpop.f32.mrb[40].mxu0 }
 0x8c6   :  { %v4654_v11 = vpop.f32.mrb[24].mxu1  ;;  %v5658_v51 = vadd.f32 %v5657_v52, %v4614_v27  ;;  %v4616_v57 = vpop.f32.mrb[41].mxu0 }
 0x8c7   :  { %v5697_v46 = vadd.f32 %v8939_v10, %v4654_v11  ;;  %v4656_v22 = vpop.f32.mrb[25].mxu1  ;;  %v5661_v26 = vadd.f32 %v5660_v62, %v4616_v57  ;;  %v4618_v3 = vpop.f32.mrb[42].mxu0 }
 0x8c8   :  { %v5699_v59 = vadd.f32 %v8944_v21, %v4656_v22  ;;  %v4658_v47 = vpop.f32.mrb[26].mxu1  ;;  %4713 = vst [vmem:[#allocation12 + $0x40] sm:$0xff] %v5658_v51  ;;  %v5664_v15 = vadd.f32 %v5663_v25, %v4618_v3  ;;  %v4620_v9 = vpop.f32.mrb[43].mxu0 }
 0x8c9   :  { %4729 = vst [vmem:[#allocation12 + $0xc0] sm:$0xff] %v5697_v46  ;;  %v5701_v17 = vadd.f32 %v8939_v10, %v4658_v47  ;;  %v4660_v43 = vpop.f32.mrb[27].mxu1  ;;  %4714 = vst [vmem:[#allocation12 + $0x48] sm:$0xff] %v5661_v26  ;;  %v5667_v63 = vadd.f32 %v5666_v28, %v4620_v9 }
 0x8ca   :  { %4730 = vst [vmem:[#allocation12 + $0xc8] sm:$0xff] %v5699_v59  ;;  %v5703_v49 = vadd.f32 %v8944_v21, %v4660_v43  ;;  %4715 = vst [vmem:[#allocation12 + $0x50] sm:$0xff] %v5664_v15 }
 0x8cb   :  { %4731 = vst [vmem:[#allocation12 + $0xd0] sm:$0xff] %v5701_v17  ;;  %4716 = vst [vmem:[#allocation12 + $0x58] sm:$0xff] %v5667_v63 }
 0x8cc   :  { %4732 = vst [vmem:[#allocation12 + $0xd8] sm:$0xff] %v5703_v49 }
 0x8cd   :  { %v4624_v19 = vpop.f32.mrb[44].mxu0 }
 0x8ce   :  { %v4664_v45 = vpop.f32.mrb[28].mxu1  ;;  %v5670_v30 = vadd.f32 %v5669_v34, %v4624_v19  ;;  %v4626_v32 = vpop.f32.mrb[45].mxu0 }
 0x8cf   :  { %v5705_v5 = vadd.f32 %v8939_v10, %v4664_v45  ;;  %v4666_v31 = vpop.f32.mrb[29].mxu1  ;;  %v5673_v40 = vadd.f32 %v5672_v14, %v4626_v32  ;;  %v4628_v0 = vpop.f32.mrb[46].mxu0 }
 0x8d0   :  { %v5707_v6 = vadd.f32 %v8944_v21, %v4666_v31  ;;  %v4668_v33 = vpop.f32.mrb[30].mxu1  ;;  %4717 = vst [vmem:[#allocation12 + $0x60] sm:$0xff] %v5670_v30  ;;  %v5676_v44 = vadd.f32 %v5675_v48, %v4628_v0  ;;  %v4630_v23 = vpop.f32.mrb[47].mxu0 }
 0x8d1   :  { %4733 = vst [vmem:[#allocation12 + $0xe0] sm:$0xff] %v5705_v5  ;;  %v5709_v50 = vadd.f32 %v8939_v10, %v4668_v33  ;;  %v4670_v39 = vpop.f32.mrb[31].mxu1  ;;  %4718 = vst [vmem:[#allocation12 + $0x68] sm:$0xff] %v5673_v40  ;;  %v5679_v58 = vadd.f32 %v5678_v38, %v4630_v23 }
 0x8d2   :  { %4734 = vst [vmem:[#allocation12 + $0xe8] sm:$0xff] %v5707_v6  ;;  %v5711_v8 = vadd.f32 %v8944_v21, %v4670_v39  ;;  %4719 = vst [vmem:[#allocation12 + $0x70] sm:$0xff] %v5676_v44 }
 0x8d3   :  { %4735 = vst [vmem:[#allocation12 + $0xf0] sm:$0xff] %v5709_v50  ;;  %4720 = vst [vmem:[#allocation12 + $0x78] sm:$0xff] %v5679_v58 }
 0x8d4   :  { %4736 = vst [vmem:[#allocation12 + $0xf8] sm:$0xff] %v5711_v8 }
 0x8d5   :  { %6343 = shalt.err (!%p6340_p0)
}
 0x8d6   :  { %s6344_s14 = scalar_lea.hbm %s9025_s11, 4096 }
 0x8d7   :  { %p6345_p1 = scmp.ne.s32.totalorder %s9025_s11, %s6344_s14  ;;  %p6348_p2 = scmp.lt.u32.totalorder %s6344_s14, %s9025_s11 }
 0x8d9   :  { %p6350_p3 = pnand %p6348_p2, %p6345_p1 }
 0x8db   :  { %6353 = shalt.err (!%p6350_p3)
}
 0x8dc   :  { %s6383_s21 = smov 16  }
 0x8dd   :  { %4748 = dma.vmem_to_hbm [thread:$0]  %s4743_s2, 4096, %s9025_s11, [#allocation8], %s6370_s16, %s6370_s16, %s6383_s21  }
 0x8de   :  { %6364 = dma.done.wait [#allocation8], 4096  }
 0x8df   :  { %6365 = vsyncadd [#allocation8], 4294963200 }
 0x8e0   :  { %4752 = vsyncpa [#allocation7], 1 }
 0x8e1   :  { %4753 = vsyncpa [#allocation10], 1 }
 0x8e2   :  { %4754 = vsyncpa [#allocation8], 1 }
 0x8e3   :  { %4755 = vsyncmov [#allocation5] }
 0x8e6   :  { %s4756_s18 = vpop.sfrf %4755 }
 0x8e7   :  { %p5565_p4 = scmp.ne.s32.totalorder %s4756_s18, 0 }
 0x8e9   :  { %4760 = shalt.err (%p5565_p4)  }
 0x8ea   :  { %4762 = vsyncmov [#allocation5 + $0x1] }
 0x8ed   :  { %s4763_s22 = vpop.sfrf %4762 }
 0x8ee   :  { %p5566_p5 = scmp.ne.s32.totalorder %s4763_s22, 0 }
 0x8f0   :  { %4767 = shalt.err (%p5566_p5)  }
 0x8f1   :  { %4769 = vsyncmov [#allocation5 + $0x2] }
 0x8f4   :  { %s4770_s10 = vpop.sfrf %4769 }
 0x8f5   :  { %p5567_p6 = scmp.ne.s32.totalorder %s4770_s10, 0 }
 0x8f7   :  { %4774 = shalt.err (%p5567_p6)  }

</bundles_post_ra>
